<compile_context>
chip_gen: v5e
topology: v5e:2x2
jax: 0.10.0
libtpu: 0.0.40
codegen_flags: <defaults>
</compile_context>

<pallas_src>
import functools
import math

import jax
import jax.numpy as jnp
from jax.experimental import pallas as pl
from jax.experimental.pallas import tpu as pltpu

# Matmul input dtype.  float32 keeps parity with the PyTorch reference; on
# v6e/v7x this can be set to jnp.bfloat16 (native MXU input) -- accumulation
# stays f32 via preferred_element_type and the GRU elementwise update stays f32.
MXU_DTYPE = jnp.float32
C_PAD = 128          # classes zero-padded to a full lane width (dense store)
OUT_SUBLANES = 8     # per-batch output block padded to a full (8, 128) tile


# ----------------------------------------------------------------------------
# Fused kernel: full T x L recurrence + final Linear + max over nodes
# ----------------------------------------------------------------------------
def _fused_dcgru_kernel(num_supports, max_diffusion_step, num_layers, *refs):
    x_ref, sup_ref = refs[0], refs[1]
    cell_refs = refs[2:2 + 3 * num_layers]
    wfc_ref = refs[2 + 3 * num_layers]
    bfc_ref = refs[3 + 3 * num_layers]
    out_ref = refs[4 + 3 * num_layers]
    h_ref = refs[5 + 3 * num_layers]          # VMEM scratch (L, N, U), carried

    t = pl.program_id(1)

    # New batch element starts: reset carried hidden state.
    @pl.when(t == 0)
    def _init():
        h_ref[...] = jnp.zeros_like(h_ref)

    N, U = h_ref.shape[-2], h_ref.shape[-1]
    supports = [sup_ref[s] for s in range(num_supports)]      # each (N, N)

    def diffuse_project(x_cols, w_ref, accs, targets):
        """Chebyshev diffusion of x_cols (N, C); accumulates x_m @ w_ref[j, m]
        into accs[j] for each j in `targets`.  Only two diffusion states live.
        # TODO(synk): torch.sparse.mm has no sparse Pallas equivalent; the
        # diffusion steps are dense MXU matmuls."""
        def proj(m, xm):
            xm_c = xm.astype(MXU_DTYPE)
            for j in targets:
                accs[j] = accs[j] + jnp.dot(
                    xm_c, w_ref[j, m].astype(MXU_DTYPE),
                    preferred_element_type=jnp.float32)

        proj(0, x_cols)
        m = 1
        for s in range(num_supports):
            A = supports[s].astype(MXU_DTYPE)
            x1 = jnp.dot(A, x_cols.astype(MXU_DTYPE),
                         preferred_element_type=jnp.float32)
            proj(m, x1)
            m += 1
            xkm2, xkm1 = x_cols, x1
            for _ in range(2, max_diffusion_step + 1):
                x2 = 2.0 * jnp.dot(A, xkm1.astype(MXU_DTYPE),
                                   preferred_element_type=jnp.float32) - xkm2
                proj(m, x2)
                m += 1
                xkm2, xkm1 = xkm1, x2
        return accs

    inp = x_ref[0, 0]                                         # (N, D_layer0)
    for li in range(num_layers):
        w_in_ref, w_st_ref, b_ref = cell_refs[3 * li:3 * li + 3]
        state = h_ref[li]                                     # (N, U)

        # accumulators: 0 -> r gate, 1 -> u gate, 2 -> candidate
        accs = [jnp.zeros((N, U), jnp.float32) for _ in range(3)]
        # input columns feed r, u and the candidate (shared diffusion chain)
        accs = diffuse_project(inp, w_in_ref, accs, targets=(0, 1, 2))
        # state columns feed r and u
        accs = diffuse_project(state, w_st_ref, accs, targets=(0, 1))

        r = jax.nn.sigmoid(accs[0] + b_ref[0])                # (N, U)
        u = jax.nn.sigmoid(accs[1] + b_ref[1])

        # candidate's state columns are r * state
        accs = diffuse_project(r * state, w_st_ref, accs, targets=(2,))
        c = jnp.tanh(accs[2] + b_ref[2])

        new_state = u * state + (1.0 - u) * c                 # GRU update (f32)
        h_ref[li] = new_state
        inp = new_state                                       # next layer input

    # Final Linear + max over nodes, fused into the last time step.
    # TODO(synk): nn.Dropout(0.3) is identity at inference; not applied.
    @pl.when(t == pl.num_programs(1) - 1)
    def _finalize():
        logits = jnp.dot(inp.astype(MXU_DTYPE), wfc_ref[...].astype(MXU_DTYPE),
                         preferred_element_type=jnp.float32) + bfc_ref[...]
        logits = jnp.max(logits, axis=0, keepdims=True)       # (1, C_PAD)
        out_ref[0] = jnp.broadcast_to(logits, (OUT_SUBLANES, C_PAD))


# ----------------------------------------------------------------------------
# Wrapper: one pallas_call for the whole forward pass
# ----------------------------------------------------------------------------
def dcgru_classifier_forward(x, supports, params, *, rnn_units, num_layers,
                             max_diffusion_step, num_supports, num_classes):
    B, T, N, D = x.shape
    U = rnn_units
    S = num_supports
    M = S * max_diffusion_step + 1

    def const(shape):
        return pl.BlockSpec(shape, lambda b, t: (0,) * len(shape))

    in_specs = [
        pl.BlockSpec((1, 1, N, D), lambda b, t: (b, t, 0, 0)),   # x: streamed
        const((S, N, N)),                                        # supports
    ]
    inputs = [x, supports]
    for li in range(num_layers):
        cell = params["cells"][li]
        din = D if li == 0 else U
        in_specs += [const((3, M, din, U)), const((3, M, U, U)), const((3, 1, U))]
        inputs += [cell["w_in"], cell["w_st"], cell["b"]]
    in_specs += [const((U, C_PAD)), const((1, C_PAD))]
    inputs += [params["w_fc"], params["b_fc"]]

    kernel = functools.partial(_fused_dcgru_kernel, num_supports,
                               max_diffusion_step, num_layers)

    out = pl.pallas_call(
        kernel,
        out_shape=jax.ShapeDtypeStruct((B, OUT_SUBLANES, C_PAD), jnp.float32),
        grid=(B, T),
        in_specs=in_specs,
        out_specs=pl.BlockSpec((1, OUT_SUBLANES, C_PAD), lambda b, t: (b, 0, 0)),
        scratch_shapes=[pltpu.VMEM((num_layers, N, U), jnp.float32)],
        compiler_params=pltpu.CompilerParams(
            # time axis carries hidden state -> MUST be "arbitrary";
            # batch axis is independent -> "parallel" (v7x megacore).
            dimension_semantics=("parallel", "arbitrary")),
    )(*inputs)
    return out[:, 0, :num_classes]


# ----------------------------------------------------------------------------
# Parameter construction (deterministic, synthetic, PyTorch-layout then split)
# ----------------------------------------------------------------------------
def _xavier_uniform(key, fan_in, fan_out):
    bound = math.sqrt(6.0 / (fan_in + fan_out))
    return jax.random.uniform(key, (fan_in, fan_out), jnp.float32, -bound, bound)


def _split_dconv_weight(w, in_dim, hid_dim, num_matrices):
    """PyTorch DiffusionGraphConv weight (F*M, out) with row index f*M + m
    -> (w_input (M, in_dim, out), w_state (M, hid_dim, out))."""
    F = in_dim + hid_dim
    out_dim = w.shape[-1]
    w3 = w.reshape(F, num_matrices, out_dim)                 # row f*M + m -> [f, m]
    w_in = jnp.transpose(w3[:in_dim], (1, 0, 2))
    w_st = jnp.transpose(w3[in_dim:], (1, 0, 2))
    return w_in, w_st


def init_params(key, *, input_dim, num_nodes, rnn_units, num_layers,
                max_diffusion_step, num_classes, num_supports):
    U = rnn_units
    M = num_supports * max_diffusion_step + 1
    params = {"cells": []}
    for layer in range(num_layers):
        in_dim = input_dim if layer == 0 else U
        F = in_dim + U
        key, kg, kc = jax.random.split(key, 3)
        # PyTorch layout: (F * M, out_dim) with row index f*M + m; biases = 0.
        wg = _xavier_uniform(kg, F * M, 2 * U)
        wc = _xavier_uniform(kc, F * M, U)
        bg = jnp.zeros((2 * U,), jnp.float32)
        bc = jnp.zeros((U,), jnp.float32)
        # split gate weight by output into r / u slabs, then by rows into
        # input / state slabs (removes lane-unaligned concat & gate split).
        wr_in, wr_st = _split_dconv_weight(wg[:, :U], in_dim, U, M)
        wu_in, wu_st = _split_dconv_weight(wg[:, U:], in_dim, U, M)
        wc_in, wc_st = _split_dconv_weight(wc, in_dim, U, M)
        params["cells"].append({
            "w_in": jnp.stack([wr_in, wu_in, wc_in], axis=0),    # (3, M, in_dim, U)
            "w_st": jnp.stack([wr_st, wu_st, wc_st], axis=0),    # (3, M, U, U)
            "b": jnp.stack([bg[:U], bg[U:], bc], axis=0).reshape(3, 1, U),
        })
    key, kw, kb = jax.random.split(key, 3)
    bound = 1.0 / math.sqrt(U)
    w_fc = jax.random.uniform(kw, (U, num_classes), jnp.float32, -bound, bound)
    b_fc = jax.random.uniform(kb, (num_classes,), jnp.float32, -bound, bound)
    # zero-pad class dim to a full lane so the kernel's output store is dense.
    params["w_fc"] = jnp.zeros((U, C_PAD), jnp.float32).at[:, :num_classes].set(w_fc)
    params["b_fc"] = jnp.zeros((1, C_PAD), jnp.float32).at[0, :num_classes].set(b_fc)
    return params


# ----------------------------------------------------------------------------
# Main
# ----------------------------------------------------------------------------
if __name__ == "__main__":
    batch = 2
    seq_len = 8
    num_nodes = 16
    input_dim = 4
    rnn_units = 32
    num_layers = 2
    max_diffusion_step = 2
    num_classes = 3
    num_supports = 2

    key = jax.random.PRNGKey(0)
    key, kx, ks, kp = jax.random.split(key, 4)

    x = jax.random.normal(kx, (batch, seq_len, num_nodes, input_dim), jnp.float32)

    # Dense, row-normalized random "supports" (random-walk diffusion matrices).
    adj = jax.random.uniform(ks, (num_supports, num_nodes, num_nodes), jnp.float32)
    supports = adj / jnp.sum(adj, axis=-1, keepdims=True)

    params = init_params(kp, input_dim=input_dim, num_nodes=num_nodes,
                         rnn_units=rnn_units, num_layers=num_layers,
                         max_diffusion_step=max_diffusion_step,
                         num_classes=num_classes, num_supports=num_supports)

    logits = dcgru_classifier_forward(
        x, supports, params, rnn_units=rnn_units, num_layers=num_layers,
        max_diffusion_step=max_diffusion_step, num_supports=num_supports,
        num_classes=num_classes)
    logits = jax.block_until_ready(logits)

    assert logits.shape == (batch, num_classes)
    assert bool(jnp.all(jnp.isfinite(logits)))
    print("KERNEL_OK")
</pallas_src>

<mosaic_0001>
module attributes {stable_mosaic.version = 11 : i64} {
  func.func @_fused_dcgru_kernel(%arg0: i32, %arg1: i32, %arg2: memref<1x1x16x4xf32, #tpu.memory_space<vmem>>, %arg3: memref<2x16x16xf32, #tpu.memory_space<vmem>>, %arg4: memref<3x5x4x32xf32, #tpu.memory_space<vmem>>, %arg5: memref<3x5x32x32xf32, #tpu.memory_space<vmem>>, %arg6: memref<3x1x32xf32, #tpu.memory_space<vmem>>, %arg7: memref<3x5x32x32xf32, #tpu.memory_space<vmem>>, %arg8: memref<3x5x32x32xf32, #tpu.memory_space<vmem>>, %arg9: memref<3x1x32xf32, #tpu.memory_space<vmem>>, %arg10: memref<32x128xf32, #tpu.memory_space<vmem>>, %arg11: memref<1x128xf32, #tpu.memory_space<vmem>>, %arg12: memref<1x8x128xf32, #tpu.memory_space<vmem>>, %arg13: memref<2x16x32xf32, #tpu.memory_space<vmem>>) attributes {dimension_semantics = [#tpu.dimension_semantics<parallel>, #tpu.dimension_semantics<arbitrary>], iteration_bounds = array<i64: 2, 8>, scalar_prefetch = 0 : i64, scratch_operands = 1 : i64, tpu.core_type = #tpu.core_type<tc>, window_params = [{transform_indices = @transform_0, window_bounds = array<i64: 1, 1, 16, 4>}, {pipeline_mode = #tpu.pipeline_mode<synchronous>, transform_indices = @transform_1, window_bounds = array<i64: 2, 16, 16>}, {pipeline_mode = #tpu.pipeline_mode<synchronous>, transform_indices = @transform_2, window_bounds = array<i64: 3, 5, 4, 32>}, {pipeline_mode = #tpu.pipeline_mode<synchronous>, transform_indices = @transform_3, window_bounds = array<i64: 3, 5, 32, 32>}, {pipeline_mode = #tpu.pipeline_mode<synchronous>, transform_indices = @transform_4, window_bounds = array<i64: 3, 1, 32>}, {pipeline_mode = #tpu.pipeline_mode<synchronous>, transform_indices = @transform_5, window_bounds = array<i64: 3, 5, 32, 32>}, {pipeline_mode = #tpu.pipeline_mode<synchronous>, transform_indices = @transform_6, window_bounds = array<i64: 3, 5, 32, 32>}, {pipeline_mode = #tpu.pipeline_mode<synchronous>, transform_indices = @transform_7, window_bounds = array<i64: 3, 1, 32>}, {pipeline_mode = #tpu.pipeline_mode<synchronous>, transform_indices = @transform_8, window_bounds = array<i64: 32, 128>}, {pipeline_mode = #tpu.pipeline_mode<synchronous>, transform_indices = @transform_9, window_bounds = array<i64: 1, 128>}, {transform_indices = @transform_10, window_bounds = array<i64: 1, 8, 128>}]} {
    %c0_i32 = arith.constant 0 : i32
    %0 = arith.cmpi eq, %arg1, %c0_i32 : i32
    %1 = arith.extui %0 : i1 to i32
    %c0_i32_0 = arith.constant 0 : i32
    %2 = arith.cmpi ne, %1, %c0_i32_0 : i32
    scf.if %2 {
      %cst_384 = arith.constant 0.000000e+00 : f32
      %386 = vector.broadcast %cst_384 : f32 to vector<2x16x32xf32>
      %c0_385 = arith.constant 0 : index
      %c0_386 = arith.constant 0 : index
      %c0_387 = arith.constant 0 : index
      %387 = vector.load %arg13[%c0_385, %c0_386, %c0_387] : memref<2x16x32xf32, #tpu.memory_space<vmem>>, vector<2x16x32xf32>
      tpu.vector_store %arg13[%c0_385, %c0_386, %c0_387], %386 {strides = array<i32>} : memref<2x16x32xf32, #tpu.memory_space<vmem>>, vector<2x16x32xf32>,
    } else {
    }
    %c0 = arith.constant 0 : index
    %c0_1 = arith.constant 0 : index
    %c0_2 = arith.constant 0 : index
    %3 = vector.load %arg3[%c0, %c0_1, %c0_2] : memref<2x16x16xf32, #tpu.memory_space<vmem>>, vector<1x16x16xf32>
    %4 = vector.shape_cast %3 : vector<1x16x16xf32> to vector<16x16xf32>
    %c1 = arith.constant 1 : index
    %c0_3 = arith.constant 0 : index
    %c0_4 = arith.constant 0 : index
    %5 = vector.load %arg3[%c1, %c0_3, %c0_4] : memref<2x16x16xf32, #tpu.memory_space<vmem>>, vector<1x16x16xf32>
    %6 = vector.shape_cast %5 : vector<1x16x16xf32> to vector<16x16xf32>
    %c0_5 = arith.constant 0 : index
    %c0_6 = arith.constant 0 : index
    %c0_7 = arith.constant 0 : index
    %c0_8 = arith.constant 0 : index
    %7 = vector.load %arg2[%c0_5, %c0_6, %c0_7, %c0_8] : memref<1x1x16x4xf32, #tpu.memory_space<vmem>>, vector<1x1x16x4xf32>
    %8 = vector.shape_cast %7 : vector<1x1x16x4xf32> to vector<16x4xf32>
    %c0_9 = arith.constant 0 : index
    %c0_10 = arith.constant 0 : index
    %c0_11 = arith.constant 0 : index
    %9 = vector.load %arg13[%c0_9, %c0_10, %c0_11] : memref<2x16x32xf32, #tpu.memory_space<vmem>>, vector<1x16x32xf32>
    %10 = vector.shape_cast %9 : vector<1x16x32xf32> to vector<16x32xf32>
    %cst = arith.constant 0.000000e+00 : f32
    %11 = vector.broadcast %cst : f32 to vector<16x32xf32>
    %cst_12 = arith.constant 0.000000e+00 : f32
    %12 = vector.broadcast %cst_12 : f32 to vector<16x32xf32>
    %cst_13 = arith.constant 0.000000e+00 : f32
    %13 = vector.broadcast %cst_13 : f32 to vector<16x32xf32>
    %c0_14 = arith.constant 0 : index
    %c0_15 = arith.constant 0 : index
    %c0_16 = arith.constant 0 : index
    %c0_17 = arith.constant 0 : index
    %14 = vector.load %arg4[%c0_14, %c0_15, %c0_16, %c0_17] : memref<3x5x4x32xf32, #tpu.memory_space<vmem>>, vector<1x1x4x32xf32>
    %15 = vector.shape_cast %14 : vector<1x1x4x32xf32> to vector<4x32xf32>
    %cst_18 = arith.constant dense<0.000000e+00> : vector<16x32xf32>
    %16 = tpu.matmul %8, %15, %cst_18 {dimension_numbers = #tpu.dot_dimension_numbers<[1], [0], [0], [1], [0, 0, 1, 1], [], []>} : vector<16x4xf32>, vector<4x32xf32>, vector<16x32xf32> -> vector<16x32xf32>
    %17 = arith.addf %11, %16 : vector<16x32xf32>
    %c1_19 = arith.constant 1 : index
    %c0_20 = arith.constant 0 : index
    %c0_21 = arith.constant 0 : index
    %c0_22 = arith.constant 0 : index
    %18 = vector.load %arg4[%c1_19, %c0_20, %c0_21, %c0_22] : memref<3x5x4x32xf32, #tpu.memory_space<vmem>>, vector<1x1x4x32xf32>
    %19 = vector.shape_cast %18 : vector<1x1x4x32xf32> to vector<4x32xf32>
    %cst_23 = arith.constant dense<0.000000e+00> : vector<16x32xf32>
    %20 = tpu.matmul %8, %19, %cst_23 {dimension_numbers = #tpu.dot_dimension_numbers<[1], [0], [0], [1], [0, 0, 1, 1], [], []>} : vector<16x4xf32>, vector<4x32xf32>, vector<16x32xf32> -> vector<16x32xf32>
    %21 = arith.addf %12, %20 : vector<16x32xf32>
    %c2 = arith.constant 2 : index
    %c0_24 = arith.constant 0 : index
    %c0_25 = arith.constant 0 : index
    %c0_26 = arith.constant 0 : index
    %22 = vector.load %arg4[%c2, %c0_24, %c0_25, %c0_26] : memref<3x5x4x32xf32, #tpu.memory_space<vmem>>, vector<1x1x4x32xf32>
    %23 = vector.shape_cast %22 : vector<1x1x4x32xf32> to vector<4x32xf32>
    %cst_27 = arith.constant dense<0.000000e+00> : vector<16x32xf32>
    %24 = tpu.matmul %8, %23, %cst_27 {dimension_numbers = #tpu.dot_dimension_numbers<[1], [0], [0], [1], [0, 0, 1, 1], [], []>} : vector<16x4xf32>, vector<4x32xf32>, vector<16x32xf32> -> vector<16x32xf32>
    %25 = arith.addf %13, %24 : vector<16x32xf32>
    %cst_28 = arith.constant dense<0.000000e+00> : vector<16x4xf32>
    %26 = tpu.matmul %4, %8, %cst_28 {dimension_numbers = #tpu.dot_dimension_numbers<[1], [0], [0], [1], [0, 0, 1, 1], [], []>} : vector<16x16xf32>, vector<16x4xf32>, vector<16x4xf32> -> vector<16x4xf32>
    %c0_29 = arith.constant 0 : index
    %c1_30 = arith.constant 1 : index
    %c0_31 = arith.constant 0 : index
    %c0_32 = arith.constant 0 : index
    %27 = vector.load %arg4[%c0_29, %c1_30, %c0_31, %c0_32] : memref<3x5x4x32xf32, #tpu.memory_space<vmem>>, vector<1x1x4x32xf32>
    %28 = vector.shape_cast %27 : vector<1x1x4x32xf32> to vector<4x32xf32>
    %cst_33 = arith.constant dense<0.000000e+00> : vector<16x32xf32>
    %29 = tpu.matmul %26, %28, %cst_33 {dimension_numbers = #tpu.dot_dimension_numbers<[1], [0], [0], [1], [0, 0, 1, 1], [], []>} : vector<16x4xf32>, vector<4x32xf32>, vector<16x32xf32> -> vector<16x32xf32>
    %30 = arith.addf %17, %29 : vector<16x32xf32>
    %c1_34 = arith.constant 1 : index
    %c1_35 = arith.constant 1 : index
    %c0_36 = arith.constant 0 : index
    %c0_37 = arith.constant 0 : index
    %31 = vector.load %arg4[%c1_34, %c1_35, %c0_36, %c0_37] : memref<3x5x4x32xf32, #tpu.memory_space<vmem>>, vector<1x1x4x32xf32>
    %32 = vector.shape_cast %31 : vector<1x1x4x32xf32> to vector<4x32xf32>
    %cst_38 = arith.constant dense<0.000000e+00> : vector<16x32xf32>
    %33 = tpu.matmul %26, %32, %cst_38 {dimension_numbers = #tpu.dot_dimension_numbers<[1], [0], [0], [1], [0, 0, 1, 1], [], []>} : vector<16x4xf32>, vector<4x32xf32>, vector<16x32xf32> -> vector<16x32xf32>
    %34 = arith.addf %21, %33 : vector<16x32xf32>
    %c2_39 = arith.constant 2 : index
    %c1_40 = arith.constant 1 : index
    %c0_41 = arith.constant 0 : index
    %c0_42 = arith.constant 0 : index
    %35 = vector.load %arg4[%c2_39, %c1_40, %c0_41, %c0_42] : memref<3x5x4x32xf32, #tpu.memory_space<vmem>>, vector<1x1x4x32xf32>
    %36 = vector.shape_cast %35 : vector<1x1x4x32xf32> to vector<4x32xf32>
    %cst_43 = arith.constant dense<0.000000e+00> : vector<16x32xf32>
    %37 = tpu.matmul %26, %36, %cst_43 {dimension_numbers = #tpu.dot_dimension_numbers<[1], [0], [0], [1], [0, 0, 1, 1], [], []>} : vector<16x4xf32>, vector<4x32xf32>, vector<16x32xf32> -> vector<16x32xf32>
    %38 = arith.addf %25, %37 : vector<16x32xf32>
    %cst_44 = arith.constant dense<0.000000e+00> : vector<16x4xf32>
    %39 = tpu.matmul %4, %26, %cst_44 {dimension_numbers = #tpu.dot_dimension_numbers<[1], [0], [0], [1], [0, 0, 1, 1], [], []>} : vector<16x16xf32>, vector<16x4xf32>, vector<16x4xf32> -> vector<16x4xf32>
    %cst_45 = arith.constant 2.000000e+00 : f32
    %40 = vector.broadcast %cst_45 : f32 to vector<16x4xf32>
    %41 = arith.mulf %40, %39 : vector<16x4xf32>
    %42 = arith.subf %41, %8 : vector<16x4xf32>
    %c0_46 = arith.constant 0 : index
    %c2_47 = arith.constant 2 : index
    %c0_48 = arith.constant 0 : index
    %c0_49 = arith.constant 0 : index
    %43 = vector.load %arg4[%c0_46, %c2_47, %c0_48, %c0_49] : memref<3x5x4x32xf32, #tpu.memory_space<vmem>>, vector<1x1x4x32xf32>
    %44 = vector.shape_cast %43 : vector<1x1x4x32xf32> to vector<4x32xf32>
    %cst_50 = arith.constant dense<0.000000e+00> : vector<16x32xf32>
    %45 = tpu.matmul %42, %44, %cst_50 {dimension_numbers = #tpu.dot_dimension_numbers<[1], [0], [0], [1], [0, 0, 1, 1], [], []>} : vector<16x4xf32>, vector<4x32xf32>, vector<16x32xf32> -> vector<16x32xf32>
    %46 = arith.addf %30, %45 : vector<16x32xf32>
    %c1_51 = arith.constant 1 : index
    %c2_52 = arith.constant 2 : index
    %c0_53 = arith.constant 0 : index
    %c0_54 = arith.constant 0 : index
    %47 = vector.load %arg4[%c1_51, %c2_52, %c0_53, %c0_54] : memref<3x5x4x32xf32, #tpu.memory_space<vmem>>, vector<1x1x4x32xf32>
    %48 = vector.shape_cast %47 : vector<1x1x4x32xf32> to vector<4x32xf32>
    %cst_55 = arith.constant dense<0.000000e+00> : vector<16x32xf32>
    %49 = tpu.matmul %42, %48, %cst_55 {dimension_numbers = #tpu.dot_dimension_numbers<[1], [0], [0], [1], [0, 0, 1, 1], [], []>} : vector<16x4xf32>, vector<4x32xf32>, vector<16x32xf32> -> vector<16x32xf32>
    %50 = arith.addf %34, %49 : vector<16x32xf32>
    %c2_56 = arith.constant 2 : index
    %c2_57 = arith.constant 2 : index
    %c0_58 = arith.constant 0 : index
    %c0_59 = arith.constant 0 : index
    %51 = vector.load %arg4[%c2_56, %c2_57, %c0_58, %c0_59] : memref<3x5x4x32xf32, #tpu.memory_space<vmem>>, vector<1x1x4x32xf32>
    %52 = vector.shape_cast %51 : vector<1x1x4x32xf32> to vector<4x32xf32>
    %cst_60 = arith.constant dense<0.000000e+00> : vector<16x32xf32>
    %53 = tpu.matmul %42, %52, %cst_60 {dimension_numbers = #tpu.dot_dimension_numbers<[1], [0], [0], [1], [0, 0, 1, 1], [], []>} : vector<16x4xf32>, vector<4x32xf32>, vector<16x32xf32> -> vector<16x32xf32>
    %54 = arith.addf %38, %53 : vector<16x32xf32>
    %cst_61 = arith.constant dense<0.000000e+00> : vector<16x4xf32>
    %55 = tpu.matmul %6, %8, %cst_61 {dimension_numbers = #tpu.dot_dimension_numbers<[1], [0], [0], [1], [0, 0, 1, 1], [], []>} : vector<16x16xf32>, vector<16x4xf32>, vector<16x4xf32> -> vector<16x4xf32>
    %c0_62 = arith.constant 0 : index
    %c3 = arith.constant 3 : index
    %c0_63 = arith.constant 0 : index
    %c0_64 = arith.constant 0 : index
    %56 = vector.load %arg4[%c0_62, %c3, %c0_63, %c0_64] : memref<3x5x4x32xf32, #tpu.memory_space<vmem>>, vector<1x1x4x32xf32>
    %57 = vector.shape_cast %56 : vector<1x1x4x32xf32> to vector<4x32xf32>
    %cst_65 = arith.constant dense<0.000000e+00> : vector<16x32xf32>
    %58 = tpu.matmul %55, %57, %cst_65 {dimension_numbers = #tpu.dot_dimension_numbers<[1], [0], [0], [1], [0, 0, 1, 1], [], []>} : vector<16x4xf32>, vector<4x32xf32>, vector<16x32xf32> -> vector<16x32xf32>
    %59 = arith.addf %46, %58 : vector<16x32xf32>
    %c1_66 = arith.constant 1 : index
    %c3_67 = arith.constant 3 : index
    %c0_68 = arith.constant 0 : index
    %c0_69 = arith.constant 0 : index
    %60 = vector.load %arg4[%c1_66, %c3_67, %c0_68, %c0_69] : memref<3x5x4x32xf32, #tpu.memory_space<vmem>>, vector<1x1x4x32xf32>
    %61 = vector.shape_cast %60 : vector<1x1x4x32xf32> to vector<4x32xf32>
    %cst_70 = arith.constant dense<0.000000e+00> : vector<16x32xf32>
    %62 = tpu.matmul %55, %61, %cst_70 {dimension_numbers = #tpu.dot_dimension_numbers<[1], [0], [0], [1], [0, 0, 1, 1], [], []>} : vector<16x4xf32>, vector<4x32xf32>, vector<16x32xf32> -> vector<16x32xf32>
    %63 = arith.addf %50, %62 : vector<16x32xf32>
    %c2_71 = arith.constant 2 : index
    %c3_72 = arith.constant 3 : index
    %c0_73 = arith.constant 0 : index
    %c0_74 = arith.constant 0 : index
    %64 = vector.load %arg4[%c2_71, %c3_72, %c0_73, %c0_74] : memref<3x5x4x32xf32, #tpu.memory_space<vmem>>, vector<1x1x4x32xf32>
    %65 = vector.shape_cast %64 : vector<1x1x4x32xf32> to vector<4x32xf32>
    %cst_75 = arith.constant dense<0.000000e+00> : vector<16x32xf32>
    %66 = tpu.matmul %55, %65, %cst_75 {dimension_numbers = #tpu.dot_dimension_numbers<[1], [0], [0], [1], [0, 0, 1, 1], [], []>} : vector<16x4xf32>, vector<4x32xf32>, vector<16x32xf32> -> vector<16x32xf32>
    %67 = arith.addf %54, %66 : vector<16x32xf32>
    %cst_76 = arith.constant dense<0.000000e+00> : vector<16x4xf32>
    %68 = tpu.matmul %6, %55, %cst_76 {dimension_numbers = #tpu.dot_dimension_numbers<[1], [0], [0], [1], [0, 0, 1, 1], [], []>} : vector<16x16xf32>, vector<16x4xf32>, vector<16x4xf32> -> vector<16x4xf32>
    %cst_77 = arith.constant 2.000000e+00 : f32
    %69 = vector.broadcast %cst_77 : f32 to vector<16x4xf32>
    %70 = arith.mulf %69, %68 : vector<16x4xf32>
    %71 = arith.subf %70, %8 : vector<16x4xf32>
    %c0_78 = arith.constant 0 : index
    %c4 = arith.constant 4 : index
    %c0_79 = arith.constant 0 : index
    %c0_80 = arith.constant 0 : index
    %72 = vector.load %arg4[%c0_78, %c4, %c0_79, %c0_80] : memref<3x5x4x32xf32, #tpu.memory_space<vmem>>, vector<1x1x4x32xf32>
    %73 = vector.shape_cast %72 : vector<1x1x4x32xf32> to vector<4x32xf32>
    %cst_81 = arith.constant dense<0.000000e+00> : vector<16x32xf32>
    %74 = tpu.matmul %71, %73, %cst_81 {dimension_numbers = #tpu.dot_dimension_numbers<[1], [0], [0], [1], [0, 0, 1, 1], [], []>} : vector<16x4xf32>, vector<4x32xf32>, vector<16x32xf32> -> vector<16x32xf32>
    %75 = arith.addf %59, %74 : vector<16x32xf32>
    %c1_82 = arith.constant 1 : index
    %c4_83 = arith.constant 4 : index
    %c0_84 = arith.constant 0 : index
    %c0_85 = arith.constant 0 : index
    %76 = vector.load %arg4[%c1_82, %c4_83, %c0_84, %c0_85] : memref<3x5x4x32xf32, #tpu.memory_space<vmem>>, vector<1x1x4x32xf32>
    %77 = vector.shape_cast %76 : vector<1x1x4x32xf32> to vector<4x32xf32>
    %cst_86 = arith.constant dense<0.000000e+00> : vector<16x32xf32>
    %78 = tpu.matmul %71, %77, %cst_86 {dimension_numbers = #tpu.dot_dimension_numbers<[1], [0], [0], [1], [0, 0, 1, 1], [], []>} : vector<16x4xf32>, vector<4x32xf32>, vector<16x32xf32> -> vector<16x32xf32>
    %79 = arith.addf %63, %78 : vector<16x32xf32>
    %c2_87 = arith.constant 2 : index
    %c4_88 = arith.constant 4 : index
    %c0_89 = arith.constant 0 : index
    %c0_90 = arith.constant 0 : index
    %80 = vector.load %arg4[%c2_87, %c4_88, %c0_89, %c0_90] : memref<3x5x4x32xf32, #tpu.memory_space<vmem>>, vector<1x1x4x32xf32>
    %81 = vector.shape_cast %80 : vector<1x1x4x32xf32> to vector<4x32xf32>
    %cst_91 = arith.constant dense<0.000000e+00> : vector<16x32xf32>
    %82 = tpu.matmul %71, %81, %cst_91 {dimension_numbers = #tpu.dot_dimension_numbers<[1], [0], [0], [1], [0, 0, 1, 1], [], []>} : vector<16x4xf32>, vector<4x32xf32>, vector<16x32xf32> -> vector<16x32xf32>
    %83 = arith.addf %67, %82 : vector<16x32xf32>
    %c0_92 = arith.constant 0 : index
    %c0_93 = arith.constant 0 : index
    %c0_94 = arith.constant 0 : index
    %c0_95 = arith.constant 0 : index
    %84 = vector.load %arg5[%c0_92, %c0_93, %c0_94, %c0_95] : memref<3x5x32x32xf32, #tpu.memory_space<vmem>>, vector<1x1x32x32xf32>
    %85 = vector.shape_cast %84 : vector<1x1x32x32xf32> to vector<32x32xf32>
    %cst_96 = arith.constant dense<0.000000e+00> : vector<16x32xf32>
    %86 = tpu.matmul %10, %85, %cst_96 {dimension_numbers = #tpu.dot_dimension_numbers<[1], [0], [0], [1], [0, 0, 1, 1], [], []>} : vector<16x32xf32>, vector<32x32xf32>, vector<16x32xf32> -> vector<16x32xf32>
    %87 = arith.addf %75, %86 : vector<16x32xf32>
    %c1_97 = arith.constant 1 : index
    %c0_98 = arith.constant 0 : index
    %c0_99 = arith.constant 0 : index
    %c0_100 = arith.constant 0 : index
    %88 = vector.load %arg5[%c1_97, %c0_98, %c0_99, %c0_100] : memref<3x5x32x32xf32, #tpu.memory_space<vmem>>, vector<1x1x32x32xf32>
    %89 = vector.shape_cast %88 : vector<1x1x32x32xf32> to vector<32x32xf32>
    %cst_101 = arith.constant dense<0.000000e+00> : vector<16x32xf32>
    %90 = tpu.matmul %10, %89, %cst_101 {dimension_numbers = #tpu.dot_dimension_numbers<[1], [0], [0], [1], [0, 0, 1, 1], [], []>} : vector<16x32xf32>, vector<32x32xf32>, vector<16x32xf32> -> vector<16x32xf32>
    %91 = arith.addf %79, %90 : vector<16x32xf32>
    %cst_102 = arith.constant dense<0.000000e+00> : vector<16x32xf32>
    %92 = tpu.matmul %4, %10, %cst_102 {dimension_numbers = #tpu.dot_dimension_numbers<[1], [0], [0], [1], [0, 0, 1, 1], [], []>} : vector<16x16xf32>, vector<16x32xf32>, vector<16x32xf32> -> vector<16x32xf32>
    %c0_103 = arith.constant 0 : index
    %c1_104 = arith.constant 1 : index
    %c0_105 = arith.constant 0 : index
    %c0_106 = arith.constant 0 : index
    %93 = vector.load %arg5[%c0_103, %c1_104, %c0_105, %c0_106] : memref<3x5x32x32xf32, #tpu.memory_space<vmem>>, vector<1x1x32x32xf32>
    %94 = vector.shape_cast %93 : vector<1x1x32x32xf32> to vector<32x32xf32>
    %cst_107 = arith.constant dense<0.000000e+00> : vector<16x32xf32>
    %95 = tpu.matmul %92, %94, %cst_107 {dimension_numbers = #tpu.dot_dimension_numbers<[1], [0], [0], [1], [0, 0, 1, 1], [], []>} : vector<16x32xf32>, vector<32x32xf32>, vector<16x32xf32> -> vector<16x32xf32>
    %96 = arith.addf %87, %95 : vector<16x32xf32>
    %c1_108 = arith.constant 1 : index
    %c1_109 = arith.constant 1 : index
    %c0_110 = arith.constant 0 : index
    %c0_111 = arith.constant 0 : index
    %97 = vector.load %arg5[%c1_108, %c1_109, %c0_110, %c0_111] : memref<3x5x32x32xf32, #tpu.memory_space<vmem>>, vector<1x1x32x32xf32>
    %98 = vector.shape_cast %97 : vector<1x1x32x32xf32> to vector<32x32xf32>
    %cst_112 = arith.constant dense<0.000000e+00> : vector<16x32xf32>
    %99 = tpu.matmul %92, %98, %cst_112 {dimension_numbers = #tpu.dot_dimension_numbers<[1], [0], [0], [1], [0, 0, 1, 1], [], []>} : vector<16x32xf32>, vector<32x32xf32>, vector<16x32xf32> -> vector<16x32xf32>
    %100 = arith.addf %91, %99 : vector<16x32xf32>
    %cst_113 = arith.constant dense<0.000000e+00> : vector<16x32xf32>
    %101 = tpu.matmul %4, %92, %cst_113 {dimension_numbers = #tpu.dot_dimension_numbers<[1], [0], [0], [1], [0, 0, 1, 1], [], []>} : vector<16x16xf32>, vector<16x32xf32>, vector<16x32xf32> -> vector<16x32xf32>
    %cst_114 = arith.constant 2.000000e+00 : f32
    %102 = vector.broadcast %cst_114 : f32 to vector<16x32xf32>
    %103 = arith.mulf %102, %101 : vector<16x32xf32>
    %104 = arith.subf %103, %10 : vector<16x32xf32>
    %c0_115 = arith.constant 0 : index
    %c2_116 = arith.constant 2 : index
    %c0_117 = arith.constant 0 : index
    %c0_118 = arith.constant 0 : index
    %105 = vector.load %arg5[%c0_115, %c2_116, %c0_117, %c0_118] : memref<3x5x32x32xf32, #tpu.memory_space<vmem>>, vector<1x1x32x32xf32>
    %106 = vector.shape_cast %105 : vector<1x1x32x32xf32> to vector<32x32xf32>
    %cst_119 = arith.constant dense<0.000000e+00> : vector<16x32xf32>
    %107 = tpu.matmul %104, %106, %cst_119 {dimension_numbers = #tpu.dot_dimension_numbers<[1], [0], [0], [1], [0, 0, 1, 1], [], []>} : vector<16x32xf32>, vector<32x32xf32>, vector<16x32xf32> -> vector<16x32xf32>
    %108 = arith.addf %96, %107 : vector<16x32xf32>
    %c1_120 = arith.constant 1 : index
    %c2_121 = arith.constant 2 : index
    %c0_122 = arith.constant 0 : index
    %c0_123 = arith.constant 0 : index
    %109 = vector.load %arg5[%c1_120, %c2_121, %c0_122, %c0_123] : memref<3x5x32x32xf32, #tpu.memory_space<vmem>>, vector<1x1x32x32xf32>
    %110 = vector.shape_cast %109 : vector<1x1x32x32xf32> to vector<32x32xf32>
    %cst_124 = arith.constant dense<0.000000e+00> : vector<16x32xf32>
    %111 = tpu.matmul %104, %110, %cst_124 {dimension_numbers = #tpu.dot_dimension_numbers<[1], [0], [0], [1], [0, 0, 1, 1], [], []>} : vector<16x32xf32>, vector<32x32xf32>, vector<16x32xf32> -> vector<16x32xf32>
    %112 = arith.addf %100, %111 : vector<16x32xf32>
    %cst_125 = arith.constant dense<0.000000e+00> : vector<16x32xf32>
    %113 = tpu.matmul %6, %10, %cst_125 {dimension_numbers = #tpu.dot_dimension_numbers<[1], [0], [0], [1], [0, 0, 1, 1], [], []>} : vector<16x16xf32>, vector<16x32xf32>, vector<16x32xf32> -> vector<16x32xf32>
    %c0_126 = arith.constant 0 : index
    %c3_127 = arith.constant 3 : index
    %c0_128 = arith.constant 0 : index
    %c0_129 = arith.constant 0 : index
    %114 = vector.load %arg5[%c0_126, %c3_127, %c0_128, %c0_129] : memref<3x5x32x32xf32, #tpu.memory_space<vmem>>, vector<1x1x32x32xf32>
    %115 = vector.shape_cast %114 : vector<1x1x32x32xf32> to vector<32x32xf32>
    %cst_130 = arith.constant dense<0.000000e+00> : vector<16x32xf32>
    %116 = tpu.matmul %113, %115, %cst_130 {dimension_numbers = #tpu.dot_dimension_numbers<[1], [0], [0], [1], [0, 0, 1, 1], [], []>} : vector<16x32xf32>, vector<32x32xf32>, vector<16x32xf32> -> vector<16x32xf32>
    %117 = arith.addf %108, %116 : vector<16x32xf32>
    %c1_131 = arith.constant 1 : index
    %c3_132 = arith.constant 3 : index
    %c0_133 = arith.constant 0 : index
    %c0_134 = arith.constant 0 : index
    %118 = vector.load %arg5[%c1_131, %c3_132, %c0_133, %c0_134] : memref<3x5x32x32xf32, #tpu.memory_space<vmem>>, vector<1x1x32x32xf32>
    %119 = vector.shape_cast %118 : vector<1x1x32x32xf32> to vector<32x32xf32>
    %cst_135 = arith.constant dense<0.000000e+00> : vector<16x32xf32>
    %120 = tpu.matmul %113, %119, %cst_135 {dimension_numbers = #tpu.dot_dimension_numbers<[1], [0], [0], [1], [0, 0, 1, 1], [], []>} : vector<16x32xf32>, vector<32x32xf32>, vector<16x32xf32> -> vector<16x32xf32>
    %121 = arith.addf %112, %120 : vector<16x32xf32>
    %cst_136 = arith.constant dense<0.000000e+00> : vector<16x32xf32>
    %122 = tpu.matmul %6, %113, %cst_136 {dimension_numbers = #tpu.dot_dimension_numbers<[1], [0], [0], [1], [0, 0, 1, 1], [], []>} : vector<16x16xf32>, vector<16x32xf32>, vector<16x32xf32> -> vector<16x32xf32>
    %cst_137 = arith.constant 2.000000e+00 : f32
    %123 = vector.broadcast %cst_137 : f32 to vector<16x32xf32>
    %124 = arith.mulf %123, %122 : vector<16x32xf32>
    %125 = arith.subf %124, %10 : vector<16x32xf32>
    %c0_138 = arith.constant 0 : index
    %c4_139 = arith.constant 4 : index
    %c0_140 = arith.constant 0 : index
    %c0_141 = arith.constant 0 : index
    %126 = vector.load %arg5[%c0_138, %c4_139, %c0_140, %c0_141] : memref<3x5x32x32xf32, #tpu.memory_space<vmem>>, vector<1x1x32x32xf32>
    %127 = vector.shape_cast %126 : vector<1x1x32x32xf32> to vector<32x32xf32>
    %cst_142 = arith.constant dense<0.000000e+00> : vector<16x32xf32>
    %128 = tpu.matmul %125, %127, %cst_142 {dimension_numbers = #tpu.dot_dimension_numbers<[1], [0], [0], [1], [0, 0, 1, 1], [], []>} : vector<16x32xf32>, vector<32x32xf32>, vector<16x32xf32> -> vector<16x32xf32>
    %129 = arith.addf %117, %128 : vector<16x32xf32>
    %c1_143 = arith.constant 1 : index
    %c4_144 = arith.constant 4 : index
    %c0_145 = arith.constant 0 : index
    %c0_146 = arith.constant 0 : index
    %130 = vector.load %arg5[%c1_143, %c4_144, %c0_145, %c0_146] : memref<3x5x32x32xf32, #tpu.memory_space<vmem>>, vector<1x1x32x32xf32>
    %131 = vector.shape_cast %130 : vector<1x1x32x32xf32> to vector<32x32xf32>
    %cst_147 = arith.constant dense<0.000000e+00> : vector<16x32xf32>
    %132 = tpu.matmul %125, %131, %cst_147 {dimension_numbers = #tpu.dot_dimension_numbers<[1], [0], [0], [1], [0, 0, 1, 1], [], []>} : vector<16x32xf32>, vector<32x32xf32>, vector<16x32xf32> -> vector<16x32xf32>
    %133 = arith.addf %121, %132 : vector<16x32xf32>
    %c0_148 = arith.constant 0 : index
    %c0_149 = arith.constant 0 : index
    %c0_150 = arith.constant 0 : index
    %134 = vector.load %arg6[%c0_148, %c0_149, %c0_150] : memref<3x1x32xf32, #tpu.memory_space<vmem>>, vector<1x1x32xf32>
    %135 = vector.shape_cast %134 : vector<1x1x32xf32> to vector<1x32xf32>
    %136 = vector.broadcast %135 : vector<1x32xf32> to vector<16x32xf32>
    %137 = arith.addf %129, %136 : vector<16x32xf32>
    %138 = arith.negf %137 : vector<16x32xf32>
    %139 = math.exp %138 : vector<16x32xf32>
    %cst_151 = arith.constant 1.000000e+00 : f32
    %140 = vector.broadcast %cst_151 : f32 to vector<16x32xf32>
    %141 = arith.addf %140, %139 : vector<16x32xf32>
    %142 = arith.divf %140, %141 : vector<16x32xf32>
    %c1_152 = arith.constant 1 : index
    %c0_153 = arith.constant 0 : index
    %c0_154 = arith.constant 0 : index
    %143 = vector.load %arg6[%c1_152, %c0_153, %c0_154] : memref<3x1x32xf32, #tpu.memory_space<vmem>>, vector<1x1x32xf32>
    %144 = vector.shape_cast %143 : vector<1x1x32xf32> to vector<1x32xf32>
    %145 = vector.broadcast %144 : vector<1x32xf32> to vector<16x32xf32>
    %146 = arith.addf %133, %145 : vector<16x32xf32>
    %147 = arith.negf %146 : vector<16x32xf32>
    %148 = math.exp %147 : vector<16x32xf32>
    %cst_155 = arith.constant 1.000000e+00 : f32
    %149 = vector.broadcast %cst_155 : f32 to vector<16x32xf32>
    %150 = arith.addf %149, %148 : vector<16x32xf32>
    %151 = arith.divf %149, %150 : vector<16x32xf32>
    %152 = arith.mulf %142, %10 : vector<16x32xf32>
    %c2_156 = arith.constant 2 : index
    %c0_157 = arith.constant 0 : index
    %c0_158 = arith.constant 0 : index
    %c0_159 = arith.constant 0 : index
    %153 = vector.load %arg5[%c2_156, %c0_157, %c0_158, %c0_159] : memref<3x5x32x32xf32, #tpu.memory_space<vmem>>, vector<1x1x32x32xf32>
    %154 = vector.shape_cast %153 : vector<1x1x32x32xf32> to vector<32x32xf32>
    %cst_160 = arith.constant dense<0.000000e+00> : vector<16x32xf32>
    %155 = tpu.matmul %152, %154, %cst_160 {dimension_numbers = #tpu.dot_dimension_numbers<[1], [0], [0], [1], [0, 0, 1, 1], [], []>} : vector<16x32xf32>, vector<32x32xf32>, vector<16x32xf32> -> vector<16x32xf32>
    %156 = arith.addf %83, %155 : vector<16x32xf32>
    %cst_161 = arith.constant dense<0.000000e+00> : vector<16x32xf32>
    %157 = tpu.matmul %4, %152, %cst_161 {dimension_numbers = #tpu.dot_dimension_numbers<[1], [0], [0], [1], [0, 0, 1, 1], [], []>} : vector<16x16xf32>, vector<16x32xf32>, vector<16x32xf32> -> vector<16x32xf32>
    %c2_162 = arith.constant 2 : index
    %c1_163 = arith.constant 1 : index
    %c0_164 = arith.constant 0 : index
    %c0_165 = arith.constant 0 : index
    %158 = vector.load %arg5[%c2_162, %c1_163, %c0_164, %c0_165] : memref<3x5x32x32xf32, #tpu.memory_space<vmem>>, vector<1x1x32x32xf32>
    %159 = vector.shape_cast %158 : vector<1x1x32x32xf32> to vector<32x32xf32>
    %cst_166 = arith.constant dense<0.000000e+00> : vector<16x32xf32>
    %160 = tpu.matmul %157, %159, %cst_166 {dimension_numbers = #tpu.dot_dimension_numbers<[1], [0], [0], [1], [0, 0, 1, 1], [], []>} : vector<16x32xf32>, vector<32x32xf32>, vector<16x32xf32> -> vector<16x32xf32>
    %161 = arith.addf %156, %160 : vector<16x32xf32>
    %cst_167 = arith.constant dense<0.000000e+00> : vector<16x32xf32>
    %162 = tpu.matmul %4, %157, %cst_167 {dimension_numbers = #tpu.dot_dimension_numbers<[1], [0], [0], [1], [0, 0, 1, 1], [], []>} : vector<16x16xf32>, vector<16x32xf32>, vector<16x32xf32> -> vector<16x32xf32>
    %cst_168 = arith.constant 2.000000e+00 : f32
    %163 = vector.broadcast %cst_168 : f32 to vector<16x32xf32>
    %164 = arith.mulf %163, %162 : vector<16x32xf32>
    %165 = arith.subf %164, %152 : vector<16x32xf32>
    %c2_169 = arith.constant 2 : index
    %c2_170 = arith.constant 2 : index
    %c0_171 = arith.constant 0 : index
    %c0_172 = arith.constant 0 : index
    %166 = vector.load %arg5[%c2_169, %c2_170, %c0_171, %c0_172] : memref<3x5x32x32xf32, #tpu.memory_space<vmem>>, vector<1x1x32x32xf32>
    %167 = vector.shape_cast %166 : vector<1x1x32x32xf32> to vector<32x32xf32>
    %cst_173 = arith.constant dense<0.000000e+00> : vector<16x32xf32>
    %168 = tpu.matmul %165, %167, %cst_173 {dimension_numbers = #tpu.dot_dimension_numbers<[1], [0], [0], [1], [0, 0, 1, 1], [], []>} : vector<16x32xf32>, vector<32x32xf32>, vector<16x32xf32> -> vector<16x32xf32>
    %169 = arith.addf %161, %168 : vector<16x32xf32>
    %cst_174 = arith.constant dense<0.000000e+00> : vector<16x32xf32>
    %170 = tpu.matmul %6, %152, %cst_174 {dimension_numbers = #tpu.dot_dimension_numbers<[1], [0], [0], [1], [0, 0, 1, 1], [], []>} : vector<16x16xf32>, vector<16x32xf32>, vector<16x32xf32> -> vector<16x32xf32>
    %c2_175 = arith.constant 2 : index
    %c3_176 = arith.constant 3 : index
    %c0_177 = arith.constant 0 : index
    %c0_178 = arith.constant 0 : index
    %171 = vector.load %arg5[%c2_175, %c3_176, %c0_177, %c0_178] : memref<3x5x32x32xf32, #tpu.memory_space<vmem>>, vector<1x1x32x32xf32>
    %172 = vector.shape_cast %171 : vector<1x1x32x32xf32> to vector<32x32xf32>
    %cst_179 = arith.constant dense<0.000000e+00> : vector<16x32xf32>
    %173 = tpu.matmul %170, %172, %cst_179 {dimension_numbers = #tpu.dot_dimension_numbers<[1], [0], [0], [1], [0, 0, 1, 1], [], []>} : vector<16x32xf32>, vector<32x32xf32>, vector<16x32xf32> -> vector<16x32xf32>
    %174 = arith.addf %169, %173 : vector<16x32xf32>
    %cst_180 = arith.constant dense<0.000000e+00> : vector<16x32xf32>
    %175 = tpu.matmul %6, %170, %cst_180 {dimension_numbers = #tpu.dot_dimension_numbers<[1], [0], [0], [1], [0, 0, 1, 1], [], []>} : vector<16x16xf32>, vector<16x32xf32>, vector<16x32xf32> -> vector<16x32xf32>
    %cst_181 = arith.constant 2.000000e+00 : f32
    %176 = vector.broadcast %cst_181 : f32 to vector<16x32xf32>
    %177 = arith.mulf %176, %175 : vector<16x32xf32>
    %178 = arith.subf %177, %152 : vector<16x32xf32>
    %c2_182 = arith.constant 2 : index
    %c4_183 = arith.constant 4 : index
    %c0_184 = arith.constant 0 : index
    %c0_185 = arith.constant 0 : index
    %179 = vector.load %arg5[%c2_182, %c4_183, %c0_184, %c0_185] : memref<3x5x32x32xf32, #tpu.memory_space<vmem>>, vector<1x1x32x32xf32>
    %180 = vector.shape_cast %179 : vector<1x1x32x32xf32> to vector<32x32xf32>
    %cst_186 = arith.constant dense<0.000000e+00> : vector<16x32xf32>
    %181 = tpu.matmul %178, %180, %cst_186 {dimension_numbers = #tpu.dot_dimension_numbers<[1], [0], [0], [1], [0, 0, 1, 1], [], []>} : vector<16x32xf32>, vector<32x32xf32>, vector<16x32xf32> -> vector<16x32xf32>
    %182 = arith.addf %174, %181 : vector<16x32xf32>
    %c2_187 = arith.constant 2 : index
    %c0_188 = arith.constant 0 : index
    %c0_189 = arith.constant 0 : index
    %183 = vector.load %arg6[%c2_187, %c0_188, %c0_189] : memref<3x1x32xf32, #tpu.memory_space<vmem>>, vector<1x1x32xf32>
    %184 = vector.shape_cast %183 : vector<1x1x32xf32> to vector<1x32xf32>
    %185 = vector.broadcast %184 : vector<1x32xf32> to vector<16x32xf32>
    %186 = arith.addf %182, %185 : vector<16x32xf32>
    %187 = math.tanh %186 : vector<16x32xf32>
    %188 = arith.mulf %151, %10 : vector<16x32xf32>
    %cst_190 = arith.constant 1.000000e+00 : f32
    %189 = vector.broadcast %cst_190 : f32 to vector<16x32xf32>
    %190 = arith.subf %189, %151 : vector<16x32xf32>
    %191 = arith.mulf %190, %187 : vector<16x32xf32>
    %192 = arith.addf %188, %191 : vector<16x32xf32>
    %c0_191 = arith.constant 0 : index
    %c0_192 = arith.constant 0 : index
    %c0_193 = arith.constant 0 : index
    %193 = vector.load %arg13[%c0_191, %c0_192, %c0_193] : memref<2x16x32xf32, #tpu.memory_space<vmem>>, vector<1x16x32xf32>
    %194 = vector.shape_cast %193 : vector<1x16x32xf32> to vector<16x32xf32>
    %195 = vector.shape_cast %192 : vector<16x32xf32> to vector<1x16x32xf32>
    tpu.vector_store %arg13[%c0_191, %c0_192, %c0_193], %195 {strides = array<i32>} : memref<2x16x32xf32, #tpu.memory_space<vmem>>, vector<1x16x32xf32>,
    %c1_194 = arith.constant 1 : index
    %c0_195 = arith.constant 0 : index
    %c0_196 = arith.constant 0 : index
    %196 = vector.load %arg13[%c1_194, %c0_195, %c0_196] : memref<2x16x32xf32, #tpu.memory_space<vmem>>, vector<1x16x32xf32>
    %197 = vector.shape_cast %196 : vector<1x16x32xf32> to vector<16x32xf32>
    %cst_197 = arith.constant 0.000000e+00 : f32
    %198 = vector.broadcast %cst_197 : f32 to vector<16x32xf32>
    %cst_198 = arith.constant 0.000000e+00 : f32
    %199 = vector.broadcast %cst_198 : f32 to vector<16x32xf32>
    %cst_199 = arith.constant 0.000000e+00 : f32
    %200 = vector.broadcast %cst_199 : f32 to vector<16x32xf32>
    %c0_200 = arith.constant 0 : index
    %c0_201 = arith.constant 0 : index
    %c0_202 = arith.constant 0 : index
    %c0_203 = arith.constant 0 : index
    %201 = vector.load %arg7[%c0_200, %c0_201, %c0_202, %c0_203] : memref<3x5x32x32xf32, #tpu.memory_space<vmem>>, vector<1x1x32x32xf32>
    %202 = vector.shape_cast %201 : vector<1x1x32x32xf32> to vector<32x32xf32>
    %cst_204 = arith.constant dense<0.000000e+00> : vector<16x32xf32>
    %203 = tpu.matmul %192, %202, %cst_204 {dimension_numbers = #tpu.dot_dimension_numbers<[1], [0], [0], [1], [0, 0, 1, 1], [], []>} : vector<16x32xf32>, vector<32x32xf32>, vector<16x32xf32> -> vector<16x32xf32>
    %204 = arith.addf %198, %203 : vector<16x32xf32>
    %c1_205 = arith.constant 1 : index
    %c0_206 = arith.constant 0 : index
    %c0_207 = arith.constant 0 : index
    %c0_208 = arith.constant 0 : index
    %205 = vector.load %arg7[%c1_205, %c0_206, %c0_207, %c0_208] : memref<3x5x32x32xf32, #tpu.memory_space<vmem>>, vector<1x1x32x32xf32>
    %206 = vector.shape_cast %205 : vector<1x1x32x32xf32> to vector<32x32xf32>
    %cst_209 = arith.constant dense<0.000000e+00> : vector<16x32xf32>
    %207 = tpu.matmul %192, %206, %cst_209 {dimension_numbers = #tpu.dot_dimension_numbers<[1], [0], [0], [1], [0, 0, 1, 1], [], []>} : vector<16x32xf32>, vector<32x32xf32>, vector<16x32xf32> -> vector<16x32xf32>
    %208 = arith.addf %199, %207 : vector<16x32xf32>
    %c2_210 = arith.constant 2 : index
    %c0_211 = arith.constant 0 : index
    %c0_212 = arith.constant 0 : index
    %c0_213 = arith.constant 0 : index
    %209 = vector.load %arg7[%c2_210, %c0_211, %c0_212, %c0_213] : memref<3x5x32x32xf32, #tpu.memory_space<vmem>>, vector<1x1x32x32xf32>
    %210 = vector.shape_cast %209 : vector<1x1x32x32xf32> to vector<32x32xf32>
    %cst_214 = arith.constant dense<0.000000e+00> : vector<16x32xf32>
    %211 = tpu.matmul %192, %210, %cst_214 {dimension_numbers = #tpu.dot_dimension_numbers<[1], [0], [0], [1], [0, 0, 1, 1], [], []>} : vector<16x32xf32>, vector<32x32xf32>, vector<16x32xf32> -> vector<16x32xf32>
    %212 = arith.addf %200, %211 : vector<16x32xf32>
    %cst_215 = arith.constant dense<0.000000e+00> : vector<16x32xf32>
    %213 = tpu.matmul %4, %192, %cst_215 {dimension_numbers = #tpu.dot_dimension_numbers<[1], [0], [0], [1], [0, 0, 1, 1], [], []>} : vector<16x16xf32>, vector<16x32xf32>, vector<16x32xf32> -> vector<16x32xf32>
    %c0_216 = arith.constant 0 : index
    %c1_217 = arith.constant 1 : index
    %c0_218 = arith.constant 0 : index
    %c0_219 = arith.constant 0 : index
    %214 = vector.load %arg7[%c0_216, %c1_217, %c0_218, %c0_219] : memref<3x5x32x32xf32, #tpu.memory_space<vmem>>, vector<1x1x32x32xf32>
    %215 = vector.shape_cast %214 : vector<1x1x32x32xf32> to vector<32x32xf32>
    %cst_220 = arith.constant dense<0.000000e+00> : vector<16x32xf32>
    %216 = tpu.matmul %213, %215, %cst_220 {dimension_numbers = #tpu.dot_dimension_numbers<[1], [0], [0], [1], [0, 0, 1, 1], [], []>} : vector<16x32xf32>, vector<32x32xf32>, vector<16x32xf32> -> vector<16x32xf32>
    %217 = arith.addf %204, %216 : vector<16x32xf32>
    %c1_221 = arith.constant 1 : index
    %c1_222 = arith.constant 1 : index
    %c0_223 = arith.constant 0 : index
    %c0_224 = arith.constant 0 : index
    %218 = vector.load %arg7[%c1_221, %c1_222, %c0_223, %c0_224] : memref<3x5x32x32xf32, #tpu.memory_space<vmem>>, vector<1x1x32x32xf32>
    %219 = vector.shape_cast %218 : vector<1x1x32x32xf32> to vector<32x32xf32>
    %cst_225 = arith.constant dense<0.000000e+00> : vector<16x32xf32>
    %220 = tpu.matmul %213, %219, %cst_225 {dimension_numbers = #tpu.dot_dimension_numbers<[1], [0], [0], [1], [0, 0, 1, 1], [], []>} : vector<16x32xf32>, vector<32x32xf32>, vector<16x32xf32> -> vector<16x32xf32>
    %221 = arith.addf %208, %220 : vector<16x32xf32>
    %c2_226 = arith.constant 2 : index
    %c1_227 = arith.constant 1 : index
    %c0_228 = arith.constant 0 : index
    %c0_229 = arith.constant 0 : index
    %222 = vector.load %arg7[%c2_226, %c1_227, %c0_228, %c0_229] : memref<3x5x32x32xf32, #tpu.memory_space<vmem>>, vector<1x1x32x32xf32>
    %223 = vector.shape_cast %222 : vector<1x1x32x32xf32> to vector<32x32xf32>
    %cst_230 = arith.constant dense<0.000000e+00> : vector<16x32xf32>
    %224 = tpu.matmul %213, %223, %cst_230 {dimension_numbers = #tpu.dot_dimension_numbers<[1], [0], [0], [1], [0, 0, 1, 1], [], []>} : vector<16x32xf32>, vector<32x32xf32>, vector<16x32xf32> -> vector<16x32xf32>
    %225 = arith.addf %212, %224 : vector<16x32xf32>
    %cst_231 = arith.constant dense<0.000000e+00> : vector<16x32xf32>
    %226 = tpu.matmul %4, %213, %cst_231 {dimension_numbers = #tpu.dot_dimension_numbers<[1], [0], [0], [1], [0, 0, 1, 1], [], []>} : vector<16x16xf32>, vector<16x32xf32>, vector<16x32xf32> -> vector<16x32xf32>
    %cst_232 = arith.constant 2.000000e+00 : f32
    %227 = vector.broadcast %cst_232 : f32 to vector<16x32xf32>
    %228 = arith.mulf %227, %226 : vector<16x32xf32>
    %229 = arith.subf %228, %192 : vector<16x32xf32>
    %c0_233 = arith.constant 0 : index
    %c2_234 = arith.constant 2 : index
    %c0_235 = arith.constant 0 : index
    %c0_236 = arith.constant 0 : index
    %230 = vector.load %arg7[%c0_233, %c2_234, %c0_235, %c0_236] : memref<3x5x32x32xf32, #tpu.memory_space<vmem>>, vector<1x1x32x32xf32>
    %231 = vector.shape_cast %230 : vector<1x1x32x32xf32> to vector<32x32xf32>
    %cst_237 = arith.constant dense<0.000000e+00> : vector<16x32xf32>
    %232 = tpu.matmul %229, %231, %cst_237 {dimension_numbers = #tpu.dot_dimension_numbers<[1], [0], [0], [1], [0, 0, 1, 1], [], []>} : vector<16x32xf32>, vector<32x32xf32>, vector<16x32xf32> -> vector<16x32xf32>
    %233 = arith.addf %217, %232 : vector<16x32xf32>
    %c1_238 = arith.constant 1 : index
    %c2_239 = arith.constant 2 : index
    %c0_240 = arith.constant 0 : index
    %c0_241 = arith.constant 0 : index
    %234 = vector.load %arg7[%c1_238, %c2_239, %c0_240, %c0_241] : memref<3x5x32x32xf32, #tpu.memory_space<vmem>>, vector<1x1x32x32xf32>
    %235 = vector.shape_cast %234 : vector<1x1x32x32xf32> to vector<32x32xf32>
    %cst_242 = arith.constant dense<0.000000e+00> : vector<16x32xf32>
    %236 = tpu.matmul %229, %235, %cst_242 {dimension_numbers = #tpu.dot_dimension_numbers<[1], [0], [0], [1], [0, 0, 1, 1], [], []>} : vector<16x32xf32>, vector<32x32xf32>, vector<16x32xf32> -> vector<16x32xf32>
    %237 = arith.addf %221, %236 : vector<16x32xf32>
    %c2_243 = arith.constant 2 : index
    %c2_244 = arith.constant 2 : index
    %c0_245 = arith.constant 0 : index
    %c0_246 = arith.constant 0 : index
    %238 = vector.load %arg7[%c2_243, %c2_244, %c0_245, %c0_246] : memref<3x5x32x32xf32, #tpu.memory_space<vmem>>, vector<1x1x32x32xf32>
    %239 = vector.shape_cast %238 : vector<1x1x32x32xf32> to vector<32x32xf32>
    %cst_247 = arith.constant dense<0.000000e+00> : vector<16x32xf32>
    %240 = tpu.matmul %229, %239, %cst_247 {dimension_numbers = #tpu.dot_dimension_numbers<[1], [0], [0], [1], [0, 0, 1, 1], [], []>} : vector<16x32xf32>, vector<32x32xf32>, vector<16x32xf32> -> vector<16x32xf32>
    %241 = arith.addf %225, %240 : vector<16x32xf32>
    %cst_248 = arith.constant dense<0.000000e+00> : vector<16x32xf32>
    %242 = tpu.matmul %6, %192, %cst_248 {dimension_numbers = #tpu.dot_dimension_numbers<[1], [0], [0], [1], [0, 0, 1, 1], [], []>} : vector<16x16xf32>, vector<16x32xf32>, vector<16x32xf32> -> vector<16x32xf32>
    %c0_249 = arith.constant 0 : index
    %c3_250 = arith.constant 3 : index
    %c0_251 = arith.constant 0 : index
    %c0_252 = arith.constant 0 : index
    %243 = vector.load %arg7[%c0_249, %c3_250, %c0_251, %c0_252] : memref<3x5x32x32xf32, #tpu.memory_space<vmem>>, vector<1x1x32x32xf32>
    %244 = vector.shape_cast %243 : vector<1x1x32x32xf32> to vector<32x32xf32>
    %cst_253 = arith.constant dense<0.000000e+00> : vector<16x32xf32>
    %245 = tpu.matmul %242, %244, %cst_253 {dimension_numbers = #tpu.dot_dimension_numbers<[1], [0], [0], [1], [0, 0, 1, 1], [], []>} : vector<16x32xf32>, vector<32x32xf32>, vector<16x32xf32> -> vector<16x32xf32>
    %246 = arith.addf %233, %245 : vector<16x32xf32>
    %c1_254 = arith.constant 1 : index
    %c3_255 = arith.constant 3 : index
    %c0_256 = arith.constant 0 : index
    %c0_257 = arith.constant 0 : index
    %247 = vector.load %arg7[%c1_254, %c3_255, %c0_256, %c0_257] : memref<3x5x32x32xf32, #tpu.memory_space<vmem>>, vector<1x1x32x32xf32>
    %248 = vector.shape_cast %247 : vector<1x1x32x32xf32> to vector<32x32xf32>
    %cst_258 = arith.constant dense<0.000000e+00> : vector<16x32xf32>
    %249 = tpu.matmul %242, %248, %cst_258 {dimension_numbers = #tpu.dot_dimension_numbers<[1], [0], [0], [1], [0, 0, 1, 1], [], []>} : vector<16x32xf32>, vector<32x32xf32>, vector<16x32xf32> -> vector<16x32xf32>
    %250 = arith.addf %237, %249 : vector<16x32xf32>
    %c2_259 = arith.constant 2 : index
    %c3_260 = arith.constant 3 : index
    %c0_261 = arith.constant 0 : index
    %c0_262 = arith.constant 0 : index
    %251 = vector.load %arg7[%c2_259, %c3_260, %c0_261, %c0_262] : memref<3x5x32x32xf32, #tpu.memory_space<vmem>>, vector<1x1x32x32xf32>
    %252 = vector.shape_cast %251 : vector<1x1x32x32xf32> to vector<32x32xf32>
    %cst_263 = arith.constant dense<0.000000e+00> : vector<16x32xf32>
    %253 = tpu.matmul %242, %252, %cst_263 {dimension_numbers = #tpu.dot_dimension_numbers<[1], [0], [0], [1], [0, 0, 1, 1], [], []>} : vector<16x32xf32>, vector<32x32xf32>, vector<16x32xf32> -> vector<16x32xf32>
    %254 = arith.addf %241, %253 : vector<16x32xf32>
    %cst_264 = arith.constant dense<0.000000e+00> : vector<16x32xf32>
    %255 = tpu.matmul %6, %242, %cst_264 {dimension_numbers = #tpu.dot_dimension_numbers<[1], [0], [0], [1], [0, 0, 1, 1], [], []>} : vector<16x16xf32>, vector<16x32xf32>, vector<16x32xf32> -> vector<16x32xf32>
    %cst_265 = arith.constant 2.000000e+00 : f32
    %256 = vector.broadcast %cst_265 : f32 to vector<16x32xf32>
    %257 = arith.mulf %256, %255 : vector<16x32xf32>
    %258 = arith.subf %257, %192 : vector<16x32xf32>
    %c0_266 = arith.constant 0 : index
    %c4_267 = arith.constant 4 : index
    %c0_268 = arith.constant 0 : index
    %c0_269 = arith.constant 0 : index
    %259 = vector.load %arg7[%c0_266, %c4_267, %c0_268, %c0_269] : memref<3x5x32x32xf32, #tpu.memory_space<vmem>>, vector<1x1x32x32xf32>
    %260 = vector.shape_cast %259 : vector<1x1x32x32xf32> to vector<32x32xf32>
    %cst_270 = arith.constant dense<0.000000e+00> : vector<16x32xf32>
    %261 = tpu.matmul %258, %260, %cst_270 {dimension_numbers = #tpu.dot_dimension_numbers<[1], [0], [0], [1], [0, 0, 1, 1], [], []>} : vector<16x32xf32>, vector<32x32xf32>, vector<16x32xf32> -> vector<16x32xf32>
    %262 = arith.addf %246, %261 : vector<16x32xf32>
    %c1_271 = arith.constant 1 : index
    %c4_272 = arith.constant 4 : index
    %c0_273 = arith.constant 0 : index
    %c0_274 = arith.constant 0 : index
    %263 = vector.load %arg7[%c1_271, %c4_272, %c0_273, %c0_274] : memref<3x5x32x32xf32, #tpu.memory_space<vmem>>, vector<1x1x32x32xf32>
    %264 = vector.shape_cast %263 : vector<1x1x32x32xf32> to vector<32x32xf32>
    %cst_275 = arith.constant dense<0.000000e+00> : vector<16x32xf32>
    %265 = tpu.matmul %258, %264, %cst_275 {dimension_numbers = #tpu.dot_dimension_numbers<[1], [0], [0], [1], [0, 0, 1, 1], [], []>} : vector<16x32xf32>, vector<32x32xf32>, vector<16x32xf32> -> vector<16x32xf32>
    %266 = arith.addf %250, %265 : vector<16x32xf32>
    %c2_276 = arith.constant 2 : index
    %c4_277 = arith.constant 4 : index
    %c0_278 = arith.constant 0 : index
    %c0_279 = arith.constant 0 : index
    %267 = vector.load %arg7[%c2_276, %c4_277, %c0_278, %c0_279] : memref<3x5x32x32xf32, #tpu.memory_space<vmem>>, vector<1x1x32x32xf32>
    %268 = vector.shape_cast %267 : vector<1x1x32x32xf32> to vector<32x32xf32>
    %cst_280 = arith.constant dense<0.000000e+00> : vector<16x32xf32>
    %269 = tpu.matmul %258, %268, %cst_280 {dimension_numbers = #tpu.dot_dimension_numbers<[1], [0], [0], [1], [0, 0, 1, 1], [], []>} : vector<16x32xf32>, vector<32x32xf32>, vector<16x32xf32> -> vector<16x32xf32>
    %270 = arith.addf %254, %269 : vector<16x32xf32>
    %c0_281 = arith.constant 0 : index
    %c0_282 = arith.constant 0 : index
    %c0_283 = arith.constant 0 : index
    %c0_284 = arith.constant 0 : index
    %271 = vector.load %arg8[%c0_281, %c0_282, %c0_283, %c0_284] : memref<3x5x32x32xf32, #tpu.memory_space<vmem>>, vector<1x1x32x32xf32>
    %272 = vector.shape_cast %271 : vector<1x1x32x32xf32> to vector<32x32xf32>
    %cst_285 = arith.constant dense<0.000000e+00> : vector<16x32xf32>
    %273 = tpu.matmul %197, %272, %cst_285 {dimension_numbers = #tpu.dot_dimension_numbers<[1], [0], [0], [1], [0, 0, 1, 1], [], []>} : vector<16x32xf32>, vector<32x32xf32>, vector<16x32xf32> -> vector<16x32xf32>
    %274 = arith.addf %262, %273 : vector<16x32xf32>
    %c1_286 = arith.constant 1 : index
    %c0_287 = arith.constant 0 : index
    %c0_288 = arith.constant 0 : index
    %c0_289 = arith.constant 0 : index
    %275 = vector.load %arg8[%c1_286, %c0_287, %c0_288, %c0_289] : memref<3x5x32x32xf32, #tpu.memory_space<vmem>>, vector<1x1x32x32xf32>
    %276 = vector.shape_cast %275 : vector<1x1x32x32xf32> to vector<32x32xf32>
    %cst_290 = arith.constant dense<0.000000e+00> : vector<16x32xf32>
    %277 = tpu.matmul %197, %276, %cst_290 {dimension_numbers = #tpu.dot_dimension_numbers<[1], [0], [0], [1], [0, 0, 1, 1], [], []>} : vector<16x32xf32>, vector<32x32xf32>, vector<16x32xf32> -> vector<16x32xf32>
    %278 = arith.addf %266, %277 : vector<16x32xf32>
    %cst_291 = arith.constant dense<0.000000e+00> : vector<16x32xf32>
    %279 = tpu.matmul %4, %197, %cst_291 {dimension_numbers = #tpu.dot_dimension_numbers<[1], [0], [0], [1], [0, 0, 1, 1], [], []>} : vector<16x16xf32>, vector<16x32xf32>, vector<16x32xf32> -> vector<16x32xf32>
    %c0_292 = arith.constant 0 : index
    %c1_293 = arith.constant 1 : index
    %c0_294 = arith.constant 0 : index
    %c0_295 = arith.constant 0 : index
    %280 = vector.load %arg8[%c0_292, %c1_293, %c0_294, %c0_295] : memref<3x5x32x32xf32, #tpu.memory_space<vmem>>, vector<1x1x32x32xf32>
    %281 = vector.shape_cast %280 : vector<1x1x32x32xf32> to vector<32x32xf32>
    %cst_296 = arith.constant dense<0.000000e+00> : vector<16x32xf32>
    %282 = tpu.matmul %279, %281, %cst_296 {dimension_numbers = #tpu.dot_dimension_numbers<[1], [0], [0], [1], [0, 0, 1, 1], [], []>} : vector<16x32xf32>, vector<32x32xf32>, vector<16x32xf32> -> vector<16x32xf32>
    %283 = arith.addf %274, %282 : vector<16x32xf32>
    %c1_297 = arith.constant 1 : index
    %c1_298 = arith.constant 1 : index
    %c0_299 = arith.constant 0 : index
    %c0_300 = arith.constant 0 : index
    %284 = vector.load %arg8[%c1_297, %c1_298, %c0_299, %c0_300] : memref<3x5x32x32xf32, #tpu.memory_space<vmem>>, vector<1x1x32x32xf32>
    %285 = vector.shape_cast %284 : vector<1x1x32x32xf32> to vector<32x32xf32>
    %cst_301 = arith.constant dense<0.000000e+00> : vector<16x32xf32>
    %286 = tpu.matmul %279, %285, %cst_301 {dimension_numbers = #tpu.dot_dimension_numbers<[1], [0], [0], [1], [0, 0, 1, 1], [], []>} : vector<16x32xf32>, vector<32x32xf32>, vector<16x32xf32> -> vector<16x32xf32>
    %287 = arith.addf %278, %286 : vector<16x32xf32>
    %cst_302 = arith.constant dense<0.000000e+00> : vector<16x32xf32>
    %288 = tpu.matmul %4, %279, %cst_302 {dimension_numbers = #tpu.dot_dimension_numbers<[1], [0], [0], [1], [0, 0, 1, 1], [], []>} : vector<16x16xf32>, vector<16x32xf32>, vector<16x32xf32> -> vector<16x32xf32>
    %cst_303 = arith.constant 2.000000e+00 : f32
    %289 = vector.broadcast %cst_303 : f32 to vector<16x32xf32>
    %290 = arith.mulf %289, %288 : vector<16x32xf32>
    %291 = arith.subf %290, %197 : vector<16x32xf32>
    %c0_304 = arith.constant 0 : index
    %c2_305 = arith.constant 2 : index
    %c0_306 = arith.constant 0 : index
    %c0_307 = arith.constant 0 : index
    %292 = vector.load %arg8[%c0_304, %c2_305, %c0_306, %c0_307] : memref<3x5x32x32xf32, #tpu.memory_space<vmem>>, vector<1x1x32x32xf32>
    %293 = vector.shape_cast %292 : vector<1x1x32x32xf32> to vector<32x32xf32>
    %cst_308 = arith.constant dense<0.000000e+00> : vector<16x32xf32>
    %294 = tpu.matmul %291, %293, %cst_308 {dimension_numbers = #tpu.dot_dimension_numbers<[1], [0], [0], [1], [0, 0, 1, 1], [], []>} : vector<16x32xf32>, vector<32x32xf32>, vector<16x32xf32> -> vector<16x32xf32>
    %295 = arith.addf %283, %294 : vector<16x32xf32>
    %c1_309 = arith.constant 1 : index
    %c2_310 = arith.constant 2 : index
    %c0_311 = arith.constant 0 : index
    %c0_312 = arith.constant 0 : index
    %296 = vector.load %arg8[%c1_309, %c2_310, %c0_311, %c0_312] : memref<3x5x32x32xf32, #tpu.memory_space<vmem>>, vector<1x1x32x32xf32>
    %297 = vector.shape_cast %296 : vector<1x1x32x32xf32> to vector<32x32xf32>
    %cst_313 = arith.constant dense<0.000000e+00> : vector<16x32xf32>
    %298 = tpu.matmul %291, %297, %cst_313 {dimension_numbers = #tpu.dot_dimension_numbers<[1], [0], [0], [1], [0, 0, 1, 1], [], []>} : vector<16x32xf32>, vector<32x32xf32>, vector<16x32xf32> -> vector<16x32xf32>
    %299 = arith.addf %287, %298 : vector<16x32xf32>
    %cst_314 = arith.constant dense<0.000000e+00> : vector<16x32xf32>
    %300 = tpu.matmul %6, %197, %cst_314 {dimension_numbers = #tpu.dot_dimension_numbers<[1], [0], [0], [1], [0, 0, 1, 1], [], []>} : vector<16x16xf32>, vector<16x32xf32>, vector<16x32xf32> -> vector<16x32xf32>
    %c0_315 = arith.constant 0 : index
    %c3_316 = arith.constant 3 : index
    %c0_317 = arith.constant 0 : index
    %c0_318 = arith.constant 0 : index
    %301 = vector.load %arg8[%c0_315, %c3_316, %c0_317, %c0_318] : memref<3x5x32x32xf32, #tpu.memory_space<vmem>>, vector<1x1x32x32xf32>
    %302 = vector.shape_cast %301 : vector<1x1x32x32xf32> to vector<32x32xf32>
    %cst_319 = arith.constant dense<0.000000e+00> : vector<16x32xf32>
    %303 = tpu.matmul %300, %302, %cst_319 {dimension_numbers = #tpu.dot_dimension_numbers<[1], [0], [0], [1], [0, 0, 1, 1], [], []>} : vector<16x32xf32>, vector<32x32xf32>, vector<16x32xf32> -> vector<16x32xf32>
    %304 = arith.addf %295, %303 : vector<16x32xf32>
    %c1_320 = arith.constant 1 : index
    %c3_321 = arith.constant 3 : index
    %c0_322 = arith.constant 0 : index
    %c0_323 = arith.constant 0 : index
    %305 = vector.load %arg8[%c1_320, %c3_321, %c0_322, %c0_323] : memref<3x5x32x32xf32, #tpu.memory_space<vmem>>, vector<1x1x32x32xf32>
    %306 = vector.shape_cast %305 : vector<1x1x32x32xf32> to vector<32x32xf32>
    %cst_324 = arith.constant dense<0.000000e+00> : vector<16x32xf32>
    %307 = tpu.matmul %300, %306, %cst_324 {dimension_numbers = #tpu.dot_dimension_numbers<[1], [0], [0], [1], [0, 0, 1, 1], [], []>} : vector<16x32xf32>, vector<32x32xf32>, vector<16x32xf32> -> vector<16x32xf32>
    %308 = arith.addf %299, %307 : vector<16x32xf32>
    %cst_325 = arith.constant dense<0.000000e+00> : vector<16x32xf32>
    %309 = tpu.matmul %6, %300, %cst_325 {dimension_numbers = #tpu.dot_dimension_numbers<[1], [0], [0], [1], [0, 0, 1, 1], [], []>} : vector<16x16xf32>, vector<16x32xf32>, vector<16x32xf32> -> vector<16x32xf32>
    %cst_326 = arith.constant 2.000000e+00 : f32
    %310 = vector.broadcast %cst_326 : f32 to vector<16x32xf32>
    %311 = arith.mulf %310, %309 : vector<16x32xf32>
    %312 = arith.subf %311, %197 : vector<16x32xf32>
    %c0_327 = arith.constant 0 : index
    %c4_328 = arith.constant 4 : index
    %c0_329 = arith.constant 0 : index
    %c0_330 = arith.constant 0 : index
    %313 = vector.load %arg8[%c0_327, %c4_328, %c0_329, %c0_330] : memref<3x5x32x32xf32, #tpu.memory_space<vmem>>, vector<1x1x32x32xf32>
    %314 = vector.shape_cast %313 : vector<1x1x32x32xf32> to vector<32x32xf32>
    %cst_331 = arith.constant dense<0.000000e+00> : vector<16x32xf32>
    %315 = tpu.matmul %312, %314, %cst_331 {dimension_numbers = #tpu.dot_dimension_numbers<[1], [0], [0], [1], [0, 0, 1, 1], [], []>} : vector<16x32xf32>, vector<32x32xf32>, vector<16x32xf32> -> vector<16x32xf32>
    %316 = arith.addf %304, %315 : vector<16x32xf32>
    %c1_332 = arith.constant 1 : index
    %c4_333 = arith.constant 4 : index
    %c0_334 = arith.constant 0 : index
    %c0_335 = arith.constant 0 : index
    %317 = vector.load %arg8[%c1_332, %c4_333, %c0_334, %c0_335] : memref<3x5x32x32xf32, #tpu.memory_space<vmem>>, vector<1x1x32x32xf32>
    %318 = vector.shape_cast %317 : vector<1x1x32x32xf32> to vector<32x32xf32>
    %cst_336 = arith.constant dense<0.000000e+00> : vector<16x32xf32>
    %319 = tpu.matmul %312, %318, %cst_336 {dimension_numbers = #tpu.dot_dimension_numbers<[1], [0], [0], [1], [0, 0, 1, 1], [], []>} : vector<16x32xf32>, vector<32x32xf32>, vector<16x32xf32> -> vector<16x32xf32>
    %320 = arith.addf %308, %319 : vector<16x32xf32>
    %c0_337 = arith.constant 0 : index
    %c0_338 = arith.constant 0 : index
    %c0_339 = arith.constant 0 : index
    %321 = vector.load %arg9[%c0_337, %c0_338, %c0_339] : memref<3x1x32xf32, #tpu.memory_space<vmem>>, vector<1x1x32xf32>
    %322 = vector.shape_cast %321 : vector<1x1x32xf32> to vector<1x32xf32>
    %323 = vector.broadcast %322 : vector<1x32xf32> to vector<16x32xf32>
    %324 = arith.addf %316, %323 : vector<16x32xf32>
    %325 = arith.negf %324 : vector<16x32xf32>
    %326 = math.exp %325 : vector<16x32xf32>
    %cst_340 = arith.constant 1.000000e+00 : f32
    %327 = vector.broadcast %cst_340 : f32 to vector<16x32xf32>
    %328 = arith.addf %327, %326 : vector<16x32xf32>
    %329 = arith.divf %327, %328 : vector<16x32xf32>
    %c1_341 = arith.constant 1 : index
    %c0_342 = arith.constant 0 : index
    %c0_343 = arith.constant 0 : index
    %330 = vector.load %arg9[%c1_341, %c0_342, %c0_343] : memref<3x1x32xf32, #tpu.memory_space<vmem>>, vector<1x1x32xf32>
    %331 = vector.shape_cast %330 : vector<1x1x32xf32> to vector<1x32xf32>
    %332 = vector.broadcast %331 : vector<1x32xf32> to vector<16x32xf32>
    %333 = arith.addf %320, %332 : vector<16x32xf32>
    %334 = arith.negf %333 : vector<16x32xf32>
    %335 = math.exp %334 : vector<16x32xf32>
    %cst_344 = arith.constant 1.000000e+00 : f32
    %336 = vector.broadcast %cst_344 : f32 to vector<16x32xf32>
    %337 = arith.addf %336, %335 : vector<16x32xf32>
    %338 = arith.divf %336, %337 : vector<16x32xf32>
    %339 = arith.mulf %329, %197 : vector<16x32xf32>
    %c2_345 = arith.constant 2 : index
    %c0_346 = arith.constant 0 : index
    %c0_347 = arith.constant 0 : index
    %c0_348 = arith.constant 0 : index
    %340 = vector.load %arg8[%c2_345, %c0_346, %c0_347, %c0_348] : memref<3x5x32x32xf32, #tpu.memory_space<vmem>>, vector<1x1x32x32xf32>
    %341 = vector.shape_cast %340 : vector<1x1x32x32xf32> to vector<32x32xf32>
    %cst_349 = arith.constant dense<0.000000e+00> : vector<16x32xf32>
    %342 = tpu.matmul %339, %341, %cst_349 {dimension_numbers = #tpu.dot_dimension_numbers<[1], [0], [0], [1], [0, 0, 1, 1], [], []>} : vector<16x32xf32>, vector<32x32xf32>, vector<16x32xf32> -> vector<16x32xf32>
    %343 = arith.addf %270, %342 : vector<16x32xf32>
    %cst_350 = arith.constant dense<0.000000e+00> : vector<16x32xf32>
    %344 = tpu.matmul %4, %339, %cst_350 {dimension_numbers = #tpu.dot_dimension_numbers<[1], [0], [0], [1], [0, 0, 1, 1], [], []>} : vector<16x16xf32>, vector<16x32xf32>, vector<16x32xf32> -> vector<16x32xf32>
    %c2_351 = arith.constant 2 : index
    %c1_352 = arith.constant 1 : index
    %c0_353 = arith.constant 0 : index
    %c0_354 = arith.constant 0 : index
    %345 = vector.load %arg8[%c2_351, %c1_352, %c0_353, %c0_354] : memref<3x5x32x32xf32, #tpu.memory_space<vmem>>, vector<1x1x32x32xf32>
    %346 = vector.shape_cast %345 : vector<1x1x32x32xf32> to vector<32x32xf32>
    %cst_355 = arith.constant dense<0.000000e+00> : vector<16x32xf32>
    %347 = tpu.matmul %344, %346, %cst_355 {dimension_numbers = #tpu.dot_dimension_numbers<[1], [0], [0], [1], [0, 0, 1, 1], [], []>} : vector<16x32xf32>, vector<32x32xf32>, vector<16x32xf32> -> vector<16x32xf32>
    %348 = arith.addf %343, %347 : vector<16x32xf32>
    %cst_356 = arith.constant dense<0.000000e+00> : vector<16x32xf32>
    %349 = tpu.matmul %4, %344, %cst_356 {dimension_numbers = #tpu.dot_dimension_numbers<[1], [0], [0], [1], [0, 0, 1, 1], [], []>} : vector<16x16xf32>, vector<16x32xf32>, vector<16x32xf32> -> vector<16x32xf32>
    %cst_357 = arith.constant 2.000000e+00 : f32
    %350 = vector.broadcast %cst_357 : f32 to vector<16x32xf32>
    %351 = arith.mulf %350, %349 : vector<16x32xf32>
    %352 = arith.subf %351, %339 : vector<16x32xf32>
    %c2_358 = arith.constant 2 : index
    %c2_359 = arith.constant 2 : index
    %c0_360 = arith.constant 0 : index
    %c0_361 = arith.constant 0 : index
    %353 = vector.load %arg8[%c2_358, %c2_359, %c0_360, %c0_361] : memref<3x5x32x32xf32, #tpu.memory_space<vmem>>, vector<1x1x32x32xf32>
    %354 = vector.shape_cast %353 : vector<1x1x32x32xf32> to vector<32x32xf32>
    %cst_362 = arith.constant dense<0.000000e+00> : vector<16x32xf32>
    %355 = tpu.matmul %352, %354, %cst_362 {dimension_numbers = #tpu.dot_dimension_numbers<[1], [0], [0], [1], [0, 0, 1, 1], [], []>} : vector<16x32xf32>, vector<32x32xf32>, vector<16x32xf32> -> vector<16x32xf32>
    %356 = arith.addf %348, %355 : vector<16x32xf32>
    %cst_363 = arith.constant dense<0.000000e+00> : vector<16x32xf32>
    %357 = tpu.matmul %6, %339, %cst_363 {dimension_numbers = #tpu.dot_dimension_numbers<[1], [0], [0], [1], [0, 0, 1, 1], [], []>} : vector<16x16xf32>, vector<16x32xf32>, vector<16x32xf32> -> vector<16x32xf32>
    %c2_364 = arith.constant 2 : index
    %c3_365 = arith.constant 3 : index
    %c0_366 = arith.constant 0 : index
    %c0_367 = arith.constant 0 : index
    %358 = vector.load %arg8[%c2_364, %c3_365, %c0_366, %c0_367] : memref<3x5x32x32xf32, #tpu.memory_space<vmem>>, vector<1x1x32x32xf32>
    %359 = vector.shape_cast %358 : vector<1x1x32x32xf32> to vector<32x32xf32>
    %cst_368 = arith.constant dense<0.000000e+00> : vector<16x32xf32>
    %360 = tpu.matmul %357, %359, %cst_368 {dimension_numbers = #tpu.dot_dimension_numbers<[1], [0], [0], [1], [0, 0, 1, 1], [], []>} : vector<16x32xf32>, vector<32x32xf32>, vector<16x32xf32> -> vector<16x32xf32>
    %361 = arith.addf %356, %360 : vector<16x32xf32>
    %cst_369 = arith.constant dense<0.000000e+00> : vector<16x32xf32>
    %362 = tpu.matmul %6, %357, %cst_369 {dimension_numbers = #tpu.dot_dimension_numbers<[1], [0], [0], [1], [0, 0, 1, 1], [], []>} : vector<16x16xf32>, vector<16x32xf32>, vector<16x32xf32> -> vector<16x32xf32>
    %cst_370 = arith.constant 2.000000e+00 : f32
    %363 = vector.broadcast %cst_370 : f32 to vector<16x32xf32>
    %364 = arith.mulf %363, %362 : vector<16x32xf32>
    %365 = arith.subf %364, %339 : vector<16x32xf32>
    %c2_371 = arith.constant 2 : index
    %c4_372 = arith.constant 4 : index
    %c0_373 = arith.constant 0 : index
    %c0_374 = arith.constant 0 : index
    %366 = vector.load %arg8[%c2_371, %c4_372, %c0_373, %c0_374] : memref<3x5x32x32xf32, #tpu.memory_space<vmem>>, vector<1x1x32x32xf32>
    %367 = vector.shape_cast %366 : vector<1x1x32x32xf32> to vector<32x32xf32>
    %cst_375 = arith.constant dense<0.000000e+00> : vector<16x32xf32>
    %368 = tpu.matmul %365, %367, %cst_375 {dimension_numbers = #tpu.dot_dimension_numbers<[1], [0], [0], [1], [0, 0, 1, 1], [], []>} : vector<16x32xf32>, vector<32x32xf32>, vector<16x32xf32> -> vector<16x32xf32>
    %369 = arith.addf %361, %368 : vector<16x32xf32>
    %c2_376 = arith.constant 2 : index
    %c0_377 = arith.constant 0 : index
    %c0_378 = arith.constant 0 : index
    %370 = vector.load %arg9[%c2_376, %c0_377, %c0_378] : memref<3x1x32xf32, #tpu.memory_space<vmem>>, vector<1x1x32xf32>
    %371 = vector.shape_cast %370 : vector<1x1x32xf32> to vector<1x32xf32>
    %372 = vector.broadcast %371 : vector<1x32xf32> to vector<16x32xf32>
    %373 = arith.addf %369, %372 : vector<16x32xf32>
    %374 = math.tanh %373 : vector<16x32xf32>
    %375 = arith.mulf %338, %197 : vector<16x32xf32>
    %cst_379 = arith.constant 1.000000e+00 : f32
    %376 = vector.broadcast %cst_379 : f32 to vector<16x32xf32>
    %377 = arith.subf %376, %338 : vector<16x32xf32>
    %378 = arith.mulf %377, %374 : vector<16x32xf32>
    %379 = arith.addf %375, %378 : vector<16x32xf32>
    %c1_380 = arith.constant 1 : index
    %c0_381 = arith.constant 0 : index
    %c0_382 = arith.constant 0 : index
    %380 = vector.load %arg13[%c1_380, %c0_381, %c0_382] : memref<2x16x32xf32, #tpu.memory_space<vmem>>, vector<1x16x32xf32>
    %381 = vector.shape_cast %380 : vector<1x16x32xf32> to vector<16x32xf32>
    %382 = vector.shape_cast %379 : vector<16x32xf32> to vector<1x16x32xf32>
    tpu.vector_store %arg13[%c1_380, %c0_381, %c0_382], %382 {strides = array<i32>} : memref<2x16x32xf32, #tpu.memory_space<vmem>>, vector<1x16x32xf32>,
    %c7_i32 = arith.constant 7 : i32
    %383 = arith.cmpi eq, %arg1, %c7_i32 : i32
    %384 = arith.extui %383 : i1 to i32
    %c0_i32_383 = arith.constant 0 : i32
    %385 = arith.cmpi ne, %384, %c0_i32_383 : i32
    scf.if %385 {
      %c0_384 = arith.constant 0 : index
      %c0_385 = arith.constant 0 : index
      %386 = vector.load %arg10[%c0_384, %c0_385] : memref<32x128xf32, #tpu.memory_space<vmem>>, vector<32x128xf32>
      %cst_386 = arith.constant dense<0.000000e+00> : vector<16x128xf32>
      %387 = tpu.matmul %379, %386, %cst_386 {dimension_numbers = #tpu.dot_dimension_numbers<[1], [0], [0], [1], [0, 0, 1, 1], [], []>} : vector<16x32xf32>, vector<32x128xf32>, vector<16x128xf32> -> vector<16x128xf32>
      %c0_387 = arith.constant 0 : index
      %c0_388 = arith.constant 0 : index
      %388 = vector.load %arg11[%c0_387, %c0_388] : memref<1x128xf32, #tpu.memory_space<vmem>>, vector<1x128xf32>
      %389 = vector.broadcast %388 : vector<1x128xf32> to vector<16x128xf32>
      %390 = arith.addf %387, %389 : vector<16x128xf32>
      %cst_389 = arith.constant dense<0xFF800000> : vector<128xf32>
      %391 = vector.multi_reduction <maximumf>, %390, %cst_389 [0] : vector<16x128xf32> to vector<128xf32>
      %392 = vector.shape_cast %391 : vector<128xf32> to vector<1x128xf32>
      %393 = vector.shape_cast %392 : vector<1x128xf32> to vector<1x128xf32>
      %394 = vector.broadcast %393 : vector<1x128xf32> to vector<8x128xf32>
      %c0_390 = arith.constant 0 : index
      %c0_391 = arith.constant 0 : index
      %c0_392 = arith.constant 0 : index
      %395 = vector.load %arg12[%c0_390, %c0_391, %c0_392] : memref<1x8x128xf32, #tpu.memory_space<vmem>>, vector<1x8x128xf32>
      %396 = vector.shape_cast %395 : vector<1x8x128xf32> to vector<8x128xf32>
      %397 = vector.shape_cast %394 : vector<8x128xf32> to vector<1x8x128xf32>
      tpu.vector_store %arg12[%c0_390, %c0_391, %c0_392], %397 {strides = array<i32>} : memref<1x8x128xf32, #tpu.memory_space<vmem>>, vector<1x8x128xf32>,
    } else {
    }
    return
  }
  func.func @transform_0(%arg0: i32, %arg1: i32) -> (i32, i32, i32, i32) {
    %c0_i32 = arith.constant 0 : i32
    %c0_i32_0 = arith.constant 0 : i32
    %c0_i32_1 = arith.constant 0 : i32
    return %arg0, %arg1, %c0_i32, %c0_i32_0 : i32, i32, i32, i32
  }
  func.func @transform_1(%arg0: i32, %arg1: i32) -> (i32, i32, i32) {
    %c0_i32 = arith.constant 0 : i32
    %c0_i32_0 = arith.constant 0 : i32
    %c0_i32_1 = arith.constant 0 : i32
    %c0_i32_2 = arith.constant 0 : i32
    return %c0_i32, %c0_i32_0, %c0_i32_1 : i32, i32, i32
  }
  func.func @transform_2(%arg0: i32, %arg1: i32) -> (i32, i32, i32, i32) {
    %c0_i32 = arith.constant 0 : i32
    %c0_i32_0 = arith.constant 0 : i32
    %c0_i32_1 = arith.constant 0 : i32
    %c0_i32_2 = arith.constant 0 : i32
    %c0_i32_3 = arith.constant 0 : i32
    return %c0_i32, %c0_i32_0, %c0_i32_1, %c0_i32_2 : i32, i32, i32, i32
  }
  func.func @transform_3(%arg0: i32, %arg1: i32) -> (i32, i32, i32, i32) {
    %c0_i32 = arith.constant 0 : i32
    %c0_i32_0 = arith.constant 0 : i32
    %c0_i32_1 = arith.constant 0 : i32
    %c0_i32_2 = arith.constant 0 : i32
    %c0_i32_3 = arith.constant 0 : i32
    return %c0_i32, %c0_i32_0, %c0_i32_1, %c0_i32_2 : i32, i32, i32, i32
  }
  func.func @transform_4(%arg0: i32, %arg1: i32) -> (i32, i32, i32) {
    %c0_i32 = arith.constant 0 : i32
    %c0_i32_0 = arith.constant 0 : i32
    %c0_i32_1 = arith.constant 0 : i32
    %c0_i32_2 = arith.constant 0 : i32
    return %c0_i32, %c0_i32_0, %c0_i32_1 : i32, i32, i32
  }
  func.func @transform_5(%arg0: i32, %arg1: i32) -> (i32, i32, i32, i32) {
    %c0_i32 = arith.constant 0 : i32
    %c0_i32_0 = arith.constant 0 : i32
    %c0_i32_1 = arith.constant 0 : i32
    %c0_i32_2 = arith.constant 0 : i32
    %c0_i32_3 = arith.constant 0 : i32
    return %c0_i32, %c0_i32_0, %c0_i32_1, %c0_i32_2 : i32, i32, i32, i32
  }
  func.func @transform_6(%arg0: i32, %arg1: i32) -> (i32, i32, i32, i32) {
    %c0_i32 = arith.constant 0 : i32
    %c0_i32_0 = arith.constant 0 : i32
    %c0_i32_1 = arith.constant 0 : i32
    %c0_i32_2 = arith.constant 0 : i32
    %c0_i32_3 = arith.constant 0 : i32
    return %c0_i32, %c0_i32_0, %c0_i32_1, %c0_i32_2 : i32, i32, i32, i32
  }
  func.func @transform_7(%arg0: i32, %arg1: i32) -> (i32, i32, i32) {
    %c0_i32 = arith.constant 0 : i32
    %c0_i32_0 = arith.constant 0 : i32
    %c0_i32_1 = arith.constant 0 : i32
    %c0_i32_2 = arith.constant 0 : i32
    return %c0_i32, %c0_i32_0, %c0_i32_1 : i32, i32, i32
  }
  func.func @transform_8(%arg0: i32, %arg1: i32) -> (i32, i32) {
    %c0_i32 = arith.constant 0 : i32
    %c0_i32_0 = arith.constant 0 : i32
    %c0_i32_1 = arith.constant 0 : i32
    return %c0_i32, %c0_i32_0 : i32, i32
  }
  func.func @transform_9(%arg0: i32, %arg1: i32) -> (i32, i32) {
    %c0_i32 = arith.constant 0 : i32
    %c0_i32_0 = arith.constant 0 : i32
    %c0_i32_1 = arith.constant 0 : i32
    return %c0_i32, %c0_i32_0 : i32, i32
  }
  func.func @transform_10(%arg0: i32, %arg1: i32) -> (i32, i32, i32) {
    %c0_i32 = arith.constant 0 : i32
    %c0_i32_0 = arith.constant 0 : i32
    %c0_i32_1 = arith.constant 0 : i32
    return %arg0, %c0_i32, %c0_i32_0 : i32, i32, i32
  }
}

</mosaic_0001>

<bundles_post_ra>
// kernel: tpu_custom_call.1
= control target key start
LH: loop header
LB: loop body
LE: loop exit
PB: predicated region body
PF: predicated region fallthrough
CT: control target
= control target key end

     0   :  { %s4868_s0 = inlined_call_operand.vmem [shape: f32[2,8,16,4], index: 0, kind: input, shape index: {}]   ;;  %s4869_s1 = inlined_call_operand.vmem [shape: f32[2,16,16], index: 1, kind: input, shape index: {}]   ;;  %s4870_s2 = inlined_call_operand.vmem [shape: f32[3,5,4,32], index: 2, kind: input, shape index: {}]   ;;  %s4871_s3 = inlined_call_operand.hbm [shape: f32[3,5,32,32], index: 3, kind: input, shape index: {}]   ;;  %s4872_s4 = inlined_call_operand.vmem [shape: f32[3,1,32], index: 4, kind: input, shape index: {}]   ;;  %s4873_s5 = inlined_call_operand.hbm [shape: f32[3,5,32,32], index: 5, kind: input, shape index: {}]   ;;  %s4874_s6 = inlined_call_operand.hbm [shape: f32[3,5,32,32], index: 6, kind: input, shape index: {}]   ;;  %s4875_s7 = inlined_call_operand.vmem [shape: f32[3,1,32], index: 7, kind: input, shape index: {}]   ;;  %s4876_s8 = inlined_call_operand.vmem [shape: f32[32,128], index: 8, kind: input, shape index: {}]   ;;  %s4877_s9 = inlined_call_operand.vmem [shape: f32[1,128], index: 9, kind: input, shape index: {}]   ;;  %s4878_s10 = inlined_call_operand.hbm [shape: f32[2,8,128], index: 10, kind: output, shape index: {}]  }
   0x1   :  { %4887 = sst [smem:[#allocation22_spill]] %s4873_s5 }
   0x2   :  { %15 = vsyncpa [#allocation4], 0 }
   0x3   :  { %16 = vsyncpa [#allocation7], 0 }
   0x4   :  { %17 = vsyncpa [#allocation5], 0 }
   0x5   :  { %19 = vsyncpa [#allocation5 + $0x1], 0  ;;  %s4067_s13 = smov 0   ;;  %s4069_s14 = smov 0  }
   0x6   :  { %s4071_s15 = smov 0   ;;  %s4073_s16 = smov 0  }
   0x7   :  { %s4075_s17 = smov 0   ;;  %s4077_s18 = smov 0  }
   0x8   :  { %s4079_s19 = smov 0   ;;  %s4081_s20 = smov 0  }
   0x9 LB: > { %4888 = sst [smem:[#allocation13_spill]] %s3976_s13  ;;  %s3418_s21 = sadd.s32 4294967295, %s4004_s20   ;;  %s4004_s20 = sphi %s4081_s20, %s25_s20   ;;  %s4000_s19 = sphi %s4079_s19, %s4911_s19   ;;  %s3996_s18 = sphi %s4077_s18, %s4910_s18   ;;  %s3992_s17 = sphi %s4075_s17, %s4909_s17   ;;  %s3988_s16 = sphi %s4073_s16, %s4908_s16   ;;  %s3984_s15 = sphi %s4071_s15, %s4907_s15   ;;  %s3980_s14 = sphi %s4069_s14, %s4913_s14   ;;  %s3976_s13 = sphi %s4067_s13, %s4912_s13  }
   0xa   : > { %4889 = sst [smem:[#allocation14_spill]] %s3984_s15  ;;  %s3419_s22 = sadd.s32 4294967294, %s4004_s20  }
   0xb   : > { %4890 = sst [smem:[#allocation15_spill]] %s3996_s18  ;;  %s34_s23 = sadd.s32 1, %s3996_s18 }
   0xc   : > { %4891 = sst [smem:[#allocation16_spill]] %s4000_s19  ;;  %s37_s24 = sadd.s32 1, %s4000_s19 }
   0xd   : > { %4892 = sst [smem:[#allocation17_spill]] %s4004_s20  ;;  %p35_p0 = scmp.ge.s32.totalorder %s34_s23, 8 }
   0xe   : > { %s261_s25 = sadd.s32 1, %s3984_s15  ;;  %p271_p1 = scmp.ne.s32.totalorder %s3984_s15, %s3980_s14 }
   0xf   : > { %p272_p2 = scmp.eq.s32.totalorder %s3418_s21, 15  ;;  %s4915_s23 = smov (%p35_p0, %s34_s23), 0 }
  0x10   : > { %4893 = sst [smem:[#allocation18_spill]] %s4915_s23  ;;  %s4917_s24 = smov (!%p35_p0, %s37_s24), %s4000_s19 }
  0x11   : > { %p4117_p3 = por %p272_p2, %p271_p1  ;;  %p277_p4 = scmp.ne.s32.totalorder %s3980_s14, %s3976_s13 }
  0x12   : > { %p39_p5 = scmp.ge.s32.totalorder %s4917_s24, 2  ;;  %p278_p6 = scmp.eq.s32.totalorder %s3419_s22, 15 }
  0x13   : > { %p3420_p7 = scmp.ge.s32.totalorder %s4004_s20, 1  ;;  %p285_p8 = scmp.lt.s32.totalorder %s4004_s20, 17 }
  0x14   : > { %s4919_s24 = smov (%p39_p5, %s4917_s24), 0  ;;  %p4127_p9 = por %p278_p6, %p277_p4 }
  0x15   : > { %4895 = sst [smem:[#allocation19_spill]] %s4919_s24  ;;  %p4131_p10 = pnand %p3420_p7, %p285_p8 }
  0x16   : > { %s4896_s27 = scalar_select %p4127_p9, 1, 0 }
  0x17   : > { %s258_s29 = ssub.s32 %s4000_s19, %s4919_s24  ;;  %p3670_p12 = pneg %p4131_p10 }
  0x18   : > { %4897 = sst [smem:[#allocation20_spill]] %s4896_s27  ;;  %p259_p11 = scmp.eq.s32.totalorder %s258_s29, 0 }
  0x19   : > { %p4139_p13 = scmp.eq.s32.totalorder %s3418_s21, 0  ;;  %s4902_s5 = sld [smem:[#allocation22_spill]] }
  0x1a   : > { %s4144_s11 = scalar_select %p259_p11, %s3984_s15, %s261_s25  }
  0x1b   : > { %p4148_p0 = pnand %p4139_p13, %p3670_p12  ;;  %s4006_s24 = smov [#allocation6]  }
  0x1c   : > { %4900 = sst [smem:[#allocation21_spill]] %s4144_s11  ;;  %s321_s21 = sshll.u32 %s4006_s24, 4  ;;  %s322_s21 = int_to_ptr.vmem [resolvable:$true] %s321_s21 }
  0x1d   : > { %s4007_s19 = smov 128   ;;  %s4008_s18 = smov 8  }
  0x1e   : > { %s302_s15 = sshll.u32 %s4871_s3, 4  ;;  %s4009_s27 = smov [#allocation3]   ;;  %s303_s15 = int_to_ptr.hbm [resolvable:$true] %s302_s15 }
  0x1f   : > { %s319_s29 = sshll.u32 %s4902_s5, 4  ;;  %s304_s13 = sshll.u32 %s4009_s27, 4  ;;  %s320_s29 = int_to_ptr.hbm [resolvable:$true] %s319_s29  ;;  %s305_s13 = int_to_ptr.vmem [resolvable:$true] %s304_s13 }
  0x20   : > { %3676 = dma.hbm_to_vmem [thread:$0]  (!%p4148_p0), %s320_s29, 7680, %s322_s21, [#allocation7], %s4007_s19, %s4007_s19, %s4008_s18  }
  0x21   : > { %s333_s5 = sshll.u32 %s4874_s6, 4  ;;  %s4010_s24 = smov [#allocation8]   ;;  %s334_s5 = int_to_ptr.hbm [resolvable:$true] %s333_s5 }
  0x22   : > { %3673 = dma.hbm_to_vmem [thread:$0]  (!%p4148_p0), %s303_s15, 7680, %s305_s13, [#allocation4], %s4007_s19, %s4007_s19, %s4008_s18  }
  0x23   : > { %s335_s20 = sshll.u32 %s4010_s24, 4  ;;  %372 = sbr.rel (%p4131_p10) target bundleno = 3206 (0xc86), region = 60  ;;  %s336_s20 = int_to_ptr.vmem [resolvable:$true] %s335_s20 }
  0x24   : > { %3679 = dma.hbm_to_vmem [thread:$0]  (!%p4148_p0), %s334_s5, 7680, %s336_s20, [#allocation7], %s4007_s19, %s4007_s19, %s4008_s18  }
  0x28   : > { %3963 = dma.done.wait (%p4139_p13), [#allocation4], 7680  }
  0x29   : > { %3965 = vsyncadd (%p4139_p13), [#allocation4], 4294959616 }
  0x2a   : > { %3967 = dma.done.wait (%p4139_p13), [#allocation7], 15360  }
  0x2b   : > { %3969 = vsyncadd (%p4139_p13), [#allocation7], 4294951936  ;;  %s422_s5 = sand.u32 1, %s3980_s14   ;;  %p425_p1 = scmp.lt.s32.totalorder %s3992_s17, 1 }
  0x2c   : > { %s4181_s13 = sshll.u32 %s422_s5, 3  ;;  %p427_p2 = scmp.lt.s32.totalorder %s3988_s16, 7 }
  0x2d   : > { %s426_s15 = scalar_select %p425_p1, %s3992_s17, 1 }
  0x2e   : > { %s428_s18 = scalar_select %p427_p2, %s3988_s16, 7 }
  0x2f   : > { %s3431_s19 = sshll.u32 %s426_s15, 4  ;;  %s424_s29 = scalar_lea.vmem [#allocation9], %s4181_s13 }
  0x30   : > { %s3430_s20 = sshll.u32 %s428_s18, 1  ;;  %p3433_p4 = scmp.ne.s32.totalorder %s3988_s16, 0 }
  0x31   : > { %s431_s27 = sadd.s32 %s3431_s19, %s3430_s20 }
  0x32   : > { %s3432_s28 = sshll.u32 %s431_s27, 3  ;;  %437 = sbr.rel (%p3433_p4) target bundleno = 60 (0x3c), region = 76 }
  0x33   : > { %s433_s12 = scalar_lea.vmem %s4868_s0, %s3432_s28 }
  0x37   : > { %vm438_vm0 = vcmask 261120   ;;  %v4011_v0 = vmov 0.0  }
  0x38   : > { %439 = vst.msk [vmem:[#allocation2] sm:$0xff] %vm438_vm0, %v4011_v0 }
  0x39   : > { %440 = vst.msk [vmem:[#allocation2 + $0x8] sm:$0xff] %vm438_vm0, %v4011_v0 }
  0x3a   : > { %441 = vst.msk [vmem:[#allocation2 + $0x10] sm:$0xff] %vm438_vm0, %v4011_v0 }
  0x3b   : > { %442 = vst.msk [vmem:[#allocation2 + $0x18] sm:$0xff] %vm438_vm0, %v4011_v0 }
  0x3c PF: > { %v4191_v1 = vld [vmem:[%s433_s12 + $0x8] sm:$0xff]  ;;  %v4193_v2 = vld [vmem:[%s433_s12] sm:$0xff]  ;;  %vm496_vm1 = vcmask 1043456   ;;  %vm489_vm2 = vcmask 31744   ;;  %vm457_vm3 = vcmask 130048   ;;  %v4262_v13 = vld [vmem:[%s4869_s1 + $0x10] sm:$0xff] }
  0x3d   : > { %478 = vmatpush.msra.mxu0 %v4191_v1  ;;  %v4199_v3 = vld [vmem:[%s4869_s1] sm:$0xff]  ;;  %v4213_v5 = vld [vmem:[%s4869_s1 + $0x8] sm:$0xff]  ;;  %v3447_v7 = vld [vmem:[%s4870_s2 + $0x18] sm:$0xf]  ;;  %vm1038_vm4 = vcmask 261120   ;;  %p3645_p5 = scmp.ne.s32.totalorder %s3988_s16, 7 }
  0x3e   : > { %v452_v4 = vld [vmem:[%s4870_s2] sm:$0xf]  ;;  %v3440_v6 = vld [vmem:[%s4870_s2 + $0x4] sm:$0xf]  ;;  %v3454_v8 = vld [vmem:[%s4870_s2 + $0x2c] sm:$0xf]  ;;  %3448 = vmatpush.msk.msra.mxu3 %vm496_vm1, %v3447_v7 }
  0x3f   : > { %3444 = vmatpush.msk.msra.mxu2 %vm496_vm1, %v452_v4  ;;  %479 = vmatpush.msra.mxu0 %v4193_v2  ;;  %v3436_v9 = vld [vmem:[%s4870_s2 + $0x14] sm:$0xf]  ;;  %v3437_v10 = vld [vmem:[%s4870_s2 + $0x28] sm:$0xf]  ;;  %v4269_v14 = vld [vmem:[%s4869_s1 + $0x18] sm:$0xff] }
  0x40   : > { %3445 = vmatmul.msk.f32.vlgmr.msra.gmra.mxu2 %vm489_vm2, %v4193_v2  ;;  %3438 = vmatmul.msk.f32.vlgmr.msra.gmra.mxu0 %vm457_vm3, %v4199_v3  ;;  %v3463_v15 = vld [vmem:[%s4870_s2 + $0x8] sm:$0xf]  ;;  %v3467_v16 = vld [vmem:[%s4870_s2 + $0x1c] sm:$0xf]  ;;  %v3471_v17 = vld [vmem:[%s4870_s2 + $0x30] sm:$0xf] }
  0x41   : > { %3441 = vmatpush.msk.msra.mxu1 %vm496_vm1, %v3440_v6  ;;  %3455 = vmatpush.msk.msrb.mxu2 %vm496_vm1, %v3454_v8  ;;  %v3477_v18 = vld [vmem:[%s4870_s2 + $0xc] sm:$0xf]  ;;  %v3481_v19 = vld [vmem:[%s4870_s2 + $0x20] sm:$0xf]  ;;  %v3485_v20 = vld [vmem:[%s4870_s2 + $0x34] sm:$0xf] }
  0x42   : > { %3458 = vmatpush.msk.msrb.mxu3 %vm496_vm1, %v3437_v10  ;;  %v1037_v29 = vld [vmem:[#allocation3 + $0x18] sm:$0xff]  ;;  %v1036_v30 = vld [vmem:[#allocation3 + $0x10] sm:$0xff]  ;;  %v3495_v31 = vld [vmem:[%s4870_s2 + $0x24] sm:$0xf] }
  0x43   : > { %3451 = vmatpush.msk.msrb.mxu1 %vm496_vm1, %v3436_v9  ;;  %3468 = vmatpush.msk.msra.mxu2 %vm496_vm1, %v3467_v16  ;;  %v3491_v32 = vld [vmem:[%s4870_s2 + $0x10] sm:$0xf]  ;;  %v3499_v33 = vld [vmem:[%s4870_s2 + $0x38] sm:$0xf]  ;;  %v1035_v34 = vld [vmem:[#allocation3 + $0x8] sm:$0xff] }
  0x44   : > { %v1034_v35 = vld [vmem:[#allocation3] sm:$0xff]  ;;  %v1074_v37 = vld [vmem:[#allocation3 + $0xb8] sm:$0xff]  ;;  %v4331_v38 = vld [vmem:[#allocation2 + $0x8] sm:$0xff] }
  0x45   : > { %v4327_v36 = vld [vmem:[#allocation2] sm:$0xff]  ;;  %v1073_v39 = vld [vmem:[#allocation3 + $0xb0] sm:$0xff]  ;;  %v1072_v40 = vld [vmem:[#allocation3 + $0xa8] sm:$0xff] }
  0x46   : > { %v1071_v41 = vld [vmem:[#allocation3 + $0xa0] sm:$0xff]  ;;  %v1127_v54 = vld [vmem:[#allocation3 + $0x38] sm:$0xff]  ;;  %v1126_v56 = vld [vmem:[#allocation3 + $0x30] sm:$0xff] }
  0x47   : > { %v1163_v55 = vld [vmem:[#allocation3 + $0xd8] sm:$0xff]  ;;  %v1162_v57 = vld [vmem:[#allocation3 + $0xd0] sm:$0xff]  ;;  %v1125_v58 = vld [vmem:[#allocation3 + $0x28] sm:$0xff] }
  0x48   : > { %3446 = vmatmul.msk.f32.gmra.mxu2 %vm489_vm2, %v4191_v1  ;;  %3439 = vmatmul.msk.f32.gmra.mxu0 %vm457_vm3, %v4213_v5  ;;  %v1161_v59 = vld [vmem:[#allocation3 + $0xc8] sm:$0xff]  ;;  %v1124_v61 = vld [vmem:[#allocation3 + $0x20] sm:$0xff] }
  0x49   : > { %v1160_v62 = vld [vmem:[#allocation3 + $0xc0] sm:$0xff] }
  0xbd   : > { %v481_v11 = vpop.f32.mrf.mxu0 }
  0xbe   : > { %3442 = vmatmul.msk.f32.vlgmr.msra.gmra.mxu1 %vm489_vm2, %v481_v11  ;;  %3449 = vmatmul.msk.f32.vlgmr.msra.gmra.mxu3 %vm489_vm2, %v481_v11 }
  0xbf   : > { %3456 = vmatmul.msk.f32.vlgmr.msrb.gmra.mxu2 %vm489_vm2, %v481_v11  ;;  %3464 = vmatpush.msk.msra.mxu1 %vm496_vm1, %v3463_v15 }
  0xc0   : > { %3472 = vmatpush.msk.msra.mxu3 %vm496_vm1, %v3471_v17  ;;  %3482 = vmatpush.msk.msrb.mxu2 %vm496_vm1, %v3481_v19  ;;  %v1220_v17 = vld [vmem:[#allocation3 + $0x58] sm:$0xff]  ;;  %v1219_v19 = vld [vmem:[#allocation3 + $0x50] sm:$0xff] }
  0xc3   : > { %v4353_v48 = vpop.f32.mrf.mxu2 }
  0xc5   : > { %v484_v12 = vpop.f32.mrf.mxu0 }
  0xc6   : > { %3443 = vmatmul.msk.f32.gmra.mxu1 %vm489_vm2, %v484_v12  ;;  %3450 = vmatmul.msk.f32.gmra.mxu3 %vm489_vm2, %v484_v12 }
  0xc7   : > { %3457 = vmatmul.msk.f32.gmra.mxu2 %vm489_vm2, %v484_v12  ;;  %677 = vmatpush.msrb.mxu0 %v484_v12 }
  0xc9   : > { %678 = vmatpush.msrb.mxu0 %v481_v11 }
  0xca   : > { %3461 = vmatmul.msk.f32.vlgmr.msrb.gmra.mxu0 %vm457_vm3, %v4199_v3 }
  0xcb   : > { %806 = vmatpush.msra.mxu0 %v4191_v1  ;;  %v4355_v49 = vpop.f32.mrf.mxu2 }
  0xcd   : > { %807 = vmatpush.msra.mxu0 %v4193_v2 }
  0xce   : > { %3452 = vmatmul.msk.f32.vlgmr.msrb.gmra.mxu1 %vm489_vm2, %v4193_v2  ;;  %3459 = vmatmul.msk.f32.vlgmr.msrb.gmra.mxu3 %vm489_vm2, %v4193_v2 }
  0xcf   : > { %3478 = vmatpush.msk.msrb.mxu1 %vm496_vm1, %v3477_v18  ;;  %3486 = vmatpush.msk.msrb.mxu3 %vm496_vm1, %v3485_v20  ;;  %v1256_v18 = vld [vmem:[#allocation3 + $0xf8] sm:$0xff]  ;;  %v1255_v20 = vld [vmem:[#allocation3 + $0xf0] sm:$0xff] }
  0xd2   : > { %3462 = vmatmul.msk.f32.gmra.mxu0 %vm457_vm3, %v4213_v5 }
  0xd6   : > { %3453 = vmatmul.msk.f32.gmra.mxu1 %vm489_vm2, %v4191_v1  ;;  %3460 = vmatmul.msk.f32.gmra.mxu3 %vm489_vm2, %v4191_v1 }
  0xda   : > { %3475 = vmatmul.msk.f32.vlgmr.msra.gmra.mxu0 %vm457_vm3, %v4262_v13 }
  0xe2   : > { %3476 = vmatmul.msk.f32.gmra.mxu0 %vm457_vm3, %v4269_v14 }
 0x13b   : > { %v4385_v6 = vpop.f32.mrf.mxu1 }
 0x142   : > { %v4357_v50 = vpop.f32.mrf.mxu2 }
 0x143   : > { %v4389_v7 = vpop.f32.mrf.mxu1 }
 0x147   : > { %v680_v21 = vpop.f32.mrf.mxu0 }
 0x148   : > { %v686_v22 = vmul.f32 2.0, %v680_v21  ;;  %v1218_v21 = vld [vmem:[#allocation3 + $0x48] sm:$0xff] }
 0x14a   : > { %v688_v23 = vsub.f32 %v686_v22, %v4193_v2  ;;  %v4359_v51 = vpop.f32.mrf.mxu2  ;;  %v1254_v22 = vld [vmem:[#allocation3 + $0xe8] sm:$0xff] }
 0x14b   : > { %v4391_v8 = vpop.f32.mrf.mxu1 }
 0x14c   : > { %3465 = vmatmul.msk.f32.vlgmr.msra.gmra.mxu1 %vm489_vm2, %v688_v23  ;;  %3469 = vmatmul.msk.f32.vlgmr.msra.gmra.mxu2 %vm489_vm2, %v688_v23 }
 0x14d   : > { %3473 = vmatmul.msk.f32.vlgmr.msra.gmra.mxu3 %vm489_vm2, %v688_v23  ;;  %3496 = vmatpush.msk.msra.mxu2 %vm496_vm1, %v3495_v31 }
 0x14e   : > { %3492 = vmatpush.msk.msra.mxu1 %vm496_vm1, %v3491_v32  ;;  %3500 = vmatpush.msk.msra.mxu3 %vm496_vm1, %v3499_v33  ;;  %v1345_v32 = vld [vmem:[#allocation3 + $0x118] sm:$0xff] }
 0x14f   : > { %v683_v24 = vpop.f32.mrf.mxu0 }
 0x150   : > { %v687_v25 = vmul.f32 2.0, %v683_v24  ;;  %v1309_v24 = vld [vmem:[#allocation3 + $0x78] sm:$0xff] }
 0x152   : > { %v689_v26 = vsub.f32 %v687_v25, %v4191_v1  ;;  %v1217_v25 = vld [vmem:[#allocation3 + $0x40] sm:$0xff] }
 0x153   : > { %v4393_v9 = vpop.f32.mrf.mxu1 }
 0x154   : > { %3466 = vmatmul.msk.f32.gmra.mxu1 %vm489_vm2, %v689_v26  ;;  %3470 = vmatmul.msk.f32.gmra.mxu2 %vm489_vm2, %v689_v26 }
 0x155   : > { %3474 = vmatmul.msk.f32.gmra.mxu3 %vm489_vm2, %v689_v26  ;;  %v1253_v26 = vld [vmem:[#allocation3 + $0xe0] sm:$0xff] }
 0x157   : > { %v809_v27 = vpop.f32.mrf.mxu0 }
 0x15c   : > { %3479 = vmatmul.msk.f32.vlgmr.msrb.gmra.mxu1 %vm489_vm2, %v809_v27  ;;  %3483 = vmatmul.msk.f32.vlgmr.msrb.gmra.mxu2 %vm489_vm2, %v809_v27 }
 0x15d   : > { %3487 = vmatmul.msk.f32.vlgmr.msrb.gmra.mxu3 %vm489_vm2, %v809_v27  ;;  %1087 = vmatpush.msrb.mxu1 %v1074_v37  ;;  %v1342_v37 = vld [vmem:[#allocation3 + $0x100] sm:$0xff] }
 0x15e   : > { %1114 = vmatpush.msrb.mxu2 %v4331_v38  ;;  %1146 = vmatpush.msrb.mxu3 %v1127_v54 }
 0x15f   : > { %v812_v28 = vpop.f32.mrf.mxu0  ;;  %1088 = vmatpush.msrb.mxu1 %v1073_v39 }
 0x160   : > { %925 = vmatpush.msrb.mxu0 %v812_v28  ;;  %1115 = vmatpush.msrb.mxu2 %v4327_v36 }
 0x161   : > { %1089 = vmatpush.msrb.mxu1 %v1072_v40  ;;  %1147 = vmatpush.msrb.mxu3 %v1126_v56  ;;  %v4430_v56 = vpop.f32.mrf.mxu3 }
 0x162   : > { %926 = vmatpush.msrb.mxu0 %v809_v27 }
 0x163   : > { %3489 = vmatmul.msk.f32.vlgmr.msrb.gmra.mxu0 %vm457_vm3, %v4262_v13  ;;  %1090 = vmatpush.msrb.mxu1 %v1071_v41 }
 0x164   : > { %3480 = vmatmul.msk.f32.gmra.mxu1 %vm489_vm2, %v812_v28  ;;  %3484 = vmatmul.msk.f32.gmra.mxu2 %vm489_vm2, %v812_v28 }
 0x165   : > { %3488 = vmatmul.msk.f32.gmra.mxu3 %vm489_vm2, %v812_v28  ;;  %1057 = vmatpush.msra.mxu0 %v1037_v29  ;;  %v1308_v28 = vld [vmem:[#allocation3 + $0x70] sm:$0xff]  ;;  %v1307_v29 = vld [vmem:[#allocation3 + $0x68] sm:$0xff] }
 0x166   : > { %1148 = vmatpush.msrb.mxu3 %v1125_v58 }
 0x167   : > { %1058 = vmatpush.msra.mxu0 %v1036_v30  ;;  %v1306_v30 = vld [vmem:[#allocation3 + $0x60] sm:$0xff] }
 0x168   : > { %1149 = vmatpush.msrb.mxu3 %v1124_v61 }
 0x169   : > { %1059 = vmatpush.msra.mxu0 %v1035_v34  ;;  %v1344_v34 = vld [vmem:[#allocation3 + $0x110] sm:$0xff] }
 0x16b   : > { %3490 = vmatmul.msk.f32.gmra.mxu0 %vm457_vm3, %v4269_v14 }
 0x16c   : > { %1060 = vmatpush.msra.mxu0 %v1034_v35  ;;  %v1343_v35 = vld [vmem:[#allocation3 + $0x108] sm:$0xff] }
 0x16e   : > { %1176 = vmatpush.msrb.mxu0 %v1163_v55 }
 0x170   : > { %1177 = vmatpush.msrb.mxu0 %v1162_v57  ;;  %v4435_v57 = vpop.f32.mrf.mxu3 }
 0x172   : > { %1178 = vmatpush.msrb.mxu0 %v1161_v59 }
 0x173   : > { %3503 = vmatmul.msk.f32.vlgmr.msra.gmra.mxu0 %vm1038_vm4, %v4327_v36 }
 0x174   : > { %1179 = vmatpush.msrb.mxu0 %v1160_v62 }
 0x176   : > { %1296 = vmatpush.msra.mxu0 %v4331_v38 }
 0x178   : > { %1297 = vmatpush.msra.mxu0 %v4327_v36  ;;  %v4437_v58 = vpop.f32.mrf.mxu3 }
 0x17b   : > { %3504 = vmatmul.msk.f32.gmra.mxu0 %vm1038_vm4, %v4331_v38 }
 0x180   : > { %v4439_v59 = vpop.f32.mrf.mxu3 }
 0x1c9   : > { %v4395_v10 = vpop.f32.mrf.mxu1 }
 0x1cf   : > { %v4361_v52 = vpop.f32.mrf.mxu2 }
 0x1d0   : > { %v4441_v61 = vpop.f32.mrf.mxu3 }
 0x1d1   : > { %v4397_v11 = vpop.f32.mrf.mxu1 }
 0x1d7   : > { %v4363_v53 = vpop.f32.mrf.mxu2 }
 0x1d8   : > { %v4443_v62 = vpop.f32.mrf.mxu3 }
 0x1d9   : > { %v4399_v12 = vpop.f32.mrf.mxu1 }
 0x1df   : > { %v4365_v60 = vpop.f32.mrf.mxu2 }
 0x1e0   : > { %v928_v42 = vpop.f32.mrf.mxu0 }
 0x1e1   : > { %v934_v43 = vmul.f32 2.0, %v928_v42  ;;  %v4401_v15 = vpop.f32.mrf.mxu1 }
 0x1e3   : > { %v936_v44 = vsub.f32 %v934_v43, %v4193_v2 }
 0x1e5   : > { %3493 = vmatmul.msk.f32.vlgmr.msra.gmra.mxu1 %vm489_vm2, %v936_v44  ;;  %3497 = vmatmul.msk.f32.vlgmr.msra.gmra.mxu2 %vm489_vm2, %v936_v44 }
 0x1e6   : > { %3501 = vmatmul.msk.f32.vlgmr.msra.gmra.mxu3 %vm489_vm2, %v936_v44  ;;  %1239 = vmatpush.msra.mxu2 %v1220_v17 }
 0x1e7   : > { %v4369_v63 = vpop.f32.mrf.mxu2  ;;  %1269 = vmatpush.msra.mxu3 %v1256_v18 }
 0x1e8   : > { %v931_v45 = vpop.f32.mrf.mxu0  ;;  %1240 = vmatpush.msra.mxu2 %v1219_v19  ;;  %v1402_v19 = vld [vmem:[#allocation3 + $0x98] sm:$0xff] }
 0x1e9   : > { %v935_v46 = vmul.f32 2.0, %v931_v45  ;;  %1270 = vmatpush.msra.mxu3 %v1255_v20  ;;  %v1438_v20 = vld [vmem:[#allocation3 + $0x138] sm:$0xff] }
 0x1ea   : > { %1241 = vmatpush.msra.mxu2 %v1218_v21 }
 0x1eb   : > { %v937_v47 = vsub.f32 %v935_v46, %v4191_v1  ;;  %1271 = vmatpush.msra.mxu3 %v1254_v22  ;;  %v1401_v22 = vld [vmem:[#allocation3 + $0x90] sm:$0xff] }
 0x1ec   : > { %1242 = vmatpush.msra.mxu2 %v1217_v25  ;;  %v1400_v25 = vld [vmem:[#allocation3 + $0x88] sm:$0xff] }
 0x1ed   : > { %3494 = vmatmul.msk.f32.gmra.mxu1 %vm489_vm2, %v937_v47  ;;  %3498 = vmatmul.msk.f32.gmra.mxu2 %vm489_vm2, %v937_v47 }
 0x1ee   : > { %3502 = vmatmul.msk.f32.gmra.mxu3 %vm489_vm2, %v937_v47 }
 0x1ef   : > { %1272 = vmatpush.msra.mxu3 %v1253_v26  ;;  %v1436_v26 = vld [vmem:[#allocation3 + $0x128] sm:$0xff] }
 0x1f0   : > { %v4405_v23 = vpop.f32.mrf.mxu0 }
 0x1f5   : > { %3505 = vmatmul.msk.f32.vlgmr.msrb.gmra.mxu1 %vm1038_vm4, %v4327_v36  ;;  %3507 = vmatmul.msk.f32.vlgmr.msrb.gmra.mxu2 %vm457_vm3, %v4199_v3 }
 0x1f6   : > { %1358 = vmatpush.msrb.mxu2 %v1345_v32 }
 0x1f8   : > { %v4409_v31 = vpop.f32.mrf.mxu0  ;;  %1359 = vmatpush.msrb.mxu2 %v1344_v34 }
 0x1fa   : > { %1360 = vmatpush.msrb.mxu2 %v1343_v35 }
 0x1fc   : > { %1361 = vmatpush.msrb.mxu2 %v1342_v37 }
 0x1fd   : > { %3506 = vmatmul.msk.f32.gmra.mxu1 %vm1038_vm4, %v4331_v38  ;;  %3508 = vmatmul.msk.f32.gmra.mxu2 %vm457_vm3, %v4213_v5 }
 0x262   : > { %v4403_v16 = vpop.f32.mrf.mxu1 }
 0x268   : > { %v4371_v0 = vpop.f32.mrf.mxu2 }
 0x26a   : > { %v4407_v27 = vpop.f32.mrf.mxu1 }
 0x270   : > { %v4373_v1 = vpop.f32.mrf.mxu2 }
 0x272   : > { %v4411_v33 = vpop.f32.mrf.mxu1 }
 0x278   : > { %v1117_v2 = vpop.f32.mrf.mxu2 }
 0x279   : > { %3509 = vmatmul.msk.f32.vlgmr.msrb.gmra.mxu3 %vm1038_vm4, %v1117_v2  ;;  %3511 = vmatmul.msk.f32.vlgmr.msrb.gmra.mxu0 %vm1038_vm4, %v1117_v2 }
 0x27a   : > { %v4415_v40 = vpop.f32.mrf.mxu1  ;;  %1421 = vmatpush.msrb.mxu0 %v1402_v19  ;;  %v553_v19 = vadd.f32 %v4355_v49, %v4389_v7  ;;  %v3761_v49 = vld [vmem:[%s4872_s4] ss:$0 sm:$0xff] }
 0x27c   : > { %1422 = vmatpush.msrb.mxu0 %v1401_v22  ;;  %v725_v22 = vadd.f32 %v4397_v11, %v553_v19 }
 0x27e   : > { %1423 = vmatpush.msrb.mxu0 %v1400_v25  ;;  %v850_v25 = vadd.f32 %v4401_v15, %v725_v22  ;;  %v1557_v15 = vld [vmem:[#allocation3 + $0x148] sm:$0xff] }
 0x280   : > { %v1120_v4 = vpop.f32.mrf.mxu2 }
 0x281   : > { %3510 = vmatmul.msk.f32.gmra.mxu3 %vm1038_vm4, %v1120_v4  ;;  %3512 = vmatmul.msk.f32.gmra.mxu0 %vm1038_vm4, %v1120_v4 }
 0x282   : > { %1203 = vmatpush.msra.mxu1 %v1120_v4 }
 0x284   : > { %1204 = vmatpush.msra.mxu1 %v1117_v2  ;;  %v4445_v2 = vpop.f32.mrf.mxu3 }
 0x285   : > { %3513 = vmatmul.msk.f32.vlgmr.msra.gmra.mxu1 %vm457_vm3, %v4199_v3 }
 0x286   : > { %1328 = vmatpush.msrb.mxu1 %v1309_v24  ;;  %v1437_v24 = vld [vmem:[#allocation3 + $0x130] sm:$0xff] }
 0x288   : > { %1329 = vmatpush.msrb.mxu1 %v1308_v28  ;;  %v1399_v28 = vld [vmem:[#allocation3 + $0x80] sm:$0xff] }
 0x289   : > { %3519 = vmatmul.msk.f32.vlgmr.msra.gmra.mxu0 %vm457_vm3, %v4262_v13 }
 0x28a   : > { %1330 = vmatpush.msrb.mxu1 %v1307_v29  ;;  %v1435_v29 = vld [vmem:[#allocation3 + $0x120] sm:$0xff]  ;;  %1424 = vmatpush.msrb.mxu0 %v1399_v28  ;;  %v973_v28 = vadd.f32 %v4407_v27, %v850_v25 }
 0x28c   : > { %1331 = vmatpush.msrb.mxu1 %v1306_v30  ;;  %v4447_v4 = vpop.f32.mrf.mxu3 }
 0x28d   : > { %3514 = vmatmul.msk.f32.gmra.mxu1 %vm457_vm3, %v4213_v5 }
 0x28e   : > { %1451 = vmatpush.msra.mxu1 %v1438_v20 }
 0x290   : > { %1452 = vmatpush.msra.mxu1 %v1437_v24 }
 0x291   : > { %3520 = vmatmul.msk.f32.gmra.mxu0 %vm457_vm3, %v4269_v14 }
 0x292   : > { %1453 = vmatpush.msra.mxu1 %v1436_v26 }
 0x294   : > { %v4449_v17 = vpop.f32.mrf.mxu3  ;;  %1454 = vmatpush.msra.mxu1 %v1435_v29 }
 0x29c   : > { %v4451_v18 = vpop.f32.mrf.mxu3 }
 0x2f6   : > { %v4413_v39 = vpop.f32.mrf.mxu0 }
 0x2fc   : > { %v1151_v21 = vpop.f32.mrf.mxu3 }
 0x2fe   : > { %v4417_v41 = vpop.f32.mrf.mxu0 }
 0x302   : > { %v1206_v42 = vpop.f32.mrf.mxu1 }
 0x303   : > { %v1212_v43 = vmul.f32 2.0, %v1206_v42 }
 0x304   : > { %v1154_v30 = vpop.f32.mrf.mxu3 }
 0x305   : > { %v1214_v44 = vsub.f32 %v1212_v43, %v4327_v36 }
 0x306   : > { %v1299_v45 = vpop.f32.mrf.mxu0 }
 0x307   : > { %3515 = vmatmul.msk.f32.vlgmr.msra.gmra.mxu2 %vm1038_vm4, %v1214_v44  ;;  %3517 = vmatmul.msk.f32.vlgmr.msra.gmra.mxu3 %vm1038_vm4, %v1214_v44 }
 0x308   : > { %3521 = vmatmul.msk.f32.vlgmr.msrb.gmra.mxu1 %vm1038_vm4, %v1299_v45 }
 0x30a   : > { %v1209_v46 = vpop.f32.mrf.mxu1 }
 0x30b   : > { %v1213_v47 = vmul.f32 2.0, %v1209_v46  ;;  %v550_v46 = vadd.f32 %v4353_v48, %v4385_v6 }
 0x30d   : > { %v1215_v54 = vsub.f32 %v1213_v47, %v4331_v38  ;;  %v724_v47 = vadd.f32 %v4395_v10, %v550_v46  ;;  %v1559_v10 = vld [vmem:[#allocation3 + $0x158] sm:$0xff] }
 0x30e   : > { %v1302_v55 = vpop.f32.mrf.mxu0  ;;  %1578 = vmatpush.msra.mxu2 %v1559_v10 }
 0x30f   : > { %3516 = vmatmul.msk.f32.gmra.mxu2 %vm1038_vm4, %v1215_v54  ;;  %3518 = vmatmul.msk.f32.gmra.mxu3 %vm1038_vm4, %v1215_v54  ;;  %v849_v54 = vadd.f32 %v4399_v12, %v724_v47  ;;  %v1069_v12 = vadd.f32 %v4409_v31, %v973_v28 }
 0x310   : > { %1385 = vmatpush.msrb.mxu3 %v1302_v55  ;;  %3522 = vmatmul.msk.f32.gmra.mxu1 %vm1038_vm4, %v1302_v55 }
 0x312   : > { %1386 = vmatpush.msrb.mxu3 %v1299_v45 }
 0x317   : > { %3523 = vmatmul.msk.f32.vlgmr.msrb.gmra.mxu2 %vm1038_vm4, %v1299_v45  ;;  %3525 = vmatmul.msk.f32.vlgmr.msrb.gmra.mxu3 %vm457_vm3, %v4262_v13 }
 0x31f   : > { %3524 = vmatmul.msk.f32.gmra.mxu2 %vm1038_vm4, %v1302_v55  ;;  %3526 = vmatmul.msk.f32.gmra.mxu3 %vm457_vm3, %v4269_v14  ;;  %v972_v55 = vadd.f32 %v4403_v16, %v849_v54  ;;  %v1558_v16 = vld [vmem:[#allocation3 + $0x150] sm:$0xff] }
 0x320   : > { %1579 = vmatpush.msra.mxu2 %v1558_v16 }
 0x321   : > { %v1068_v24 = vadd.f32 %v4405_v23, %v972_v55  ;;  %v1158_v23 = vadd.f32 %v1154_v30, %v1069_v12 }
 0x322   : > { %1580 = vmatpush.msra.mxu2 %v1557_v15 }
 0x323   : > { %v1157_v26 = vadd.f32 %v1151_v21, %v1068_v24 }
 0x385   : > { %v1333_v6 = vpop.f32.mrf.mxu1 }
 0x38a   : > { %v4453_v32 = vpop.f32.mrf.mxu3  ;;  %v1244_v20 = vpop.f32.mrf.mxu2 }
 0x38b   : > { %v1250_v48 = vadd.f32 %v1244_v20, %v1157_v26 }
 0x38d   : > { %v1339_v29 = vadd.f32 %v1333_v6, %v1250_v48  ;;  %v1336_v31 = vpop.f32.mrf.mxu1 }
 0x392   : > { %v4455_v34 = vpop.f32.mrf.mxu3  ;;  %v1247_v7 = vpop.f32.mrf.mxu2 }
 0x393   : > { %v1251_v21 = vadd.f32 %v1247_v7, %v1158_v23 }
 0x39a   : > { %v1388_v35 = vpop.f32.mrf.mxu3 }
 0x39b   : > { %v1394_v37 = vmul.f32 2.0, %v1388_v35 }
 0x39d   : > { %v1396_v42 = vsub.f32 %v1394_v37, %v4327_v36  ;;  %v1556_v37 = vld [vmem:[#allocation3 + $0x140] sm:$0xff] }
 0x39e   : > { %1581 = vmatpush.msra.mxu2 %v1556_v37 }
 0x39f   : > { %3527 = vmatmul.msk.f32.vlgmr.msrb.gmra.mxu0 %vm1038_vm4, %v1396_v42  ;;  %3529 = vmatmul.msk.f32.vlgmr.msra.gmra.mxu1 %vm1038_vm4, %v1396_v42 }
 0x3a2   : > { %v1391_v43 = vpop.f32.mrf.mxu3 }
 0x3a3   : > { %v1395_v44 = vmul.f32 2.0, %v1391_v43  ;;  %v1340_v43 = vadd.f32 %v1336_v31, %v1251_v21  ;;  %v1618_v31 = vld [vmem:[#allocation3 + $0x178] sm:$0xff] }
 0x3a4   : > { %1637 = vmatpush.msra.mxu0 %v1618_v31  ;;  %v604_v31 = vadd.f32 %v4391_v8, %v4430_v56 }
 0x3a5   : > { %v1397_v45 = vsub.f32 %v1395_v44, %v4331_v38 }
 0x3a7   : > { %3528 = vmatmul.msk.f32.gmra.mxu0 %vm1038_vm4, %v1397_v45  ;;  %3530 = vmatmul.msk.f32.gmra.mxu1 %vm1038_vm4, %v1397_v45 }
 0x41c   : > { %v1426_v11 = vpop.f32.mrf.mxu0 }
 0x41d   : > { %v1432_v35 = vadd.f32 %v1426_v11, %v1339_v29 }
 0x41f   : > { %v1468_v27 = vadd.f32 %v3761_v49, %v1432_v35 }
 0x421   : > { %v3531_v42 = vmul.f32 -1.442695, %v1468_v27 }
 0x423   : > { %3767 = vpow2.f32 %v3531_v42 }
 0x424   : > { %v1429_v44 = vpop.f32.mrf.mxu0 }
 0x425   : > { %v1433_v45 = vadd.f32 %v1429_v44, %v1340_v43  ;;  %v1617_v43 = vld [vmem:[#allocation3 + $0x170] sm:$0xff]  ;;  %v1616_v44 = vld [vmem:[#allocation3 + $0x168] sm:$0xff] }
 0x426   : > { %1638 = vmatpush.msra.mxu0 %v1617_v43  ;;  %v754_v43 = vadd.f32 %v4361_v52, %v604_v31 }
 0x427   : > { %v1469_v46 = vadd.f32 %v3761_v49, %v1433_v45  ;;  %v1615_v45 = vld [vmem:[#allocation3 + $0x160] sm:$0xff] }
 0x428   : > { %1639 = vmatpush.msra.mxu0 %v1616_v44  ;;  %v879_v44 = vadd.f32 %v4365_v60, %v754_v43 }
 0x429   : > { %v3768_v47 = vpop.eup %3767  ;;  %v3532_v54 = vmul.f32 -1.442695, %v1469_v46  ;;  %v1740_v46 = vld [vmem:[#allocation3 + $0x1b8] sm:$0xff] }
 0x42a   : > { %v1476_v55 = vadd.f32 1.0, %v3768_v47  ;;  %1640 = vmatpush.msra.mxu0 %v1615_v45  ;;  %v1739_v47 = vld [vmem:[#allocation3 + $0x1b0] sm:$0xff]  ;;  %v1002_v45 = vadd.f32 %v4371_v0, %v879_v44 }
 0x42b   : > { %3769 = vpow2.f32 %v3532_v54  ;;  %v1738_v54 = vld [vmem:[#allocation3 + $0x1a8] sm:$0xff] }
 0x42c   : > { %3771 = vrcp.f32 %v1476_v55  ;;  %v1489_v25 = vand.u32 2147483648, %v1476_v55  ;;  %v1487_v28 = vand.u32 2147483647, %v1476_v55  ;;  %vm1483_vm6 = vweird.f32 %v1476_v55  ;;  %1759 = vmatpush.msrb.mxu0 %v1740_v46 }
 0x42d   : > { %v1098_v46 = vadd.f32 %v4411_v33, %v1002_v45 }
 0x42e   : > { %v1490_v10 = vor.u32 1.1754944e-38, %v1489_v25  ;;  %vm1488_vm8 = vcmp.eq.f32.partialorder %v1487_v28, 8.507059e+37  ;;  %1760 = vmatpush.msrb.mxu0 %v1739_v47  ;;  %v1679_v25 = vld [vmem:[#allocation3 + $0x188] sm:$0xff]  ;;  %v1456_v28 = vpop.f32.mrf.mxu1  ;;  %v1363_v47 = vpop.f32.mrf.mxu2 }
 0x430   : > { %1761 = vmatpush.msrb.mxu0 %v1738_v54 }
 0x431   : > { %v3770_v30 = vpop.eup %3769 }
 0x432   : > { %v3772_v19 = vpop.eup %3771  ;;  %v1477_v20 = vadd.f32 1.0, %v3770_v30 }
 0x433   : > { %v1479_v22 = vmul.f32 %v3772_v19, %v1476_v55  ;;  %vm1484_vm5 = vweird.f32 %v3772_v19  ;;  %v1737_v55 = vld [vmem:[#allocation3 + $0x1a0] sm:$0xff] }
 0x434   : > { %3773 = vrcp.f32 %v1477_v20  ;;  %vm1485_vm7 = vmor %vm1483_vm6, %vm1484_vm5  ;;  %v1504_v16 = vand.u32 2147483648, %v1477_v20  ;;  %v1502_v35 = vand.u32 2147483647, %v1477_v20  ;;  %vm1498_vm10 = vweird.f32 %v1477_v20  ;;  %1762 = vmatpush.msrb.mxu0 %v1737_v55 }
 0x435   : > { %v1480_v24 = vsub.f32 1.0, %v1479_v22 }
 0x436   : > { %v1505_v21 = vor.u32 1.1754944e-38, %v1504_v16  ;;  %vm1503_vm12 = vcmp.eq.f32.partialorder %v1502_v35, 8.507059e+37 }
 0x437   : > { %v1481_v26 = vmul.f32 %v3772_v19, %v1480_v24  ;;  %v1681_v24 = vld [vmem:[#allocation3 + $0x198] sm:$0xff] }
 0x438   : > { %1700 = vmatpush.msrb.mxu2 %v1681_v24 }
 0x439   : > { %v1482_v48 = vadd.f32 %v3772_v19, %v1481_v26  ;;  %v1678_v26 = vld [vmem:[#allocation3 + $0x180] sm:$0xff] }
 0x43a   : > { %v3774_v6 = vpop.eup %3773 }
 0x43b   : > { %v1494_v12 = vmul.f32 %v3774_v6, %v1477_v20  ;;  %v1486_v29 = vsel %vm1485_vm7, %v3772_v19, %v1482_v48  ;;  %vm1499_vm9 = vweird.f32 %v3774_v6  ;;  %v1802_v48 = vld [vmem:[#allocation3 + $0x1d0] sm:$0xff] }
 0x43c   : > { %v1491_v49 = vsel %vm1488_vm8, %v1490_v10, %v1486_v29  ;;  %vm1500_vm11 = vmor %vm1498_vm10, %vm1499_vm9  ;;  %v1800_v10 = vld [vmem:[#allocation3 + $0x1c0] sm:$0xff] }
 0x43d   : > { %v1495_v7 = vsub.f32 1.0, %v1494_v12  ;;  %v4479_v11 = vmul.f32 %v1491_v49, %v4327_v36 }
 0x43f   : > { %v1496_v23 = vmul.f32 %v3774_v6, %v1495_v7  ;;  %3536 = vmatmul.msk.f32.vlgmr.msra.gmra.mxu2 %vm1038_vm4, %v4479_v11 }
 0x441   : > { %v1497_v15 = vadd.f32 %v3774_v6, %v1496_v23 }
 0x443   : > { %v1501_v27 = vsel %vm1500_vm11, %v3774_v6, %v1497_v15  ;;  %v1801_v6 = vld [vmem:[#allocation3 + $0x1c8] sm:$0xff] }
 0x444   : > { %v1506_v37 = vsel %vm1503_vm12, %v1505_v21, %v1501_v27 }
 0x445   : > { %v4484_v42 = vmul.f32 %v1506_v37, %v4331_v38 }
 0x447   : > { %3537 = vmatmul.msk.f32.gmra.mxu2 %vm1038_vm4, %v4484_v42  ;;  %1605 = vmatpush.msra.mxu3 %v4484_v42 }
 0x449   : > { %1606 = vmatpush.msra.mxu3 %v4479_v11 }
 0x44a   : > { %3538 = vmatmul.msk.f32.vlgmr.msra.gmra.mxu3 %vm457_vm3, %v4199_v3 }
 0x44b   : > { %1727 = vmatpush.msrb.mxu3 %v4484_v42 }
 0x44d   : > { %1728 = vmatpush.msrb.mxu3 %v4479_v11 }
 0x452   : > { %3539 = vmatmul.msk.f32.gmra.mxu3 %vm457_vm3, %v4213_v5 }
 0x45a   : > { %3546 = vmatmul.msk.f32.vlgmr.msrb.gmra.mxu3 %vm457_vm3, %v4262_v13 }
 0x462   : > { %3547 = vmatmul.msk.f32.gmra.mxu3 %vm457_vm3, %v4269_v14 }
 0x4cd   : > { %v1608_v30 = vpop.f32.mrf.mxu3 }
 0x4ce   : > { %3540 = vmatmul.msk.f32.vlgmr.msra.gmra.mxu0 %vm1038_vm4, %v1608_v30 }
 0x4d5   : > { %v1611_v19 = vpop.f32.mrf.mxu3 }
 0x4d6   : > { %3541 = vmatmul.msk.f32.gmra.mxu0 %vm1038_vm4, %v1611_v19  ;;  %1664 = vmatpush.msrb.mxu1 %v1611_v19 }
 0x4d8   : > { %1665 = vmatpush.msrb.mxu1 %v1608_v30 }
 0x4d9   : > { %3542 = vmatmul.msk.f32.vlgmr.msrb.gmra.mxu1 %vm457_vm3, %v4199_v3  ;;  %v1680_v3 = vld [vmem:[#allocation3 + $0x190] sm:$0xff] }
 0x4da   : > { %1701 = vmatpush.msrb.mxu2 %v1680_v3 }
 0x4dc   : > { %1702 = vmatpush.msrb.mxu2 %v1679_v25  ;;  %v1860_v25 = vld [vmem:[#allocation6 + $0x18] sm:$0xff] }
 0x4dd   : > { %v1730_v20 = vpop.f32.mrf.mxu3 }
 0x4de   : > { %3548 = vmatmul.msk.f32.vlgmr.msrb.gmra.mxu0 %vm1038_vm4, %v1730_v20  ;;  %1703 = vmatpush.msrb.mxu2 %v1678_v26  ;;  %v658_v26 = vadd.f32 %v4437_v58, %v4357_v50  ;;  %v661_v58 = vadd.f32 %v4439_v59, %v4359_v51  ;;  %v1867_v59 = vld [vmem:[#allocation6 + $0x140] sm:$0xff] }
 0x4e1   : > { %3543 = vmatmul.msk.f32.gmra.mxu1 %vm457_vm3, %v4213_v5  ;;  %v1803_v5 = vld [vmem:[#allocation3 + $0x1d8] sm:$0xff] }
 0x4e2   : > { %1822 = vmatpush.msra.mxu2 %v1803_v5 }
 0x4e4   : > { %1823 = vmatpush.msra.mxu2 %v1802_v48  ;;  %v1858_v48 = vld [vmem:[#allocation6 + $0x8] sm:$0xff] }
 0x4e5   : > { %v1733_v22 = vpop.f32.mrf.mxu3 }
 0x4e6   : > { %3549 = vmatmul.msk.f32.gmra.mxu0 %vm1038_vm4, %v1733_v22  ;;  %1786 = vmatpush.msra.mxu1 %v1733_v22 }
 0x4e7   : > { %1824 = vmatpush.msra.mxu2 %v1801_v6 }
 0x4e8   : > { %1787 = vmatpush.msra.mxu1 %v1730_v20 }
 0x4e9   : > { %3550 = vmatmul.msk.f32.vlgmr.msra.gmra.mxu1 %vm457_vm3, %v4262_v13  ;;  %1825 = vmatpush.msra.mxu2 %v1800_v10  ;;  %v1459_v13 = vpop.f32.mrf.mxu1  ;;  %v784_v10 = vadd.f32 %v4441_v61, %v658_v26 }
 0x4ea   : > { %1946 = vmatpush.msrb.mxu1 %v1860_v25 }
 0x4f1   : > { %3551 = vmatmul.msk.f32.gmra.mxu1 %vm457_vm3, %v4269_v14 }
 0x54b   : > { %v1642_v3 = vpop.f32.mrf.mxu0 }
 0x556   : > { %v1667_v12 = vpop.f32.mrf.mxu1 }
 0x557   : > { %v1673_v14 = vmul.f32 2.0, %v1667_v12  ;;  %v1857_v12 = vld [vmem:[#allocation6] sm:$0xff] }
 0x559   : > { %v1675_v29 = vsub.f32 %v1673_v14, %v4479_v11  ;;  %v909_v14 = vadd.f32 %v4445_v2, %v784_v10  ;;  %v1862_v10 = vld [vmem:[#allocation6 + $0xa0] sm:$0xff] }
 0x55b   : > { %3544 = vmatmul.msk.f32.vlgmr.msrb.gmra.mxu2 %vm1038_vm4, %v1675_v29  ;;  %v1032_v50 = vadd.f32 %v4449_v17, %v909_v14  ;;  %v1961_v14 = vld [vmem:[#allocation6 + $0xd8] sm:$0xff] }
 0x55c   : > { %1974 = vmatpush.msrb.mxu2 %v1961_v14  ;;  %v2398_v14 = vld [vmem:[#allocation6 + $0x1d8] sm:$0xff] }
 0x55e   : > { %v1670_v49 = vpop.f32.mrf.mxu1 }
 0x55f   : > { %v1674_v7 = vmul.f32 2.0, %v1670_v49 }
 0x561   : > { %v1676_v16 = vsub.f32 %v1674_v7, %v4484_v42 }
 0x563   : > { %3545 = vmatmul.msk.f32.gmra.mxu2 %vm1038_vm4, %v1676_v16 }
 0x566   : > { %v1789_v23 = vpop.f32.mrf.mxu1 }
 0x567   : > { %v1795_v35 = vmul.f32 2.0, %v1789_v23  ;;  %v1870_v23 = vld [vmem:[#allocation6 + $0x158] sm:$0xff] }
 0x569   : > { %v1797_v15 = vsub.f32 %v1795_v35, %v4479_v11  ;;  %v607_v11 = vadd.f32 %v4393_v9, %v4435_v57  ;;  %v3762_v9 = vld [vmem:[%s4872_s4 + $0x1] ss:$0 sm:$0xff]  ;;  %v1366_v57 = vpop.f32.mrf.mxu2  ;;  %v785_v35 = vadd.f32 %v4443_v62, %v661_v58  ;;  %v3763_v62 = vld [vmem:[%s4872_s4 + $0x2] ss:$0 sm:$0xff]  ;;  %v1896_v58 = vld [vmem:[#allocation6 + $0x28] sm:$0xff] }
 0x56b   : > { %3552 = vmatmul.msk.f32.vlgmr.msra.gmra.mxu2 %vm1038_vm4, %v1797_v15  ;;  %v755_v54 = vadd.f32 %v4363_v53, %v607_v11  ;;  %v910_v2 = vadd.f32 %v4447_v4, %v785_v35  ;;  %v2010_v35 = vld [vmem:[#allocation6 + $0x168] sm:$0xff] }
 0x56d   : > { %v880_v55 = vadd.f32 %v4369_v63, %v755_v54  ;;  %v1033_v51 = vadd.f32 %v4451_v18, %v910_v2 }
 0x56e   : > { %v1792_v21 = vpop.f32.mrf.mxu1 }
 0x56f   : > { %v1796_v27 = vmul.f32 2.0, %v1792_v21  ;;  %v1003_v52 = vadd.f32 %v4373_v1, %v880_v55 }
 0x571   : > { %v1798_v37 = vsub.f32 %v1796_v27, %v4484_v42  ;;  %v1187_v42 = vadd.f32 %v4413_v39, %v1098_v46  ;;  %v1099_v60 = vadd.f32 %v4415_v40, %v1003_v52  ;;  %v1583_v1 = vpop.f32.mrf.mxu2  ;;  %v1869_v27 = vld [vmem:[#allocation6 + $0x150] sm:$0xff] }
 0x572   : > { %v1589_v49 = vadd.f32 %v1583_v1, %v1032_v50  ;;  %v1960_v50 = vld [vmem:[#allocation6 + $0xd0] sm:$0xff] }
 0x573   : > { %3553 = vmatmul.msk.f32.gmra.mxu2 %vm1038_vm4, %v1798_v37  ;;  %v1280_v8 = vadd.f32 %v4453_v32, %v1187_v42  ;;  %v1188_v33 = vadd.f32 %v4417_v41, %v1099_v60  ;;  %v1868_v37 = vld [vmem:[#allocation6 + $0x148] sm:$0xff] }
 0x574   : > { %v1648_v15 = vadd.f32 %v1642_v3, %v1589_v49  ;;  %v1959_v49 = vld [vmem:[#allocation6 + $0xc8] sm:$0xff]  ;;  %1975 = vmatpush.msrb.mxu2 %v1960_v50 }
 0x575   : > { %v1369_v56 = vadd.f32 %v1363_v47, %v1280_v8  ;;  %v1281_v53 = vadd.f32 %v4455_v34, %v1188_v33  ;;  %v1859_v34 = vld [vmem:[#allocation6 + $0x10] sm:$0xff] }
 0x576   : > { %1947 = vmatpush.msrb.mxu1 %v1859_v34  ;;  %1976 = vmatpush.msrb.mxu2 %v1959_v49 }
 0x577   : > { %v1462_v0 = vadd.f32 %v1456_v28, %v1369_v56  ;;  %v1370_v30 = vadd.f32 %v1366_v57, %v1281_v53 }
 0x578   : > { %1948 = vmatpush.msrb.mxu1 %v1858_v48  ;;  %v4585_v48 = vld [vmem:[%s4869_s1] sm:$0xff] }
 0x579   : > { %v1513_v39 = vadd.f32 %v3762_v9, %v1462_v0  ;;  %v1463_v19 = vadd.f32 %v1459_v13, %v1370_v30  ;;  %v1586_v24 = vpop.f32.mrf.mxu2  ;;  %v1645_v13 = vpop.f32.mrf.mxu0 }
 0x57a   : > { %1949 = vmatpush.msrb.mxu1 %v1857_v12  ;;  %v1590_v44 = vadd.f32 %v1586_v24, %v1033_v51  ;;  %v1898_v12 = vld [vmem:[#allocation6 + $0x38] sm:$0xff]  ;;  %v2089_v51 = vld [vmem:[#allocation6 + $0x50] sm:$0xff] }
 0x57b   : > { %v3534_v63 = vmul.f32 -1.442695, %v1513_v39  ;;  %v1514_v32 = vadd.f32 %v3762_v9, %v1463_v19  ;;  %1917 = vmatpush.msra.mxu0 %v1898_v12  ;;  %v2368_v12 = vld [vmem:[#allocation6 + $0x138] sm:$0xff] }
 0x57c   : > { %2048 = vmatpush.msra.mxu1 %v1870_v23  ;;  %v1649_v47 = vadd.f32 %v1645_v13, %v1590_v44  ;;  %v4594_v13 = vld [vmem:[%s4869_s1 + $0x8] sm:$0xff]  ;;  %v2012_v23 = vld [vmem:[#allocation6 + $0x178] sm:$0xff]  ;;  %v2155_v44 = vld [vmem:[#allocation6 + $0x190] sm:$0xff] }
 0x57d   : > { %3775 = vpow2.f32 %v3534_v63  ;;  %v3535_v20 = vmul.f32 -1.442695, %v1514_v32 }
 0x57e   : > { %2049 = vmatpush.msra.mxu1 %v1869_v27  ;;  %v4619_v27 = vld [vmem:[%s4869_s1 + $0x10] sm:$0xff] }
 0x57f   : > { %3777 = vpow2.f32 %v3535_v20 }
 0x580   : > { %2050 = vmatpush.msra.mxu1 %v1868_v37  ;;  %v4626_v37 = vld [vmem:[%s4869_s1 + $0x18] sm:$0xff] }
 0x581   : > { %v1764_v43 = vpop.f32.mrf.mxu0 }
 0x582   : > { %2051 = vmatpush.msra.mxu1 %v1867_v59  ;;  %v2125_v59 = vld [vmem:[#allocation6 + $0xf0] sm:$0xff] }
 0x583   : > { %v3776_v22 = vpop.eup %3775 }
 0x584   : > { %v4539_v40 = vadd.f32 1.0, %v3776_v22 }
 0x585   : > { %v3778_v41 = vpop.eup %3777 }
 0x586   : > { %3779 = vrcp.f32 %v4539_v40  ;;  %v4544_v5 = vadd.f32 1.0, %v3778_v41  ;;  %v1534_v54 = vand.u32 2147483648, %v4539_v40  ;;  %vm1528_vm14 = vweird.f32 %v4539_v40 }
 0x587   : > { %v1532_v18 = vand.u32 2147483647, %v4539_v40 }
 0x588   : > { %3781 = vrcp.f32 %v4544_v5  ;;  %v1535_v60 = vor.u32 1.1754944e-38, %v1534_v54  ;;  %v1549_v39 = vand.u32 2147483648, %v4544_v5  ;;  %vm1543_vm2 = vweird.f32 %v4544_v5  ;;  %v2209_v54 = vld [vmem:[#allocation6 + $0x78] sm:$0xff] }
 0x589   : > { %v1767_v0 = vpop.f32.mrf.mxu0  ;;  %vm1533_vm0 = vcmp.eq.f32.partialorder %v1532_v18, 8.507059e+37  ;;  %v1547_v19 = vand.u32 2147483647, %v4544_v5  ;;  %v2275_v18 = vld [vmem:[#allocation6 + $0x1b8] sm:$0xff] }
 0x58a   : > { %v1550_v24 = vor.u32 1.1754944e-38, %v1549_v39 }
 0x58b   : > { %vm1548_vm6 = vcmp.eq.f32.partialorder %v1547_v19, 8.507059e+37 }
 0x58c   : > { %v3780_v6 = vpop.eup %3779 }
 0x58d   : > { %v1524_v29 = vmul.f32 %v3780_v6, %v4539_v40  ;;  %vm1529_vm13 = vweird.f32 %v3780_v6 }
 0x58e   : > { %v3782_v61 = vpop.eup %3781  ;;  %vm1530_vm15 = vmor %vm1528_vm14, %vm1529_vm13 }
 0x58f   : > { %v1525_v7 = vsub.f32 1.0, %v1524_v29  ;;  %v1539_v17 = vmul.f32 %v3782_v61, %v4544_v5  ;;  %vm1544_vm1 = vweird.f32 %v3782_v61  ;;  %v1897_v29 = vld [vmem:[#allocation6 + $0x30] sm:$0xff] }
 0x590   : > { %vm1545_vm5 = vmor %vm1543_vm2, %vm1544_vm1  ;;  %1918 = vmatpush.msra.mxu0 %v1897_v29 }
 0x591   : > { %v1526_v31 = vmul.f32 %v3780_v6, %v1525_v7  ;;  %v1540_v11 = vsub.f32 1.0, %v1539_v17  ;;  %v1895_v7 = vld [vmem:[#allocation6 + $0x20] sm:$0xff]  ;;  %v2126_v17 = vld [vmem:[#allocation6 + $0xf8] sm:$0xff] }
 0x592   : > { %1919 = vmatpush.msra.mxu0 %v1896_v58 }
 0x593   : > { %v1527_v4 = vadd.f32 %v3780_v6, %v1526_v31  ;;  %v1541_v52 = vmul.f32 %v3782_v61, %v1540_v11  ;;  %v2090_v31 = vld [vmem:[#allocation6 + $0x58] sm:$0xff]  ;;  %v2154_v11 = vld [vmem:[#allocation6 + $0x188] sm:$0xff] }
 0x594   : > { %1920 = vmatpush.msra.mxu0 %v1895_v7  ;;  %v2331_v7 = vld [vmem:[#allocation6 + $0x90] sm:$0xff] }
 0x595   : > { %v1531_v56 = vsel %vm1530_vm15, %v3780_v6, %v1527_v4  ;;  %v1542_v57 = vadd.f32 %v3782_v61, %v1541_v52  ;;  %v1863_v6 = vld [vmem:[#allocation6 + $0xa8] sm:$0xff]  ;;  %v2087_v4 = vld [vmem:[#allocation6 + $0x40] sm:$0xff]  ;;  %v2244_v52 = vld [vmem:[#allocation6 + $0x110] sm:$0xff] }
 0x596   : > { %v1536_v9 = vsel %vm1533_vm0, %v1535_v60, %v1531_v56  ;;  %2025 = vmatpush.msrb.mxu0 %v2012_v23  ;;  %v2274_v56 = vld [vmem:[#allocation6 + $0x1b0] sm:$0xff]  ;;  %v2207_v60 = vld [vmem:[#allocation6 + $0x68] sm:$0xff] }
 0x597   : > { %v1846_v63 = vsub.f32 1.0, %v1536_v9  ;;  %v1844_v20 = vmul.f32 %v1536_v9, %v4327_v36  ;;  %v1546_v40 = vsel %vm1545_vm5, %v3782_v61, %v1542_v57  ;;  %v2011_v61 = vld [vmem:[#allocation6 + $0x170] sm:$0xff]  ;;  %v2273_v9 = vld [vmem:[#allocation6 + $0x1a8] sm:$0xff]  ;;  %v2242_v57 = vld [vmem:[#allocation6 + $0x100] sm:$0xff] }
 0x598   : > { %v1551_v41 = vsel %vm1548_vm6, %v1550_v24, %v1546_v40  ;;  %2026 = vmatpush.msrb.mxu0 %v2011_v61  ;;  %v2397_v23 = vld [vmem:[#allocation6 + $0x1d0] sm:$0xff] }
 0x599   : > { %v1847_v25 = vsub.f32 1.0, %v1551_v41  ;;  %v1845_v26 = vmul.f32 %v1551_v41, %v4331_v38  ;;  %v1864_v38 = vld [vmem:[#allocation6 + $0xb0] sm:$0xff] }
 0x59a   : > { %2027 = vmatpush.msrb.mxu0 %v2010_v35 }
 0x5de   : > { %v1705_v28 = vpop.f32.mrf.mxu2 }
 0x5df   : > { %v1711_v21 = vadd.f32 %v1705_v28, %v1648_v15  ;;  %v1865_v28 = vld [vmem:[#allocation6 + $0xb8] sm:$0xff]  ;;  %v2009_v15 = vld [vmem:[#allocation6 + $0x160] sm:$0xff] }
 0x5e0   : > { %2028 = vmatpush.msrb.mxu0 %v2009_v15  ;;  %v2427_v15 = vld [vmem:[#allocation8 + $0x18] sm:$0xff] }
 0x5e1   : > { %v1770_v45 = vadd.f32 %v1764_v43, %v1711_v21  ;;  %v2156_v43 = vld [vmem:[#allocation6 + $0x198] sm:$0xff] }
 0x5e6   : > { %v1708_v16 = vpop.f32.mrf.mxu2 }
 0x5e7   : > { %v1712_v55 = vadd.f32 %v1708_v16, %v1649_v47  ;;  %v1958_v16 = vld [vmem:[#allocation6 + $0xc0] sm:$0xff] }
 0x5e8   : > { %1977 = vmatpush.msrb.mxu2 %v1958_v16  ;;  %v2153_v47 = vld [vmem:[#allocation6 + $0x180] sm:$0xff]  ;;  %v2367_v16 = vld [vmem:[#allocation6 + $0x130] sm:$0xff] }
 0x5e9   : > { %v1771_v33 = vadd.f32 %v1767_v0, %v1712_v55  ;;  %v2243_v0 = vld [vmem:[#allocation6 + $0x108] sm:$0xff] }
 0x5ee   : > { %v1827_v46 = vpop.f32.mrf.mxu2 }
 0x5ef   : > { %v1833_v42 = vadd.f32 %v1827_v46, %v1770_v45  ;;  %v2088_v45 = vld [vmem:[#allocation6 + $0x48] sm:$0xff]  ;;  %v2123_v46 = vld [vmem:[#allocation6 + $0xe0] sm:$0xff] }
 0x5f1   : > { %v1840_v8 = vadd.f32 %v3763_v62, %v1833_v42  ;;  %v2245_v42 = vld [vmem:[#allocation6 + $0x118] sm:$0xff] }
 0x5f3   : > { %3783 = vtanh.f32 %v1840_v8  ;;  %v2208_v8 = vld [vmem:[#allocation6 + $0x70] sm:$0xff] }
 0x5f6   : > { %v1830_v53 = vpop.f32.mrf.mxu2 }
 0x5f7   : > { %v1834_v30 = vadd.f32 %v1830_v53, %v1771_v33  ;;  %v2206_v33 = vld [vmem:[#allocation6 + $0x60] sm:$0xff] }
 0x5f8   : > { %v2272_v53 = vld [vmem:[#allocation6 + $0x1a0] sm:$0xff] }
 0x5f9   : > { %v3784_v32 = vpop.eup %3783  ;;  %v1841_v1 = vadd.f32 %v3763_v62, %v1834_v30  ;;  %v2124_v62 = vld [vmem:[#allocation6 + $0xe8] sm:$0xff] }
 0x5fa   : > { %v1848_v22 = vmul.f32 %v3784_v32, %v1846_v63 }
 0x5fb   : > { %3785 = vtanh.f32 %v1841_v1 }
 0x5fc   : > { %v4567_v3 = vadd.f32 %v1848_v22, %v1844_v20 }
 0x5fe   : > { %1852 = vst.msk [vmem:[#allocation2] sm:$0xff] %vm1038_vm4, %v4567_v3  ;;  %3559 = vmatmul.msk.f32.vlgmr.msrb.gmra.mxu1 %vm1038_vm4, %v4567_v3 }
 0x5ff   : > { %2169 = vmatpush.msrb.mxu1 %v2156_v43  ;;  %v2426_v43 = vld [vmem:[#allocation8 + $0x10] sm:$0xff] }
 0x601   : > { %v3786_v34 = vpop.eup %3785  ;;  %2170 = vmatpush.msrb.mxu1 %v2155_v44  ;;  %v2395_v44 = vld [vmem:[#allocation6 + $0x1c0] sm:$0xff] }
 0x602   : > { %v1849_v5 = vmul.f32 %v3786_v34, %v1847_v25 }
 0x603   : > { %2171 = vmatpush.msrb.mxu1 %v2154_v11  ;;  %v2424_v11 = vld [vmem:[#allocation8] sm:$0xff] }
 0x604   : > { %v4574_v36 = vadd.f32 %v1849_v5, %v1845_v26 }
 0x605   : > { %2172 = vmatpush.msrb.mxu1 %v2153_v47 }
 0x606   : > { %1853 = vst.msk [vmem:[#allocation2 + $0x8] sm:$0xff] %vm1038_vm4, %v4574_v36  ;;  %1885 = vmatpush.msra.mxu3 %v4574_v36  ;;  %3560 = vmatmul.msk.f32.gmra.mxu1 %vm1038_vm4, %v4574_v36 }
 0x608   : > { %1886 = vmatpush.msra.mxu3 %v4567_v3 }
 0x609   : > { %3555 = vmatmul.msk.f32.vlgmr.msra.gmra.mxu3 %vm457_vm3, %v4585_v48 }
 0x60a   : > { %1997 = vmatpush.msrb.mxu3 %v1865_v28 }
 0x60c   : > { %1998 = vmatpush.msrb.mxu3 %v1864_v38 }
 0x60e   : > { %3567 = vmatmul.msk.f32.vlgmr.msra.gmra.mxu1 %vm1038_vm4, %v4567_v3  ;;  %1999 = vmatpush.msrb.mxu3 %v1863_v6 }
 0x60f   : > { %2288 = vmatpush.msra.mxu1 %v2275_v18 }
 0x610   : > { %2000 = vmatpush.msrb.mxu3 %v1862_v10  ;;  %v2332_v10 = vld [vmem:[#allocation6 + $0x98] sm:$0xff] }
 0x611   : > { %3556 = vmatmul.msk.f32.gmra.mxu3 %vm457_vm3, %v4594_v13  ;;  %2289 = vmatpush.msra.mxu1 %v2274_v56  ;;  %v2462_v56 = vld [vmem:[#allocation8 + $0xb0] sm:$0xff] }
 0x612   : > { %2109 = vmatpush.msra.mxu3 %v2090_v31 }
 0x613   : > { %2290 = vmatpush.msra.mxu1 %v2273_v9 }
 0x614   : > { %2110 = vmatpush.msra.mxu3 %v2089_v51  ;;  %v2329_v51 = vld [vmem:[#allocation6 + $0x80] sm:$0xff] }
 0x615   : > { %2291 = vmatpush.msra.mxu1 %v2272_v53 }
 0x616   : > { %3568 = vmatmul.msk.f32.gmra.mxu1 %vm1038_vm4, %v4574_v36  ;;  %2111 = vmatpush.msra.mxu3 %v2088_v45  ;;  %v2425_v45 = vld [vmem:[#allocation8 + $0x8] sm:$0xff] }
 0x618   : > { %2112 = vmatpush.msra.mxu3 %v2087_v4 }
 0x619   : > { %3563 = vmatmul.msk.f32.vlgmr.msrb.gmra.mxu3 %vm1038_vm4, %v4567_v3 }
 0x61a   : > { %2228 = vmatpush.msrb.mxu3 %v2209_v54 }
 0x61c   : > { %2229 = vmatpush.msrb.mxu3 %v2208_v8  ;;  %v2463_v8 = vld [vmem:[#allocation8 + $0xb8] sm:$0xff] }
 0x61e   : > { %2230 = vmatpush.msrb.mxu3 %v2207_v60 }
 0x620   : > { %2231 = vmatpush.msrb.mxu3 %v2206_v33 }
 0x621   : > { %3564 = vmatmul.msk.f32.gmra.mxu3 %vm1038_vm4, %v4574_v36 }
 0x67b   : > { %v1951_v41 = vpop.f32.mrf.mxu1 }
 0x683   : > { %v1954_v34 = vpop.f32.mrf.mxu1 }
 0x68b   : > { %v2053_v5 = vpop.f32.mrf.mxu1 }
 0x68c   : > { %v1888_v2 = vpop.f32.mrf.mxu3 }
 0x68d   : > { %3557 = vmatmul.msk.f32.vlgmr.msra.gmra.mxu0 %vm1038_vm4, %v1888_v2  ;;  %3561 = vmatmul.msk.f32.vlgmr.msrb.gmra.mxu2 %vm1038_vm4, %v1888_v2 }
 0x68e   : > { %2139 = vmatpush.msra.mxu0 %v2126_v17  ;;  %v2396_v17 = vld [vmem:[#allocation6 + $0x1c8] sm:$0xff] }
 0x690   : > { %2140 = vmatpush.msra.mxu0 %v2125_v59  ;;  %v2365_v59 = vld [vmem:[#allocation6 + $0x120] sm:$0xff] }
 0x692   : > { %2141 = vmatpush.msra.mxu0 %v2124_v62 }
 0x693   : > { %v4652_v6 = vpop.f32.mrf.mxu1 }
 0x694   : > { %v1891_v21 = vpop.f32.mrf.mxu3  ;;  %2142 = vmatpush.msra.mxu0 %v2123_v46  ;;  %v4654_v46 = vld [vmem:[#allocation2 + $0x10] sm:$0xff] }
 0x695   : > { %3558 = vmatmul.msk.f32.gmra.mxu0 %vm1038_vm4, %v1891_v21  ;;  %3562 = vmatmul.msk.f32.gmra.mxu2 %vm1038_vm4, %v1891_v21 }
 0x696   : > { %2073 = vmatpush.msra.mxu2 %v1891_v21 }
 0x698   : > { %2074 = vmatpush.msra.mxu2 %v1888_v2 }
 0x69a   : > { %2196 = vmatpush.msrb.mxu2 %v4574_v36 }
 0x69c   : > { %2197 = vmatpush.msrb.mxu2 %v4567_v3  ;;  %v2002_v28 = vpop.f32.mrf.mxu3 }
 0x69d   : > { %3565 = vmatmul.msk.f32.vlgmr.msrb.gmra.mxu0 %vm1038_vm4, %v1888_v2  ;;  %3569 = vmatmul.msk.f32.vlgmr.msra.gmra.mxu2 %vm457_vm3, %v4585_v48  ;;  %v2330_v2 = vld [vmem:[#allocation6 + $0x88] sm:$0xff] }
 0x69e   : > { %2258 = vmatpush.msrb.mxu0 %v2245_v42 }
 0x6a0   : > { %2259 = vmatpush.msrb.mxu0 %v2244_v52  ;;  %v4663_v52 = vld [vmem:[#allocation2 + $0x18] sm:$0xff] }
 0x6a2   : > { %2260 = vmatpush.msrb.mxu0 %v2243_v0  ;;  %v2461_v0 = vld [vmem:[#allocation8 + $0xa8] sm:$0xff] }
 0x6a4   : > { %2261 = vmatpush.msrb.mxu0 %v2242_v57  ;;  %v2005_v29 = vpop.f32.mrf.mxu3  ;;  %v2460_v57 = vld [vmem:[#allocation8 + $0xa0] sm:$0xff] }
 0x6a5   : > { %3566 = vmatmul.msk.f32.gmra.mxu0 %vm1038_vm4, %v1891_v21  ;;  %3570 = vmatmul.msk.f32.gmra.mxu2 %vm457_vm3, %v4594_v13  ;;  %v2366_v21 = vld [vmem:[#allocation6 + $0x128] sm:$0xff] }
 0x6ad   : > { %3577 = vmatmul.msk.f32.vlgmr.msrb.gmra.mxu2 %vm457_vm3, %v4619_v27 }
 0x6b5   : > { %3578 = vmatmul.msk.f32.gmra.mxu2 %vm457_vm3, %v4626_v37 }
 0x70a   : > { %v1922_v24 = vpop.f32.mrf.mxu0 }
 0x70b   : > { %v1952_v62 = vadd.f32 %v1951_v41, %v1922_v24 }
 0x710   : > { %v1979_v55 = vpop.f32.mrf.mxu2 }
 0x711   : > { %v2003_v50 = vadd.f32 %v2002_v28, %v1979_v55  ;;  %v2513_v28 = vld [vmem:[#allocation8 + $0x20] sm:$0xff] }
 0x712   : > { %v1925_v25 = vpop.f32.mrf.mxu0 }
 0x713   : > { %v1955_v60 = vadd.f32 %v1954_v34, %v1925_v25  ;;  %v2515_v25 = vld [vmem:[#allocation8 + $0x30] sm:$0xff] }
 0x714   : > { %v2551_v34 = vld [vmem:[#allocation8 + $0xd0] sm:$0xff] }
 0x718   : > { %v4630_v39 = vpop.f32.mrf.mxu2 }
 0x719   : > { %v2006_v47 = vadd.f32 %v2005_v29, %v4630_v39 }
 0x71a   : > { %v2030_v26 = vpop.f32.mrf.mxu0 }
 0x71b   : > { %v2054_v58 = vadd.f32 %v2053_v5, %v2030_v26  ;;  %v2514_v26 = vld [vmem:[#allocation8 + $0x28] sm:$0xff] }
 0x71c   : > { %v2550_v5 = vld [vmem:[#allocation8 + $0xc8] sm:$0xff] }
 0x720   : > { %v2076_v30 = vpop.f32.mrf.mxu2 }
 0x721   : > { %v2082_v63 = vmul.f32 2.0, %v2076_v30 }
 0x722   : > { %v4650_v38 = vpop.f32.mrf.mxu0 }
 0x723   : > { %v2084_v19 = vsub.f32 %v2082_v63, %v4567_v3 }
 0x725   : > { %3571 = vmatmul.msk.f32.vlgmr.msra.gmra.mxu3 %vm1038_vm4, %v2084_v19  ;;  %3573 = vmatmul.msk.f32.vlgmr.msra.gmra.mxu0 %vm1038_vm4, %v2084_v19 }
 0x726   : > { %3575 = vmatmul.msk.f32.vlgmr.msrb.gmra.mxu1 %vm1038_vm4, %v2084_v19  ;;  %2351 = vmatpush.msra.mxu3 %v2332_v10  ;;  %v2549_v10 = vld [vmem:[#allocation8 + $0xc0] sm:$0xff] }
 0x727   : > { %2381 = vmatpush.msra.mxu0 %v2368_v12  ;;  %2411 = vmatpush.msrb.mxu1 %v2398_v14 }
 0x728   : > { %v2079_v32 = vpop.f32.mrf.mxu2  ;;  %2352 = vmatpush.msra.mxu3 %v2331_v7 }
 0x729   : > { %v2083_v1 = vmul.f32 2.0, %v2079_v32  ;;  %2382 = vmatpush.msra.mxu0 %v2367_v16  ;;  %2412 = vmatpush.msrb.mxu1 %v2397_v23 }
 0x72a   : > { %2353 = vmatpush.msra.mxu3 %v2330_v2 }
 0x72b   : > { %v2085_v20 = vsub.f32 %v2083_v1, %v4574_v36  ;;  %2383 = vmatpush.msra.mxu0 %v2366_v21  ;;  %2413 = vmatpush.msrb.mxu1 %v2396_v17 }
 0x72c   : > { %2354 = vmatpush.msra.mxu3 %v2329_v51 }
 0x72d   : > { %3572 = vmatmul.msk.f32.gmra.mxu3 %vm1038_vm4, %v2085_v20  ;;  %3574 = vmatmul.msk.f32.gmra.mxu0 %vm1038_vm4, %v2085_v20 }
 0x72e   : > { %3576 = vmatmul.msk.f32.gmra.mxu1 %vm1038_vm4, %v2085_v20  ;;  %2384 = vmatpush.msra.mxu0 %v2365_v59 }
 0x72f   : > { %2414 = vmatpush.msrb.mxu1 %v2395_v44 }
 0x730   : > { %v2199_v22 = vpop.f32.mrf.mxu2 }
 0x735   : > { %3579 = vmatmul.msk.f32.vlgmr.msrb.gmra.mxu3 %vm1038_vm4, %v2199_v22  ;;  %3581 = vmatmul.msk.f32.vlgmr.msrb.gmra.mxu0 %vm1038_vm4, %v2199_v22 }
 0x736   : > { %3583 = vmatmul.msk.f32.vlgmr.msra.gmra.mxu1 %vm1038_vm4, %v2199_v22  ;;  %2476 = vmatpush.msrb.mxu3 %v2463_v8  ;;  %v2643_v8 = vld [vmem:[#allocation8 + $0xe8] sm:$0xff] }
 0x737   : > { %2503 = vmatpush.msrb.mxu0 %v4663_v52 }
 0x738   : > { %v2202_v40 = vpop.f32.mrf.mxu2  ;;  %2477 = vmatpush.msrb.mxu3 %v2462_v56  ;;  %v2696_v56 = vld [vmem:[#allocation8 + $0x68] sm:$0xff] }
 0x739   : > { %2315 = vmatpush.msra.mxu2 %v2202_v40  ;;  %2504 = vmatpush.msrb.mxu0 %v4654_v46 }
 0x73a   : > { %2478 = vmatpush.msrb.mxu3 %v2461_v0  ;;  %v2642_v0 = vld [vmem:[#allocation8 + $0xe0] sm:$0xff] }
 0x73b   : > { %2316 = vmatpush.msra.mxu2 %v2199_v22 }
 0x73c   : > { %3585 = vmatmul.msk.f32.vlgmr.msra.gmra.mxu2 %vm457_vm3, %v4619_v27  ;;  %2479 = vmatpush.msrb.mxu3 %v2460_v57 }
 0x73d   : > { %3580 = vmatmul.msk.f32.gmra.mxu3 %vm1038_vm4, %v2202_v40  ;;  %3582 = vmatmul.msk.f32.gmra.mxu0 %vm1038_vm4, %v2202_v40 }
 0x73e   : > { %3584 = vmatmul.msk.f32.gmra.mxu1 %vm1038_vm4, %v2202_v40  ;;  %2446 = vmatpush.msrb.mxu2 %v2427_v15 }
 0x740   : > { %2447 = vmatpush.msrb.mxu2 %v2426_v43 }
 0x742   : > { %2448 = vmatpush.msrb.mxu2 %v2425_v45 }
 0x744   : > { %3586 = vmatmul.msk.f32.gmra.mxu2 %vm457_vm3, %v4626_v37 }
 0x745   : > { %2449 = vmatpush.msrb.mxu2 %v2424_v11  ;;  %v2645_v11 = vld [vmem:[#allocation8 + $0xf8] sm:$0xff] }
 0x74c   : > { %3593 = vmatmul.msk.f32.vlgmr.msrb.gmra.mxu2 %vm1038_vm4, %v4654_v46 }
 0x754   : > { %3594 = vmatmul.msk.f32.gmra.mxu2 %vm1038_vm4, %v4663_v52 }
 0x7a2   : > { %v2144_v49 = vpop.f32.mrf.mxu0 }
 0x7a3   : > { %v2150_v61 = vadd.f32 %v2144_v49, %v2003_v50  ;;  %v2174_v35 = vpop.f32.mrf.mxu1 }
 0x7a4   : > { %v2180_v31 = vadd.f32 %v2174_v35, %v2054_v58 }
 0x7a8   : > { %v2114_v4 = vpop.f32.mrf.mxu3 }
 0x7a9   : > { %v2120_v54 = vadd.f32 %v2114_v4, %v1952_v62  ;;  %v2609_v62 = vld [vmem:[#allocation8 + $0x58] sm:$0xff] }
 0x7aa   : > { %v2147_v42 = vpop.f32.mrf.mxu0  ;;  %v2698_v4 = vld [vmem:[#allocation8 + $0x78] sm:$0xff] }
 0x7ab   : > { %v4657_v18 = vadd.f32 %v2147_v42, %v2006_v47  ;;  %v4659_v55 = vpop.f32.mrf.mxu1  ;;  %v2608_v47 = vld [vmem:[#allocation8 + $0x50] sm:$0xff] }
 0x7ac   : > { %v2697_v42 = vld [vmem:[#allocation8 + $0x70] sm:$0xff] }
 0x7b0   : > { %v2117_v9 = vpop.f32.mrf.mxu3 }
 0x7b1   : > { %v2121_v33 = vadd.f32 %v2117_v9, %v1955_v60  ;;  %v2606_v60 = vld [vmem:[#allocation8 + $0x40] sm:$0xff] }
 0x7b2   : > { %v2263_v53 = vpop.f32.mrf.mxu0  ;;  %v2695_v9 = vld [vmem:[#allocation8 + $0x60] sm:$0xff] }
 0x7b3   : > { %v2269_v39 = vadd.f32 %v2263_v53, %v2150_v61  ;;  %v2293_v30 = vpop.f32.mrf.mxu1 }
 0x7b4   : > { %v2299_v63 = vadd.f32 %v2293_v30, %v2180_v31  ;;  %v2733_v30 = vld [vmem:[#allocation8 + $0x110] sm:$0xff] }
 0x7b8   : > { %v2233_v19 = vpop.f32.mrf.mxu3 }
 0x7b9   : > { %v2239_v32 = vadd.f32 %v2233_v19, %v2120_v54  ;;  %v2644_v54 = vld [vmem:[#allocation8 + $0xf0] sm:$0xff]  ;;  %v2732_v19 = vld [vmem:[#allocation8 + $0x108] sm:$0xff] }
 0x7ba   : > { %v2266_v12 = vpop.f32.mrf.mxu0 }
 0x7bb   : > { %v4687_v14 = vpop.f32.mrf.mxu1  ;;  %v2270_v61 = vadd.f32 %v2266_v12, %v4657_v18  ;;  %v2607_v18 = vld [vmem:[#allocation8 + $0x48] sm:$0xff]  ;;  %v2791_v12 = vld [vmem:[#allocation8 + $0x98] sm:$0xff] }
 0x7bf   : > { %v2318_v1 = vpop.f32.mrf.mxu2 }
 0x7c0   : > { %v2324_v20 = vmul.f32 2.0, %v2318_v1  ;;  %v2236_v29 = vpop.f32.mrf.mxu3 }
 0x7c1   : > { %v2240_v31 = vadd.f32 %v2236_v29, %v2121_v33  ;;  %v2827_v29 = vld [vmem:[#allocation8 + $0x138] sm:$0xff] }
 0x7c2   : > { %v2326_v22 = vsub.f32 %v2324_v20, %v4567_v3  ;;  %v2516_v3 = vld [vmem:[#allocation8 + $0x38] sm:$0xff] }
 0x7c3   : > { %2535 = vmatpush.msra.mxu1 %v2516_v3 }
 0x7c4   : > { %3587 = vmatmul.msk.f32.vlgmr.msra.gmra.mxu3 %vm1038_vm4, %v2326_v22  ;;  %3589 = vmatmul.msk.f32.vlgmr.msra.gmra.mxu0 %vm1038_vm4, %v2326_v22 }
 0x7c5   : > { %3591 = vmatmul.msk.f32.vlgmr.msrb.gmra.mxu1 %vm1038_vm4, %v2326_v22  ;;  %2628 = vmatpush.msra.mxu0 %v2609_v62 }
 0x7c6   : > { %2536 = vmatpush.msra.mxu1 %v2515_v25 }
 0x7c7   : > { %v2321_v40 = vpop.f32.mrf.mxu2  ;;  %2629 = vmatpush.msra.mxu0 %v2608_v47 }
 0x7c8   : > { %v2325_v24 = vmul.f32 2.0, %v2321_v40  ;;  %2537 = vmatpush.msra.mxu1 %v2514_v26 }
 0x7c9   : > { %2630 = vmatpush.msra.mxu0 %v2607_v18 }
 0x7ca   : > { %v2327_v41 = vsub.f32 %v2325_v24, %v4574_v36  ;;  %v2552_v36 = vld [vmem:[#allocation8 + $0xd8] sm:$0xff]  ;;  %2538 = vmatpush.msra.mxu1 %v2513_v28 }
 0x7cb   : > { %2565 = vmatpush.msra.mxu2 %v2552_v36  ;;  %2631 = vmatpush.msra.mxu0 %v2606_v60 }
 0x7cc   : > { %3588 = vmatmul.msk.f32.gmra.mxu3 %vm1038_vm4, %v2327_v41  ;;  %3590 = vmatmul.msk.f32.gmra.mxu0 %vm1038_vm4, %v2327_v41 }
 0x7cd   : > { %3592 = vmatmul.msk.f32.gmra.mxu1 %vm1038_vm4, %v2327_v41  ;;  %2566 = vmatpush.msra.mxu2 %v2551_v34 }
 0x7ce   : > { %2658 = vmatpush.msrb.mxu1 %v2645_v11 }
 0x7cf   : > { %2567 = vmatpush.msra.mxu2 %v2550_v5  ;;  %v2451_v23 = vpop.f32.mrf.mxu2 }
 0x7d0   : > { %2659 = vmatpush.msrb.mxu1 %v2644_v54 }
 0x7d1   : > { %2568 = vmatpush.msra.mxu2 %v2549_v10 }
 0x7d2   : > { %2660 = vmatpush.msrb.mxu1 %v2643_v8  ;;  %v2948_v8 = vld [vmem:[#allocation8 + $0x158] sm:$0xff] }
 0x7d3   : > { %2685 = vmatpush.msrb.mxu2 %v4663_v52 }
 0x7d4   : > { %3595 = vmatmul.msk.f32.vlgmr.msrb.gmra.mxu3 %vm1038_vm4, %v4654_v46  ;;  %3597 = vmatmul.msk.f32.vlgmr.msrb.gmra.mxu0 %vm457_vm3, %v4585_v48 }
 0x7d5   : > { %2686 = vmatpush.msrb.mxu2 %v4654_v46  ;;  %2661 = vmatpush.msrb.mxu1 %v2642_v0  ;;  %v3764_v0 = vld [vmem:[%s4875_s7] ss:$0 sm:$0xff] }
 0x7d7   : > { %v4708_v57 = vpop.f32.mrf.mxu2 }
 0x7dc   : > { %3596 = vmatmul.msk.f32.gmra.mxu3 %vm1038_vm4, %v4663_v52  ;;  %3598 = vmatmul.msk.f32.gmra.mxu0 %vm457_vm3, %v4594_v13 }
 0x841   : > { %v2386_v50 = vpop.f32.mrf.mxu0 }
 0x842   : > { %v2392_v58 = vadd.f32 %v2386_v50, %v2269_v39  ;;  %v2416_v49 = vpop.f32.mrf.mxu1  ;;  %v2734_v39 = vld [vmem:[#allocation8 + $0x118] sm:$0xff]  ;;  %v2790_v50 = vld [vmem:[#allocation8 + $0x90] sm:$0xff] }
 0x843   : > { %v4689_v7 = vadd.f32 %v2416_v49, %v2299_v63  ;;  %2747 = vmatpush.msrb.mxu0 %v2734_v39  ;;  %v2789_v49 = vld [vmem:[#allocation8 + $0x88] sm:$0xff]  ;;  %v2947_v39 = vld [vmem:[#allocation8 + $0x150] sm:$0xff] }
 0x845   : > { %2748 = vmatpush.msrb.mxu0 %v2733_v30 }
 0x847   : > { %v2356_v16 = vpop.f32.mrf.mxu3  ;;  %2749 = vmatpush.msrb.mxu0 %v2732_v19 }
 0x848   : > { %v2362_v35 = vadd.f32 %v2356_v16, %v2239_v32  ;;  %v2731_v32 = vld [vmem:[#allocation8 + $0x100] sm:$0xff]  ;;  %v2825_v16 = vld [vmem:[#allocation8 + $0x128] sm:$0xff] }
 0x849   : > { %v2389_v15 = vpop.f32.mrf.mxu0  ;;  %2750 = vmatpush.msrb.mxu0 %v2731_v32 }
 0x84a   : > { %v2393_v2 = vadd.f32 %v2389_v15, %v2270_v61  ;;  %v2457_v21 = vadd.f32 %v2451_v23, %v2362_v35  ;;  %v4706_v33 = vpop.f32.mrf.mxu1  ;;  %v2788_v23 = vld [vmem:[#allocation8 + $0x80] sm:$0xff] }
 0x84b   : > { %v2824_v61 = vld [vmem:[#allocation8 + $0x120] sm:$0xff] }
 0x84f   : > { %v2359_v17 = vpop.f32.mrf.mxu3 }
 0x850   : > { %v4692_v43 = vadd.f32 %v2359_v17, %v2240_v31 }
 0x851   : > { %v2506_v51 = vpop.f32.mrf.mxu0 }
 0x852   : > { %3599 = vmatmul.msk.f32.vlgmr.msra.gmra.mxu1 %vm1038_vm4, %v2506_v51  ;;  %3601 = vmatmul.msk.f32.vlgmr.msra.gmra.mxu2 %vm1038_vm4, %v2506_v51  ;;  %v2458_v30 = vadd.f32 %v4708_v57, %v4692_v43 }
 0x853   : > { %2810 = vmatpush.msra.mxu2 %v2791_v12 }
 0x855   : > { %2811 = vmatpush.msra.mxu2 %v2790_v50 }
 0x857   : > { %v2481_v59 = vpop.f32.mrf.mxu3  ;;  %2812 = vmatpush.msra.mxu2 %v2789_v49 }
 0x858   : > { %v2487_v44 = vadd.f32 %v2481_v59, %v2392_v58  ;;  %v2826_v58 = vld [vmem:[#allocation8 + $0x130] sm:$0xff] }
 0x859   : > { %v2509_v45 = vpop.f32.mrf.mxu0  ;;  %2813 = vmatpush.msra.mxu2 %v2788_v23 }
 0x85a   : > { %3600 = vmatmul.msk.f32.gmra.mxu1 %vm1038_vm4, %v2509_v45  ;;  %3602 = vmatmul.msk.f32.gmra.mxu2 %vm1038_vm4, %v2509_v45 }
 0x85b   : > { %2592 = vmatpush.msra.mxu3 %v2509_v45 }
 0x85d   : > { %2593 = vmatpush.msra.mxu3 %v2506_v51 }
 0x85e   : > { %3603 = vmatmul.msk.f32.vlgmr.msra.gmra.mxu3 %vm457_vm3, %v4585_v48 }
 0x85f   : > { %2717 = vmatpush.msrb.mxu3 %v2698_v4  ;;  %v2484_v22 = vpop.f32.mrf.mxu3 }
 0x860   : > { %v2488_v40 = vadd.f32 %v2484_v22, %v2393_v2  ;;  %v2945_v22 = vld [vmem:[#allocation8 + $0x140] sm:$0xff] }
 0x861   : > { %2718 = vmatpush.msrb.mxu3 %v2697_v42 }
 0x862   : > { %3609 = vmatmul.msk.f32.vlgmr.msrb.gmra.mxu2 %vm457_vm3, %v4619_v27 }
 0x863   : > { %2719 = vmatpush.msrb.mxu3 %v2696_v56 }
 0x865   : > { %2720 = vmatpush.msrb.mxu3 %v2695_v9 }
 0x866   : > { %3604 = vmatmul.msk.f32.gmra.mxu3 %vm457_vm3, %v4594_v13 }
 0x867   : > { %2840 = vmatpush.msra.mxu3 %v2827_v29 }
 0x869   : > { %2841 = vmatpush.msra.mxu3 %v2826_v58 }
 0x86a   : > { %3610 = vmatmul.msk.f32.gmra.mxu2 %vm457_vm3, %v4626_v37 }
 0x86b   : > { %2842 = vmatpush.msra.mxu3 %v2825_v16 }
 0x86d   : > { %2843 = vmatpush.msra.mxu3 %v2824_v61 }
 0x8cf   : > { %v2540_v53 = vpop.f32.mrf.mxu1 }
 0x8d0   : > { %v4710_v63 = vadd.f32 %v2540_v53, %v2457_v21 }
 0x8d5   : > { %v2570_v1 = vpop.f32.mrf.mxu2 }
 0x8d6   : > { %v2576_v20 = vadd.f32 %v2570_v1, %v2487_v44  ;;  %v2946_v1 = vld [vmem:[#allocation8 + $0x148] sm:$0xff] }
 0x8d7   : > { %v2543_v35 = vpop.f32.mrf.mxu1 }
 0x8dd   : > { %v2573_v24 = vpop.f32.mrf.mxu2 }
 0x8de   : > { %v2577_v41 = vadd.f32 %v2573_v24, %v2488_v40 }
 0x8e1   : > { %v2595_v3 = vpop.f32.mrf.mxu3 }
 0x8e2   : > { %v2601_v36 = vmul.f32 2.0, %v2595_v3 }
 0x8e4   : > { %v2603_v25 = vsub.f32 %v2601_v36, %v4654_v46 }
 0x8e5   : > { %v2688_v34 = vpop.f32.mrf.mxu2 }
 0x8e6   : > { %3605 = vmatmul.msk.f32.vlgmr.msra.gmra.mxu0 %vm1038_vm4, %v2603_v25  ;;  %3607 = vmatmul.msk.f32.vlgmr.msrb.gmra.mxu1 %vm1038_vm4, %v2603_v25 }
 0x8e7   : > { %3611 = vmatmul.msk.f32.vlgmr.msrb.gmra.mxu3 %vm1038_vm4, %v2688_v34  ;;  %2967 = vmatpush.msra.mxu0 %v2948_v8  ;;  %v3129_v8 = vld [vmem:[#allocation8 + $0x1b8] sm:$0xff] }
 0x8e9   : > { %v2598_v26 = vpop.f32.mrf.mxu3  ;;  %2968 = vmatpush.msra.mxu0 %v2947_v39 }
 0x8ea   : > { %v2602_v5 = vmul.f32 2.0, %v2598_v26 }
 0x8eb   : > { %2969 = vmatpush.msra.mxu0 %v2946_v1  ;;  %v3068_v1 = vld [vmem:[#allocation8 + $0x188] sm:$0xff] }
 0x8ec   : > { %v2604_v28 = vsub.f32 %v2602_v5, %v4663_v52 }
 0x8ed   : > { %v2691_v10 = vpop.f32.mrf.mxu2  ;;  %2970 = vmatpush.msra.mxu0 %v2945_v22  ;;  %v3190_v22 = vld [vmem:[#allocation8 + $0x1c8] sm:$0xff] }
 0x8ee   : > { %3606 = vmatmul.msk.f32.gmra.mxu0 %vm1038_vm4, %v2604_v28  ;;  %3608 = vmatmul.msk.f32.gmra.mxu1 %vm1038_vm4, %v2604_v28 }
 0x8ef   : > { %3612 = vmatmul.msk.f32.gmra.mxu3 %vm1038_vm4, %v2691_v10  ;;  %2774 = vmatpush.msra.mxu1 %v2691_v10 }
 0x8f1   : > { %2775 = vmatpush.msra.mxu1 %v2688_v34 }
 0x8f6   : > { %3613 = vmatmul.msk.f32.vlgmr.msrb.gmra.mxu0 %vm1038_vm4, %v2688_v34  ;;  %3615 = vmatmul.msk.f32.vlgmr.msra.gmra.mxu1 %vm457_vm3, %v4619_v27 }
 0x8fe   : > { %3614 = vmatmul.msk.f32.gmra.mxu0 %vm1038_vm4, %v2691_v10  ;;  %3616 = vmatmul.msk.f32.gmra.mxu1 %vm457_vm3, %v4626_v37 }
 0x963   : > { %v2663_v15 = vpop.f32.mrf.mxu1  ;;  %v2633_v11 = vpop.f32.mrf.mxu0 }
 0x964   : > { %v2669_v2 = vadd.f32 %v2663_v15, %v2576_v20  ;;  %v2639_v18 = vadd.f32 %v2633_v11, %v4710_v63  ;;  %v2547_v63 = vadd.f32 %v2543_v35, %v2458_v30 }
 0x96a   : > { %v2722_v4 = vpop.f32.mrf.mxu3 }
 0x96b   : > { %v2666_v21 = vpop.f32.mrf.mxu1  ;;  %v2636_v47 = vpop.f32.mrf.mxu0  ;;  %v2728_v56 = vadd.f32 %v2722_v4, %v2639_v18  ;;  %v3004_v18 = vld [vmem:[#allocation8 + $0x160] sm:$0xff] }
 0x96c   : > { %v4726_v31 = vadd.f32 %v2666_v21, %v2577_v41  ;;  %v2640_v40 = vadd.f32 %v2636_v47, %v2547_v63  ;;  %v3007_v47 = vld [vmem:[#allocation8 + $0x178] sm:$0xff]  ;;  %v3067_v63 = vld [vmem:[#allocation8 + $0x180] sm:$0xff] }
 0x96d   : > { %3026 = vmatpush.msrb.mxu2 %v3007_v47 }
 0x972   : > { %v2725_v54 = vpop.f32.mrf.mxu3 }
 0x973   : > { %v2777_v17 = vpop.f32.mrf.mxu1  ;;  %v2752_v42 = vpop.f32.mrf.mxu0  ;;  %v2729_v41 = vadd.f32 %v2725_v54, %v2640_v40  ;;  %v3006_v54 = vld [vmem:[#allocation8 + $0x170] sm:$0xff]  ;;  %v3189_v40 = vld [vmem:[#allocation8 + $0x1c0] sm:$0xff] }
 0x974   : > { %v2783_v51 = vmul.f32 2.0, %v2777_v17  ;;  %v2758_v60 = vadd.f32 %v2752_v42, %v2669_v2  ;;  %3027 = vmatpush.msrb.mxu2 %v3006_v54  ;;  %v3005_v42 = vld [vmem:[#allocation8 + $0x168] sm:$0xff] }
 0x976   : > { %v2785_v59 = vsub.f32 %v2783_v51, %v4654_v46  ;;  %3028 = vmatpush.msrb.mxu2 %v3005_v42 }
 0x978   : > { %3617 = vmatmul.msk.f32.vlgmr.msra.gmra.mxu2 %vm1038_vm4, %v2785_v59  ;;  %3619 = vmatmul.msk.f32.vlgmr.msra.gmra.mxu3 %vm1038_vm4, %v2785_v59 }
 0x979   : > { %3029 = vmatpush.msrb.mxu2 %v3004_v18 }
 0x97b   : > { %v2780_v44 = vpop.f32.mrf.mxu1  ;;  %3148 = vmatpush.msra.mxu2 %v3129_v8 }
 0x97c   : > { %v2784_v45 = vmul.f32 2.0, %v2780_v44 }
 0x97e   : > { %v2786_v62 = vsub.f32 %v2784_v45, %v4663_v52 }
 0x980   : > { %3618 = vmatmul.msk.f32.gmra.mxu2 %vm1038_vm4, %v2786_v62  ;;  %3620 = vmatmul.msk.f32.gmra.mxu3 %vm1038_vm4, %v2786_v62 }
 0x9fb   : > { %v2815_v9 = vpop.f32.mrf.mxu2  ;;  %v2845_v53 = vpop.f32.mrf.mxu3 }
 0x9fc   : > { %v2821_v19 = vadd.f32 %v2815_v9, %v2728_v56  ;;  %v4740_v32 = vadd.f32 %v2845_v53, %v2758_v60  ;;  %v3128_v56 = vld [vmem:[#allocation8 + $0x1b0] sm:$0xff]  ;;  %v3127_v60 = vld [vmem:[#allocation8 + $0x1a8] sm:$0xff] }
 0x9fd   : > { %3149 = vmatpush.msra.mxu2 %v3128_v56 }
 0x9fe   : > { %v2857_v20 = vadd.f32 %v3764_v0, %v2821_v19  ;;  %v3070_v19 = vld [vmem:[#allocation8 + $0x198] sm:$0xff] }
 0x9ff   : > { %3150 = vmatpush.msra.mxu2 %v3127_v60  ;;  %3089 = vmatpush.msrb.mxu0 %v3070_v19 }
 0xa00   : > { %v3621_v24 = vmul.f32 -1.442695, %v2857_v20  ;;  %v3191_v20 = vld [vmem:[#allocation8 + $0x1d0] sm:$0xff] }
 0xa02   : > { %3787 = vpow2.f32 %v3621_v24 }
 0xa03   : > { %v2818_v3 = vpop.f32.mrf.mxu2 }
 0xa04   : > { %v2822_v36 = vadd.f32 %v2818_v3, %v2729_v41 }
 0xa06   : > { %v2858_v25 = vadd.f32 %v3764_v0, %v2822_v36  ;;  %v3126_v0 = vld [vmem:[#allocation8 + $0x1a0] sm:$0xff] }
 0xa07   : > { %3151 = vmatpush.msra.mxu2 %v3126_v0 }
 0xa08   : > { %v3788_v34 = vpop.eup %3787  ;;  %v3622_v26 = vmul.f32 -1.442695, %v2858_v25 }
 0xa09   : > { %v2865_v43 = vadd.f32 1.0, %v3788_v34 }
 0xa0a   : > { %3789 = vpow2.f32 %v3622_v26 }
 0xa0b   : > { %3791 = vrcp.f32 %v2865_v43  ;;  %v2878_v29 = vand.u32 2147483648, %v2865_v43  ;;  %v2876_v58 = vand.u32 2147483647, %v2865_v43  ;;  %vm2872_vm8 = vweird.f32 %v2865_v43 }
 0xa0d   : > { %v2879_v23 = vor.u32 1.1754944e-38, %v2878_v29  ;;  %vm2877_vm10 = vcmp.eq.f32.partialorder %v2876_v58, 8.507059e+37 }
 0xa10   : > { %v3790_v57 = vpop.eup %3789 }
 0xa11   : > { %v3792_v5 = vpop.eup %3791  ;;  %v2866_v28 = vadd.f32 1.0, %v3790_v57 }
 0xa12   : > { %v2868_v10 = vmul.f32 %v3792_v5, %v2865_v43  ;;  %vm2873_vm7 = vweird.f32 %v3792_v5 }
 0xa13   : > { %3793 = vrcp.f32 %v2866_v28  ;;  %vm2874_vm9 = vmor %vm2872_vm8, %vm2873_vm7  ;;  %v2893_v17 = vand.u32 2147483648, %v2866_v28  ;;  %v2891_v59 = vand.u32 2147483647, %v2866_v28  ;;  %vm2887_vm12 = vweird.f32 %v2866_v28 }
 0xa14   : > { %v2869_v12 = vsub.f32 1.0, %v2868_v10  ;;  %v3765_v10 = vld [vmem:[%s4875_s7 + $0x1] ss:$0 sm:$0xff] }
 0xa15   : > { %v2894_v45 = vor.u32 1.1754944e-38, %v2893_v17  ;;  %vm2892_vm14 = vcmp.eq.f32.partialorder %v2891_v59, 8.507059e+37  ;;  %v2902_v29 = vadd.f32 %v3765_v10, %v4740_v32 }
 0xa16   : > { %v2870_v50 = vmul.f32 %v3792_v5, %v2869_v12  ;;  %v2755_v12 = vpop.f32.mrf.mxu0 }
 0xa17   : > { %v3624_v58 = vmul.f32 -1.442695, %v2902_v29 }
 0xa18   : > { %v2871_v49 = vadd.f32 %v3792_v5, %v2870_v50  ;;  %v2759_v50 = vadd.f32 %v2755_v12, %v4726_v31  ;;  %v2057_v31 = vadd.f32 %v4652_v6, %v4650_v38  ;;  %v3766_v38 = vld [vmem:[%s4875_s7 + $0x2] ss:$0 sm:$0xff] }
 0xa19   : > { %v3794_v16 = vpop.eup %3793  ;;  %3795 = vpow2.f32 %v3624_v58 }
 0xa1a   : > { %v2883_v61 = vmul.f32 %v3794_v16, %v2866_v28  ;;  %v2875_v35 = vsel %vm2874_vm9, %v3792_v5, %v2871_v49  ;;  %vm2888_vm11 = vweird.f32 %v3794_v16  ;;  %v2181_v54 = vadd.f32 %v4659_v55, %v2057_v31 }
 0xa1b   : > { %v2880_v15 = vsel %vm2877_vm10, %v2879_v23, %v2875_v35  ;;  %vm2889_vm13 = vmor %vm2887_vm12, %vm2888_vm11 }
 0xa1c   : > { %v2884_v2 = vsub.f32 1.0, %v2883_v61  ;;  %v4743_v21 = vmul.f32 %v2880_v15, %v4654_v46  ;;  %v2300_v18 = vadd.f32 %v4687_v14, %v2181_v54 }
 0xa1e   : > { %v2885_v51 = vmul.f32 %v3794_v16, %v2884_v2  ;;  %3626 = vmatmul.msk.f32.vlgmr.msra.gmra.mxu0 %vm1038_vm4, %v4743_v21 }
 0xa1f   : > { %v3796_v35 = vpop.eup %3795 }
 0xa20   : > { %v2886_v44 = vadd.f32 %v3794_v16, %v2885_v51  ;;  %v2910_v15 = vadd.f32 1.0, %v3796_v35 }
 0xa22   : > { %v2890_v62 = vsel %vm2889_vm13, %v3794_v16, %v2886_v44  ;;  %v2923_v55 = vand.u32 2147483648, %v2910_v15  ;;  %vm2917_vm15 = vweird.f32 %v2910_v15  ;;  %v2921_v14 = vand.u32 2147483647, %v2910_v15 }
 0xa23   : > { %v2895_v11 = vsel %vm2892_vm14, %v2894_v45, %v2890_v62 }
 0xa24   : > { %v4748_v4 = vmul.f32 %v2895_v11, %v4663_v52  ;;  %vm2922_vm1 = vcmp.eq.f32.partialorder %v2921_v14, 8.507059e+37 }
 0xa26   : > { %3627 = vmatmul.msk.f32.gmra.mxu0 %vm1038_vm4, %v4748_v4  ;;  %2994 = vmatpush.msrb.mxu1 %v4748_v4 }
 0xa28   : > { %2995 = vmatpush.msrb.mxu1 %v4743_v21 }
 0xa29   : > { %3628 = vmatmul.msk.f32.vlgmr.msrb.gmra.mxu1 %vm457_vm3, %v4585_v48 }
 0xa2a   : > { %3116 = vmatpush.msra.mxu1 %v4748_v4 }
 0xa2c   : > { %3117 = vmatpush.msra.mxu1 %v4743_v21 }
 0xa31   : > { %3629 = vmatmul.msk.f32.gmra.mxu1 %vm457_vm3, %v4594_v13 }
 0xa39   : > { %3636 = vmatmul.msk.f32.vlgmr.msra.gmra.mxu1 %vm457_vm3, %v4619_v27 }
 0xa41   : > { %3637 = vmatmul.msk.f32.gmra.mxu1 %vm457_vm3, %v4626_v37 }
 0xa9b   : > { %v2972_v23 = vpop.f32.mrf.mxu0 }
 0xa9c   : > { %v2978_v62 = vadd.f32 %v2972_v23, %v4689_v7 }
 0xaa3   : > { %v2975_v2 = vpop.f32.mrf.mxu0 }
 0xaa6   : > { %v2997_v9 = vpop.f32.mrf.mxu1 }
 0xaa7   : > { %3630 = vmatmul.msk.f32.vlgmr.msrb.gmra.mxu2 %vm1038_vm4, %v2997_v9 }
 0xaae   : > { %v3000_v53 = vpop.f32.mrf.mxu1 }
 0xaaf   : > { %3631 = vmatmul.msk.f32.gmra.mxu2 %vm1038_vm4, %v3000_v53  ;;  %3053 = vmatpush.msrb.mxu3 %v3000_v53 }
 0xab1   : > { %3054 = vmatpush.msrb.mxu3 %v2997_v9  ;;  %v2423_v9 = vadd.f32 %v4706_v33, %v2300_v18 }
 0xab2   : > { %3632 = vmatmul.msk.f32.vlgmr.msrb.gmra.mxu3 %vm457_vm3, %v4585_v48  ;;  %v3069_v48 = vld [vmem:[#allocation8 + $0x190] sm:$0xff] }
 0xab3   : > { %3090 = vmatpush.msrb.mxu0 %v3069_v48  ;;  %v2979_v53 = vadd.f32 %v2975_v2, %v2423_v9 }
 0xab5   : > { %3091 = vmatpush.msrb.mxu0 %v3068_v1 }
 0xab6   : > { %v3119_v39 = vpop.f32.mrf.mxu1 }
 0xab7   : > { %3638 = vmatmul.msk.f32.vlgmr.msra.gmra.mxu2 %vm1038_vm4, %v3119_v39  ;;  %3092 = vmatpush.msrb.mxu0 %v3067_v63 }
 0xaba   : > { %3633 = vmatmul.msk.f32.gmra.mxu3 %vm457_vm3, %v4594_v13  ;;  %v3192_v13 = vld [vmem:[#allocation8 + $0x1d8] sm:$0xff] }
 0xabb   : > { %3211 = vmatpush.msra.mxu0 %v3192_v13 }
 0xabd   : > { %3212 = vmatpush.msra.mxu0 %v3191_v20  ;;  %v2924_v20 = vor.u32 1.1754944e-38, %v2923_v55 }
 0xabe   : > { %v3122_v30 = vpop.f32.mrf.mxu1 }
 0xabf   : > { %3639 = vmatmul.msk.f32.gmra.mxu2 %vm1038_vm4, %v3122_v30  ;;  %3175 = vmatpush.msra.mxu3 %v3122_v30 }
 0xac0   : > { %3213 = vmatpush.msra.mxu0 %v3190_v22 }
 0xac1   : > { %3176 = vmatpush.msra.mxu3 %v3119_v39 }
 0xac2   : > { %3640 = vmatmul.msk.f32.vlgmr.msra.gmra.mxu3 %vm457_vm3, %v4619_v27  ;;  %3214 = vmatpush.msra.mxu0 %v3189_v40  ;;  %v2848_v27 = vpop.f32.mrf.mxu3 }
 0xac3   : > { %v2852_v49 = vadd.f32 %v2848_v27, %v2759_v50 }
 0xac5   : > { %v2903_v16 = vadd.f32 %v3765_v10, %v2852_v49 }
 0xac7   : > { %v3625_v61 = vmul.f32 -1.442695, %v2903_v16 }
 0xac9   : > { %3797 = vpow2.f32 %v3625_v61 }
 0xaca   : > { %3641 = vmatmul.msk.f32.gmra.mxu3 %vm457_vm3, %v4626_v37  ;;  %3799 = vrcp.f32 %v2910_v15 }
 0xacf   : > { %v3798_v17 = vpop.eup %3797 }
 0xad0   : > { %v2911_v51 = vadd.f32 1.0, %v3798_v17  ;;  %v3800_v44 = vpop.eup %3799 }
 0xad1   : > { %v2913_v32 = vmul.f32 %v3800_v44, %v2910_v15  ;;  %vm2918_vm3 = vweird.f32 %v3800_v44 }
 0xad2   : > { %3801 = vrcp.f32 %v2911_v51  ;;  %vm2919_vm0 = vmor %vm2917_vm15, %vm2918_vm3  ;;  %vm2932_vm5 = vweird.f32 %v2911_v51 }
 0xad3   : > { %v2914_v11 = vsub.f32 1.0, %v2913_v32 }
 0xad5   : > { %v2915_v56 = vmul.f32 %v3800_v44, %v2914_v11 }
 0xad7   : > { %v2916_v7 = vadd.f32 %v3800_v44, %v2915_v56 }
 0xad8   : > { %v3802_v47 = vpop.eup %3801 }
 0xad9   : > { %v2928_v60 = vmul.f32 %v3802_v47, %v2911_v51  ;;  %v2920_v33 = vsel %vm2919_vm0, %v3800_v44, %v2916_v7  ;;  %vm2933_vm2 = vweird.f32 %v3802_v47 }
 0xada   : > { %v2925_v40 = vsel %vm2922_vm1, %v2924_v20, %v2920_v33  ;;  %vm2934_vm6 = vmor %vm2932_vm5, %vm2933_vm2 }
 0xadb   : > { %v2929_v6 = vsub.f32 1.0, %v2928_v60 }
 0xadd   : > { %v2930_v13 = vmul.f32 %v3802_v47, %v2929_v6 }
 0xb35   : > { %v3056_v24 = vpop.f32.mrf.mxu3 }
 0xb36   : > { %v3062_v41 = vmul.f32 2.0, %v3056_v24  ;;  %v2931_v24 = vadd.f32 %v3802_v47, %v2930_v13 }
 0xb38   : > { %v3064_v37 = vsub.f32 %v3062_v41, %v4743_v21 }
 0xb3a   : > { %3634 = vmatmul.msk.f32.vlgmr.msrb.gmra.mxu0 %vm1038_vm4, %v3064_v37  ;;  %v2938_v37 = vand.u32 2147483648, %v2911_v51 }
 0xb3d   : > { %v3059_v3 = vpop.f32.mrf.mxu3 }
 0xb3e   : > { %v3063_v36 = vmul.f32 2.0, %v3059_v3 }
 0xb40   : > { %v3065_v25 = vsub.f32 %v3063_v36, %v4748_v4  ;;  %v3235_v36 = vsub.f32 1.0, %v2925_v40 }
 0xb42   : > { %3635 = vmatmul.msk.f32.gmra.mxu0 %vm1038_vm4, %v3065_v25  ;;  %v2936_v25 = vand.u32 2147483647, %v2911_v51 }
 0xb44   : > { %vm2937_vm7 = vcmp.eq.f32.partialorder %v2936_v25, 8.507059e+37 }
 0xb45   : > { %v3178_v34 = vpop.f32.mrf.mxu3 }
 0xb46   : > { %v3184_v26 = vmul.f32 2.0, %v3178_v34 }
 0xb48   : > { %v3186_v43 = vsub.f32 %v3184_v26, %v4743_v21  ;;  %v3031_v21 = vpop.f32.mrf.mxu2 }
 0xb49   : > { %v3037_v42 = vadd.f32 %v3031_v21, %v2978_v62 }
 0xb4a   : > { %3642 = vmatmul.msk.f32.vlgmr.msra.gmra.mxu0 %vm1038_vm4, %v3186_v43  ;;  %v3233_v43 = vmul.f32 %v2925_v40, %v4654_v46 }
 0xb4d   : > { %v3181_v57 = vpop.f32.mrf.mxu3 }
 0xb4e   : > { %v3185_v5 = vmul.f32 2.0, %v3181_v57 }
 0xb50   : > { %v3187_v28 = vsub.f32 %v3185_v5, %v4748_v4  ;;  %v3034_v45 = vpop.f32.mrf.mxu2  ;;  %v2935_v5 = vsel %vm2934_vm6, %v3802_v47, %v2931_v24 }
 0xb51   : > { %v3038_v19 = vadd.f32 %v3034_v45, %v2979_v53 }
 0xb52   : > { %3643 = vmatmul.msk.f32.gmra.mxu0 %vm1038_vm4, %v3187_v28  ;;  %v2939_v28 = vor.u32 1.1754944e-38, %v2938_v37 }
 0xb54   : > { %v2940_v12 = vsel %vm2937_vm7, %v2939_v28, %v2935_v5 }
 0xb55   : > { %v3236_v29 = vsub.f32 1.0, %v2940_v12  ;;  %v3234_v58 = vmul.f32 %v2940_v12, %v4663_v52 }
 0xb58   : > { %v3153_v0 = vpop.f32.mrf.mxu2 }
 0xb60   : > { %v3156_v22 = vpop.f32.mrf.mxu2 }
 0xbb7   : > { %v3094_v59 = vpop.f32.mrf.mxu0 }
 0xbb8   : > { %v3100_v8 = vadd.f32 %v3094_v59, %v3037_v42 }
 0xbba   : > { %v3159_v39 = vadd.f32 %v3153_v0, %v3100_v8 }
 0xbbf   : > { %v3097_v4 = vpop.f32.mrf.mxu0 }
 0xbc0   : > { %v3101_v1 = vadd.f32 %v3097_v4, %v3038_v19 }
 0xbc2   : > { %v3160_v27 = vadd.f32 %v3156_v22, %v3101_v1 }
 0xbc7   : > { %v3216_v30 = vpop.f32.mrf.mxu0 }
 0xbc8   : > { %v3222_v48 = vadd.f32 %v3216_v30, %v3159_v39 }
 0xbca   : > { %v3229_v63 = vadd.f32 %v3766_v38, %v3222_v48 }
 0xbcc   : > { %3803 = vtanh.f32 %v3229_v63 }
 0xbcf   : > { %v3219_v41 = vpop.f32.mrf.mxu0 }
 0xbd0   : > { %v3223_v3 = vadd.f32 %v3219_v41, %v3160_v27 }
 0xbd2   : > { %v3804_v34 = vpop.eup %3803  ;;  %v3230_v26 = vadd.f32 %v3766_v38, %v3223_v3 }
 0xbd3   : > { %v3237_v57 = vmul.f32 %v3804_v34, %v3235_v36 }
 0xbd4   : > { %3805 = vtanh.f32 %v3230_v26 }
 0xbd5   : > { %v3239_v10 = vadd.f32 %v3237_v57, %v3233_v43 }
 0xbd7   : > { %3241 = vst.msk [vmem:[#allocation2 + $0x10] sm:$0xff] %vm1038_vm4, %v3239_v10 }
 0xbda   : > { %v3806_v50 = vpop.eup %3805 }
 0xbdb   : > { %v3238_v49 = vmul.f32 %v3806_v50, %v3236_v29  ;;  %3246 = sbr.rel (%p3645_p5) target bundleno = 3191 (0xc77), region = 80 }
 0xbdd   : > { %v3240_v16 = vadd.f32 %v3238_v49, %v3234_v58 }
 0xbdf   : > { %3242 = vst.msk [vmem:[#allocation2 + $0x18] sm:$0xff] %vm1038_vm4, %v3240_v16 }
 0xbe0   : > { %v3250_v46 = vld [vmem:[%s4876_s8 + $0x18] sm:$0xff]  ;;  %v3249_v23 = vld [vmem:[%s4876_s8 + $0x10] sm:$0xff]  ;;  %v3248_v52 = vld [vmem:[%s4876_s8 + $0x8] sm:$0xff] }
 0xbe1   : > { %3273 = vmatpush.msra.mxu0 %v3250_v46  ;;  %3652 = vmatpush.msra.mxu1 %v3250_v46  ;;  %v3247_v61 = vld [vmem:[%s4876_s8] sm:$0xff] }
 0xbe2   : > { %v3811_v35 = vld [vmem:[%s4877_s9] ss:$0 sm:$0xff] }
 0xbe3   : > { %3274 = vmatpush.msra.mxu0 %v3249_v23  ;;  %3653 = vmatpush.msra.mxu1 %v3249_v23 }
 0xbe5   : > { %3275 = vmatpush.msra.mxu0 %v3248_v52  ;;  %3654 = vmatpush.msra.mxu1 %v3248_v52 }
 0xbe7   : > { %3276 = vmatpush.msra.mxu0 %v3247_v61  ;;  %3655 = vmatpush.msra.mxu1 %v3247_v61 }
 0xbe8   : > { %3646 = vmatmul.msk.f32.vlgmr.msra.gmra.mxu0 %vm1038_vm4, %v3239_v10  ;;  %3647 = vmatmul.msk.f32.vlgmr.msra.gmra.mxu1 %vm1038_vm4, %v3240_v16 }
 0xc65   : > { %v3278_v15 = vpop.f32.mrf.mxu0  ;;  %v3281_v2 = vpop.f32.mrf.mxu1 }
 0xc66   : > { %v3279_v21 = vadd.f32 %v3811_v35, %v3278_v15  ;;  %v3282_v17 = vadd.f32 %v3811_v35, %v3281_v2 }
 0xc68   : > { %v3284_v51 = vmax.f32 %v3279_v21, %v3282_v17 }
 0xc6a   : > { %v3285_v59 = vrot.slane %v3284_v51, 4 }
 0xc6c   : > { %v3286_v44 = vmax.f32 %v3284_v51, %v3285_v59 }
 0xc6e   : > { %v3287_v45 = vrot.slane %v3286_v44, 2 }
 0xc70   : > { %v3288_v32 = vmax.f32 %v3286_v44, %v3287_v45 }
 0xc72   : > { %v3289_v31 = vrot.slane %v3288_v32, 1 }
 0xc74   : > { %v3290_v62 = vmax.f32 %v3288_v32, %v3289_v31 }
 0xc76   : > { %3291 = vst [vmem:[%s424_s29] sm:$0xff] %v3290_v62 }
 0xc77 PF: > { %s3649_s30 = sshll.u32 %s3992_s17, 3  ;;  %s3305_s25 = sshll.u32 %s424_s29, 4  ;;  %s3306_s25 = int_to_ptr.vmem [resolvable:$true] %s3305_s25 }
 0xc78   : > { %s3303_s21 = scalar_lea.hbm %s4878_s10, %s3649_s30  ;;  %s3293_s22 = scalar_lea.sflag [#allocation5], %s422_s5 }
 0xc79   : > { %s3307_s23 = sshll.u32 %s3303_s21, 4  ;;  %s3922_s19 = scalar_lea.hbm %s4878_s10, 16  ;;  %s3308_s23 = int_to_ptr.hbm [resolvable:$true] %s3307_s23 }
 0xc7a   : > { %s3916_s24 = sshra.s32 %s3308_s23, 4  ;;  %s3917_s24 = int_to_ptr.hbm [resolvable:$true] %s3916_s24 }
 0xc7b   : > { %s3918_s15 = scalar_lea.hbm %s3917_s24, 8  ;;  %p3923_p10 = scmp.lt.s32.totalorder %s3917_s24, %s4878_s10 }
 0xc7c   : > { %p3919_p6 = scmp.ne.s32.totalorder %s3917_s24, %s3918_s15  ;;  %p3924_p11 = scmp.lt.s32.totalorder %s3922_s19, %s3918_s15 }
 0xc7e   : > { %p3920_p7 = pnand %p3919_p6, %p4117_p3  ;;  %p3925_p12 = por %p3924_p11, %p3923_p10 }
 0xc80   : > { %p3921_p8 = pneg %p3920_p7 }
 0xc82   : > { %p3926_p13 = pnand %p3925_p12, %p3921_p8 }
 0xc84   : > { %3929 = shalt.err (!%p3926_p13)
}
 0xc85   : > { %3668 = dma.vmem_to_hbm [thread:$0]  (%p4117_p3), %s3306_s25, 128, %s3308_s23, %s3293_s22  }
 0xc86 PF: > { %s4903_s5 = sld [smem:[#allocation17_spill]] }
 0xc87   : > { %s4904_s13 = sld [smem:[#allocation13_spill]] }
 0xc8c   : > { %p3690_p0 = scmp.ge.s32.totalorder %s4903_s5, 2 }
 0xc8d   : > { %s3319_s16 = sand.u32 1, %s4904_s13  }
 0xc8e   : > { %p3681_p1 = pnand %p3690_p0, %p4127_p9  ;;  %s3320_s28 = scalar_lea.sflag [#allocation5], %s3319_s16 }
 0xc90   : > { %p3682_p2 = pneg %p3681_p1 }
 0xc92   : > { %3971 = dma.done.wait (%p3682_p2), %s3320_s28, 128  }
 0xc93   : > { %3973 = vsyncadd (%p3682_p2), %s3320_s28, 4294967168  ;;  %s25_s20 = sadd.s32 1, %s4903_s5   ;;  %s4906_s30 = sld [smem:[#allocation14_spill]] }
 0xc94   : > { %p22_p4 = scmp.ge.s32.totalorder %s25_s20, 18   ;;  %s4907_s15 = sld [smem:[#allocation21_spill]] }
 0xc95   : > { %s4908_s16 = sld [smem:[#allocation15_spill]]  ;;  %s4912_s13 = smov %s3980_s14 }
 0xc96   : > { %s4909_s17 = sld [smem:[#allocation16_spill]]  ;;  %24 = sbr.rel (!%p22_p4) target bundleno = 9 (0x9), region = 178 }
 0xc97   : > { %s4910_s18 = sld [smem:[#allocation18_spill]] }
 0xc98   : > { %s4911_s19 = sld [smem:[#allocation19_spill]] }
 0xc99   : > { %s4913_s14 = smov %s4906_s30 }
 0xc9b   :  { %3326 = vsyncpa [#allocation4], 1 }
 0xc9c   :  { %3328 = vsyncpa [#allocation4 + $0x1], 1 }
 0xc9d   :  { %3329 = vsyncpa [#allocation7], 1 }
 0xc9e   :  { %3330 = vsyncpa [#allocation5], 1 }
 0xc9f   :  { %3332 = vsyncpa [#allocation5 + $0x1], 1 }

</bundles_post_ra>
